<compile_context>
chip_gen: v7x
topology: tpu7x:2x2x1
jax: 0.10.0
libtpu: 0.0.40
codegen_flags: <defaults>
</compile_context>

<pallas_src>
import functools

import numpy as np
import jax
import jax.numpy as jnp
from jax.experimental import pallas as pl
from jax.experimental.pallas import tpu as pltpu

BN_EPS = 1e-5
LANE = 128
VMEM_LIMIT = 64 * 1024 * 1024  # budget against v7x's 64 MiB physical VMEM


def _round_up(x, m):
    return (x + m - 1) // m * m


def _tiling(m, tm_target=512):
    """Row tiling: tm is 8-aligned; M is padded (with zero rows) to n*tm."""
    tm = _round_up(m, 8) if m <= tm_target else tm_target
    m_pad = _round_up(m, tm)
    return tm, m_pad


def _pad2d(a, rows, cols, dtype):
    a = a.astype(dtype)
    r, c = a.shape
    if r == rows and c == cols:
        return a
    return jnp.pad(a, ((0, rows - r), (0, cols - c)))


# ---------------------------------------------------------------------------
# Kernel 1: tiled conv-as-matmul (bf16 MXU, f32 accum) + per-M-tile BN stats.
#   grid = (M tiles ["parallel"], K tiles ["arbitrary" = reduction]).
#   Zero-padded rows/channels contribute 0 to sum/sumsq, so dividing by the
#   true M in the wrapper keeps the statistics exact.
# ---------------------------------------------------------------------------
def _matmul_stats_kernel(x_ref, w_ref, y_ref, s_ref, ss_ref, acc_ref):
    k = pl.program_id(1)

    @pl.when(k == 0)
    def _():
        acc_ref[...] = jnp.zeros_like(acc_ref)

    acc_ref[...] += jnp.dot(x_ref[...], w_ref[...],
                            preferred_element_type=jnp.float32)

    @pl.when(k == pl.num_programs(1) - 1)
    def _():
        y = acc_ref[...]
        y_ref[...] = y
        s = jnp.sum(y, axis=0, keepdims=True)            # (1, Co)
        ss = jnp.sum(y * y, axis=0, keepdims=True)       # (1, Co)
        s_ref[...] = jnp.broadcast_to(s, s_ref.shape)    # 8-row block for layout
        ss_ref[...] = jnp.broadcast_to(ss, ss_ref.shape)


def matmul_with_stats(patches, w2d, *, tm, m_pad, co_pad, tk_target=512):
    """patches: (M, K), w2d: (K, Co).  Returns y (m_pad, co_pad) f32 and the
    per-channel sum / sum-of-squares over the M rows (co_pad,) f32."""
    m, k = patches.shape
    _, co = w2d.shape
    nm = m_pad // tm
    if k <= 2 * tk_target:            # small K (typical ASPP branch): one block
        tk, k_pad = k, k
    else:                             # large K: tile the reduction axis
        tk = tk_target
        k_pad = _round_up(k, tk)
    nk = k_pad // tk

    x = _pad2d(patches, m_pad, k_pad, jnp.bfloat16)
    w = _pad2d(w2d, k_pad, co_pad, jnp.bfloat16)

    flops = 2 * m_pad * k_pad * co_pad
    bytes_accessed = (m_pad * k_pad + k_pad * co_pad) * 2 \
        + (m_pad + 16 * nm) * co_pad * 4

    y, s, ss = pl.pallas_call(
        _matmul_stats_kernel,
        grid=(nm, nk),
        in_specs=[
            pl.BlockSpec((tm, tk), lambda i, j: (i, j)),
            pl.BlockSpec((tk, co_pad), lambda i, j: (j, 0)),
        ],
        out_specs=[
            pl.BlockSpec((tm, co_pad), lambda i, j: (i, 0)),
            pl.BlockSpec((8, co_pad), lambda i, j: (i, 0)),
            pl.BlockSpec((8, co_pad), lambda i, j: (i, 0)),
        ],
        out_shape=[
            jax.ShapeDtypeStruct((m_pad, co_pad), jnp.float32),
            jax.ShapeDtypeStruct((nm * 8, co_pad), jnp.float32),
            jax.ShapeDtypeStruct((nm * 8, co_pad), jnp.float32),
        ],
        scratch_shapes=[pltpu.VMEM((tm, co_pad), jnp.float32)],
        compiler_params=pltpu.CompilerParams(
            dimension_semantics=("parallel", "arbitrary"),
            vmem_limit_bytes=VMEM_LIMIT),
        cost_estimate=pl.CostEstimate(flops=flops, transcendentals=0,
                                      bytes_accessed=bytes_accessed),
    )(x, w)

    # Cross-tile reduction of the partial statistics (tiny (nm, Co) math).
    col_sum = jnp.sum(s.reshape(nm, 8, co_pad)[:, 0, :], axis=0)
    col_sumsq = jnp.sum(ss.reshape(nm, 8, co_pad)[:, 0, :], axis=0)
    return y, col_sum, col_sumsq


def _bn_affine(col_sum, col_sumsq, m_true, gamma, beta):
    """Fold BN into a single scale/bias: y_norm*g+b == y*scale + bias."""
    mean = col_sum / m_true
    var = jnp.maximum(col_sumsq / m_true - mean * mean, 0.0)
    scale = gamma * jax.lax.rsqrt(var + BN_EPS)
    bias = beta - mean * scale
    return scale, bias


# ---------------------------------------------------------------------------
# Kernel 2: fused (normalize+ReLU of the 4 branches) + concat-free 1x1 conv
# + per-M-tile stats for the final BN.  grid = (M tiles,) "parallel".
# ---------------------------------------------------------------------------
def _fused_concat_conv_kernel(y1_ref, y2_ref, y3_ref, y4_ref, sb_ref, w_ref,
                              u_ref, s_ref, ss_ref, *, tm, m_true):
    co = u_ref.shape[-1]
    row = jax.lax.broadcasted_iota(jnp.int32, (tm, 1), 0) + pl.program_id(0) * tm
    valid = row < m_true                       # mask zero-padded rows (bias!=0)
    acc = None
    for b, y_ref in enumerate((y1_ref, y2_ref, y3_ref, y4_ref)):
        z = jnp.maximum(y_ref[...] * sb_ref[b:b + 1, :] + sb_ref[4 + b:5 + b, :],
                        0.0)
        z = jnp.where(valid, z, 0.0)
        part = jnp.dot(z.astype(jnp.bfloat16), w_ref[b * co:(b + 1) * co, :],
                       preferred_element_type=jnp.float32)
        acc = part if acc is None else acc + part
    u_ref[...] = acc
    s_ref[...] = jnp.broadcast_to(jnp.sum(acc, axis=0, keepdims=True),
                                  s_ref.shape)
    ss_ref[...] = jnp.broadcast_to(jnp.sum(acc * acc, axis=0, keepdims=True),
                                   ss_ref.shape)


def fused_concat_conv(branch_ys, sb, w1_pad, *, tm, m_true):
    m_pad, co_pad = branch_ys[0].shape
    nm = m_pad // tm
    kernel = functools.partial(_fused_concat_conv_kernel, tm=tm, m_true=m_true)
    flops = 2 * m_pad * (4 * co_pad) * co_pad
    bytes_accessed = 4 * m_pad * co_pad * 4 + 4 * co_pad * co_pad * 2 \
        + (m_pad + 16 * nm) * co_pad * 4

    u, s, ss = pl.pallas_call(
        kernel,
        grid=(nm,),
        in_specs=[pl.BlockSpec((tm, co_pad), lambda i: (i, 0))] * 4 + [
            pl.BlockSpec((8, co_pad), lambda i: (0, 0)),
            pl.BlockSpec((4 * co_pad, co_pad), lambda i: (0, 0)),
        ],
        out_specs=[
            pl.BlockSpec((tm, co_pad), lambda i: (i, 0)),
            pl.BlockSpec((8, co_pad), lambda i: (i, 0)),
            pl.BlockSpec((8, co_pad), lambda i: (i, 0)),
        ],
        out_shape=[
            jax.ShapeDtypeStruct((m_pad, co_pad), jnp.float32),
            jax.ShapeDtypeStruct((nm * 8, co_pad), jnp.float32),
            jax.ShapeDtypeStruct((nm * 8, co_pad), jnp.float32),
        ],
        compiler_params=pltpu.CompilerParams(
            dimension_semantics=("parallel",),
            vmem_limit_bytes=VMEM_LIMIT),
        cost_estimate=pl.CostEstimate(flops=flops, transcendentals=0,
                                      bytes_accessed=bytes_accessed),
    )(*branch_ys, sb, w1_pad)

    col_sum = jnp.sum(s.reshape(nm, 8, co_pad)[:, 0, :], axis=0)
    col_sumsq = jnp.sum(ss.reshape(nm, 8, co_pad)[:, 0, :], axis=0)
    return u, col_sum, col_sumsq


# ---------------------------------------------------------------------------
# Kernel 3: elementwise scale + bias + ReLU (final BN application).
# ---------------------------------------------------------------------------
def _scale_bias_relu_kernel(y_ref, sb_ref, o_ref):
    o_ref[...] = jnp.maximum(y_ref[...] * sb_ref[0:1, :] + sb_ref[1:2, :], 0.0)


def scale_bias_relu(y, sb, *, tm):
    m_pad, co_pad = y.shape
    nm = m_pad // tm
    return pl.pallas_call(
        _scale_bias_relu_kernel,
        grid=(nm,),
        in_specs=[pl.BlockSpec((tm, co_pad), lambda i: (i, 0)),
                  pl.BlockSpec((8, co_pad), lambda i: (0, 0))],
        out_specs=pl.BlockSpec((tm, co_pad), lambda i: (i, 0)),
        out_shape=jax.ShapeDtypeStruct((m_pad, co_pad), jnp.float32),
        compiler_params=pltpu.CompilerParams(
            dimension_semantics=("parallel",),
            vmem_limit_bytes=VMEM_LIMIT),
    )(y, sb)


# ---------------------------------------------------------------------------
# Glue: im2col for dilated "same" convs (stride=1, padding=dilation for 3x3).
# ---------------------------------------------------------------------------
def im2col_dilated(x_nhwc, ksize, dilation):
    n, h, w, c = x_nhwc.shape
    if ksize == 1:
        return x_nhwc.reshape(n * h * w, c)
    pad = dilation
    xp = jnp.pad(x_nhwc, ((0, 0), (pad, pad), (pad, pad), (0, 0)))
    cols = [xp[:, ki * dilation: ki * dilation + h,
               kj * dilation: kj * dilation + w, :]
            for ki in range(ksize) for kj in range(ksize)]
    patches = jnp.concatenate(cols, axis=-1)          # (N,H,W,k*k*C)
    return patches.reshape(n * h * w, ksize * ksize * c)


def torch_conv_weight_to_matrix(w_oihw):
    # (Co, Ci, kh, kw) -> (kh*kw*Ci, Co), matching the (ki, kj, c) patch order.
    co, ci, kh, kw = w_oihw.shape
    return jnp.transpose(w_oihw, (2, 3, 1, 0)).reshape(kh * kw * ci, co)


# ---------------------------------------------------------------------------
# ASPP forward (with_glob_avg_pool=False, the module default).
# ---------------------------------------------------------------------------
@functools.partial(jax.jit, static_argnames=("branch_cfg",))
def aspp_forward(x_nchw, params, branch_cfg):
    n, cin, h, w = x_nchw.shape
    m = n * h * w
    co = params["dil_conv1"]["w"].shape[0]
    co_pad = _round_up(co, LANE)        # lane-dense outputs (>=128 channels)
    tm, m_pad = _tiling(m)

    # NHWC, bf16: halves im2col traffic and feeds the MXU at native rate.
    x = jnp.transpose(x_nchw, (0, 2, 3, 1)).astype(jnp.bfloat16)

    branch_ys, scales, biases = [], [], []
    for b, (ksize, dilation) in enumerate(branch_cfg):
        p = params[f"dil_conv{b + 1}"]
        patches = im2col_dilated(x, ksize, dilation)
        w2d = torch_conv_weight_to_matrix(p["w"])
        y, col_sum, col_sumsq = matmul_with_stats(
            patches, w2d, tm=tm, m_pad=m_pad, co_pad=co_pad)
        gamma = jnp.ones((co_pad,), jnp.float32).at[:co].set(p["gamma"])
        beta = jnp.zeros((co_pad,), jnp.float32).at[:co].set(p["beta"])
        scale, bias = _bn_affine(col_sum, col_sumsq, m, gamma, beta)
        branch_ys.append(y)
        scales.append(scale)
        biases.append(bias)

    # Rows 0-3: per-branch BN scale, rows 4-7: per-branch BN bias.
    sb_branches = jnp.concatenate([jnp.stack(scales), jnp.stack(biases)], axis=0)

    # Final 1x1 conv weight, laid out per-branch with channel padding to co_pad.
    w1 = params["conv1"]["w"]                            # (co, 4*co, 1, 1)
    w1_mat = jnp.transpose(w1, (2, 3, 1, 0)).reshape(4 * co, co)
    w1_pad = jnp.zeros((4 * co_pad, co_pad), jnp.bfloat16)
    for b in range(4):
        w1_pad = w1_pad.at[b * co_pad: b * co_pad + co, :co].set(
            w1_mat[b * co:(b + 1) * co, :].astype(jnp.bfloat16))

    u, fsum, fsumsq = fused_concat_conv(branch_ys, sb_branches, w1_pad,
                                        tm=tm, m_true=m)
    gamma1 = jnp.ones((co_pad,), jnp.float32).at[:co].set(params["bn1"]["gamma"])
    beta1 = jnp.zeros((co_pad,), jnp.float32).at[:co].set(params["bn1"]["beta"])
    scale_f, bias_f = _bn_affine(fsum, fsumsq, m, gamma1, beta1)
    sb_fin = jnp.concatenate(
        [scale_f[None, :], bias_f[None, :], jnp.zeros((6, co_pad), jnp.float32)],
        axis=0)

    out = scale_bias_relu(u, sb_fin, tm=tm)
    out = out[:m, :co].reshape(n, h, w, co)
    return jnp.transpose(out, (0, 3, 1, 2))              # NCHW, f32


# ---------------------------------------------------------------------------
# Pure-JAX references (bf16-math reference for a strict check, f32-HIGHEST
# reference for a loose sanity bound on the bf16 precision trade-off).
# ---------------------------------------------------------------------------
def _ref_conv(x, w, dilation, padding, use_bf16):
    if use_bf16:
        return jax.lax.conv_general_dilated(
            x.astype(jnp.bfloat16), w.astype(jnp.bfloat16),
            window_strides=(1, 1),
            padding=((padding, padding), (padding, padding)),
            rhs_dilation=(dilation, dilation),
            dimension_numbers=("NCHW", "OIHW", "NCHW"),
            preferred_element_type=jnp.float32)
    return jax.lax.conv_general_dilated(
        x, w, window_strides=(1, 1),
        padding=((padding, padding), (padding, padding)),
        rhs_dilation=(dilation, dilation),
        dimension_numbers=("NCHW", "OIHW", "NCHW"),
        precision=jax.lax.Precision.HIGHEST)


def _ref_bn_relu(y, gamma, beta):
    mean = jnp.mean(y, axis=(0, 2, 3), keepdims=True)
    var = jnp.mean(jnp.square(y - mean), axis=(0, 2, 3), keepdims=True)
    scale = gamma.reshape(1, -1, 1, 1) * jax.lax.rsqrt(var + BN_EPS)
    bias = beta.reshape(1, -1, 1, 1) - mean * scale
    return jnp.maximum(y * scale + bias, 0.0)


def aspp_reference(x, params, branch_cfg, *, use_bf16):
    zs = []
    for b, (ksize, dilation) in enumerate(branch_cfg):
        p = params[f"dil_conv{b + 1}"]
        pad = 0 if ksize == 1 else dilation
        y = _ref_conv(x, p["w"], dilation, pad, use_bf16)
        zs.append(_ref_bn_relu(y, p["gamma"], p["beta"]))
    cat = jnp.concatenate(zs, axis=1)
    u = _ref_conv(cat, params["conv1"]["w"], 1, 0, use_bf16)
    return _ref_bn_relu(u, params["bn1"]["gamma"], params["bn1"]["beta"])


# ---------------------------------------------------------------------------
# Deterministic parameter construction (arrays only; conv geometry is static).
# ---------------------------------------------------------------------------
def make_params(key, infeat, outfeat):
    keys = jax.random.split(key, 16)
    ki = iter(range(16))
    params = {}
    ksizes = (1, 3, 3, 3)
    for b in range(4):
        k = ksizes[b]
        params[f"dil_conv{b + 1}"] = {
            "w": 0.1 * jax.random.normal(keys[next(ki)], (outfeat, infeat, k, k),
                                         dtype=jnp.float32),
            "gamma": 0.5 + jax.random.uniform(keys[next(ki)], (outfeat,),
                                              dtype=jnp.float32),
            "beta": 0.1 * jax.random.normal(keys[next(ki)], (outfeat,),
                                            dtype=jnp.float32),
        }
    params["conv1"] = {
        "w": 0.1 * jax.random.normal(keys[next(ki)], (outfeat, 4 * outfeat, 1, 1),
                                     dtype=jnp.float32),
    }
    params["bn1"] = {
        "gamma": 0.5 + jax.random.uniform(keys[next(ki)], (outfeat,),
                                          dtype=jnp.float32),
        "beta": 0.1 * jax.random.normal(keys[next(ki)], (outfeat,),
                                        dtype=jnp.float32),
    }
    return params


if __name__ == "__main__":
    key = jax.random.PRNGKey(0)
    k_x, k_p = jax.random.split(key)

    N, infeat, H, W = 2, 4, 16, 16
    outfeat = 8
    dilations = (1, 2, 4, 6)
    branch_cfg = ((1, dilations[0]), (3, dilations[1]),
                  (3, dilations[2]), (3, dilations[3]))

    x = jax.random.normal(k_x, (N, infeat, H, W), dtype=jnp.float32)
    params = make_params(k_p, infeat, outfeat)

    out = jax.block_until_ready(aspp_forward(x, params, branch_cfg=branch_cfg))
    assert out.shape == (N, outfeat, H, W), out.shape

    # Strict check against a reference doing the same math (bf16 MXU inputs,
    # f32 accumulation, batch-statistic BN) with XLA convolutions.
    ref_bf16 = jax.block_until_ready(
        aspp_reference(x, params, branch_cfg, use_bf16=True))
    np.testing.assert_allclose(np.asarray(out), np.asarray(ref_bf16),
                               rtol=2e-3, atol=2e-3)

    # Loose sanity bound vs. the full-f32 HIGHEST reference (bf16 MXU inputs
    # trade a little precision for 3-6x MXU throughput, per the perf review).
    ref_f32 = jax.block_until_ready(
        aspp_reference(x, params, branch_cfg, use_bf16=False))
    np.testing.assert_allclose(np.asarray(out), np.asarray(ref_f32),
                               rtol=5e-2, atol=8e-2)

    print("KERNEL_OK")
</pallas_src>

<mosaic_0001>
module attributes {stable_mosaic.version = 11 : i64} {
  func.func @_matmul_stats_kernel(%arg0: i32, %arg1: i32, %arg2: memref<512x36xbf16, #tpu.memory_space<vmem>>, %arg3: memref<36x128xbf16, #tpu.memory_space<vmem>>, %arg4: memref<512x128xf32, #tpu.memory_space<vmem>>, %arg5: memref<8x128xf32, #tpu.memory_space<vmem>>, %arg6: memref<8x128xf32, #tpu.memory_space<vmem>>, %arg7: memref<512x128xf32, #tpu.memory_space<vmem>>) attributes {dimension_semantics = [#tpu.dimension_semantics<parallel>, #tpu.dimension_semantics<arbitrary>], iteration_bounds = array<i64: 1, 1>, scalar_prefetch = 0 : i64, scratch_operands = 1 : i64, tpu.core_type = #tpu.core_type<tc>, window_params = [{transform_indices = @transform_0, window_bounds = array<i64: 512, 36>}, {transform_indices = @transform_1, window_bounds = array<i64: 36, 128>}, {transform_indices = @transform_2, window_bounds = array<i64: 512, 128>}, {transform_indices = @transform_3, window_bounds = array<i64: 8, 128>}, {transform_indices = @transform_4, window_bounds = array<i64: 8, 128>}]} {
    %c0_i32 = arith.constant 0 : i32
    %0 = arith.cmpi eq, %arg1, %c0_i32 : i32
    %1 = arith.extui %0 : i1 to i32
    %c0_i32_0 = arith.constant 0 : i32
    %2 = arith.cmpi ne, %1, %c0_i32_0 : i32
    scf.if %2 {
      %cst_10 = arith.constant 0.000000e+00 : f32
      %12 = vector.broadcast %cst_10 : f32 to vector<512x128xf32>
      %c0_11 = arith.constant 0 : index
      %c0_12 = arith.constant 0 : index
      %13 = vector.load %arg7[%c0_11, %c0_12] : memref<512x128xf32, #tpu.memory_space<vmem>>, vector<512x128xf32>
      tpu.vector_store %arg7[%c0_11, %c0_12], %12 {strides = array<i32>} : memref<512x128xf32, #tpu.memory_space<vmem>>, vector<512x128xf32>,
    } else {
    }
    %c0 = arith.constant 0 : index
    %c0_1 = arith.constant 0 : index
    %3 = vector.load %arg7[%c0, %c0_1] : memref<512x128xf32, #tpu.memory_space<vmem>>, vector<512x128xf32>
    %c0_2 = arith.constant 0 : index
    %c0_3 = arith.constant 0 : index
    %4 = vector.load %arg2[%c0_2, %c0_3] : memref<512x36xbf16, #tpu.memory_space<vmem>>, vector<512x36xbf16>
    %c0_4 = arith.constant 0 : index
    %c0_5 = arith.constant 0 : index
    %5 = vector.load %arg3[%c0_4, %c0_5] : memref<36x128xbf16, #tpu.memory_space<vmem>>, vector<36x128xbf16>
    %cst = arith.constant dense<0.000000e+00> : vector<512x128xf32>
    %6 = tpu.matmul %4, %5, %cst {dimension_numbers = #tpu.dot_dimension_numbers<[1], [0], [0], [1], [0, 0, 1, 1], [], []>} : vector<512x36xbf16>, vector<36x128xbf16>, vector<512x128xf32> -> vector<512x128xf32>
    %7 = arith.addf %3, %6 : vector<512x128xf32>
    %c0_6 = arith.constant 0 : index
    %c0_7 = arith.constant 0 : index
    %8 = vector.load %arg7[%c0_6, %c0_7] : memref<512x128xf32, #tpu.memory_space<vmem>>, vector<512x128xf32>
    tpu.vector_store %arg7[%c0_6, %c0_7], %7 {strides = array<i32>} : memref<512x128xf32, #tpu.memory_space<vmem>>, vector<512x128xf32>,
    %c0_i32_8 = arith.constant 0 : i32
    %9 = arith.cmpi eq, %arg1, %c0_i32_8 : i32
    %10 = arith.extui %9 : i1 to i32
    %c0_i32_9 = arith.constant 0 : i32
    %11 = arith.cmpi ne, %10, %c0_i32_9 : i32
    scf.if %11 {
      %c0_10 = arith.constant 0 : index
      %c0_11 = arith.constant 0 : index
      %12 = vector.load %arg7[%c0_10, %c0_11] : memref<512x128xf32, #tpu.memory_space<vmem>>, vector<512x128xf32>
      %c0_12 = arith.constant 0 : index
      %c0_13 = arith.constant 0 : index
      %13 = vector.load %arg4[%c0_12, %c0_13] : memref<512x128xf32, #tpu.memory_space<vmem>>, vector<512x128xf32>
      tpu.vector_store %arg4[%c0_12, %c0_13], %12 {strides = array<i32>} : memref<512x128xf32, #tpu.memory_space<vmem>>, vector<512x128xf32>,
      %cst_14 = arith.constant dense<0.000000e+00> : vector<128xf32>
      %14 = vector.multi_reduction <add>, %12, %cst_14 [0] : vector<512x128xf32> to vector<128xf32>
      %15 = vector.shape_cast %14 : vector<128xf32> to vector<1x128xf32>
      %16 = arith.mulf %12, %12 : vector<512x128xf32>
      %cst_15 = arith.constant dense<0.000000e+00> : vector<128xf32>
      %17 = vector.multi_reduction <add>, %16, %cst_15 [0] : vector<512x128xf32> to vector<128xf32>
      %18 = vector.shape_cast %17 : vector<128xf32> to vector<1x128xf32>
      %19 = vector.shape_cast %15 : vector<1x128xf32> to vector<1x128xf32>
      %20 = vector.broadcast %19 : vector<1x128xf32> to vector<8x128xf32>
      %c0_16 = arith.constant 0 : index
      %c0_17 = arith.constant 0 : index
      %21 = vector.load %arg5[%c0_16, %c0_17] : memref<8x128xf32, #tpu.memory_space<vmem>>, vector<8x128xf32>
      tpu.vector_store %arg5[%c0_16, %c0_17], %20 {strides = array<i32>} : memref<8x128xf32, #tpu.memory_space<vmem>>, vector<8x128xf32>,
      %22 = vector.shape_cast %18 : vector<1x128xf32> to vector<1x128xf32>
      %23 = vector.broadcast %22 : vector<1x128xf32> to vector<8x128xf32>
      %c0_18 = arith.constant 0 : index
      %c0_19 = arith.constant 0 : index
      %24 = vector.load %arg6[%c0_18, %c0_19] : memref<8x128xf32, #tpu.memory_space<vmem>>, vector<8x128xf32>
      tpu.vector_store %arg6[%c0_18, %c0_19], %23 {strides = array<i32>} : memref<8x128xf32, #tpu.memory_space<vmem>>, vector<8x128xf32>,
    } else {
    }
    return
  }
  func.func @transform_0(%arg0: i32, %arg1: i32) -> (i32, i32) {
    %c0_i32 = arith.constant 0 : i32
    return %arg0, %arg1 : i32, i32
  }
  func.func @transform_1(%arg0: i32, %arg1: i32) -> (i32, i32) {
    %c0_i32 = arith.constant 0 : i32
    %c0_i32_0 = arith.constant 0 : i32
    return %arg1, %c0_i32 : i32, i32
  }
  func.func @transform_2(%arg0: i32, %arg1: i32) -> (i32, i32) {
    %c0_i32 = arith.constant 0 : i32
    %c0_i32_0 = arith.constant 0 : i32
    return %arg0, %c0_i32 : i32, i32
  }
  func.func @transform_3(%arg0: i32, %arg1: i32) -> (i32, i32) {
    %c0_i32 = arith.constant 0 : i32
    %c0_i32_0 = arith.constant 0 : i32
    return %arg0, %c0_i32 : i32, i32
  }
  func.func @transform_4(%arg0: i32, %arg1: i32) -> (i32, i32) {
    %c0_i32 = arith.constant 0 : i32
    %c0_i32_0 = arith.constant 0 : i32
    return %arg0, %c0_i32 : i32, i32
  }
}

module attributes {stable_mosaic.version = 11 : i64} {
  func.func @_matmul_stats_kernel(%arg0: i32, %arg1: i32, %arg2: memref<512x4xbf16, #tpu.memory_space<vmem>>, %arg3: memref<4x128xbf16, #tpu.memory_space<vmem>>, %arg4: memref<512x128xf32, #tpu.memory_space<vmem>>, %arg5: memref<8x128xf32, #tpu.memory_space<vmem>>, %arg6: memref<8x128xf32, #tpu.memory_space<vmem>>, %arg7: memref<512x128xf32, #tpu.memory_space<vmem>>) attributes {dimension_semantics = [#tpu.dimension_semantics<parallel>, #tpu.dimension_semantics<arbitrary>], iteration_bounds = array<i64: 1, 1>, scalar_prefetch = 0 : i64, scratch_operands = 1 : i64, tpu.core_type = #tpu.core_type<tc>, window_params = [{transform_indices = @transform_0, window_bounds = array<i64: 512, 4>}, {transform_indices = @transform_1, window_bounds = array<i64: 4, 128>}, {transform_indices = @transform_2, window_bounds = array<i64: 512, 128>}, {transform_indices = @transform_3, window_bounds = array<i64: 8, 128>}, {transform_indices = @transform_4, window_bounds = array<i64: 8, 128>}]} {
    %c0_i32 = arith.constant 0 : i32
    %0 = arith.cmpi eq, %arg1, %c0_i32 : i32
    %1 = arith.extui %0 : i1 to i32
    %c0_i32_0 = arith.constant 0 : i32
    %2 = arith.cmpi ne, %1, %c0_i32_0 : i32
    scf.if %2 {
      %cst_10 = arith.constant 0.000000e+00 : f32
      %12 = vector.broadcast %cst_10 : f32 to vector<512x128xf32>
      %c0_11 = arith.constant 0 : index
      %c0_12 = arith.constant 0 : index
      %13 = vector.load %arg7[%c0_11, %c0_12] : memref<512x128xf32, #tpu.memory_space<vmem>>, vector<512x128xf32>
      tpu.vector_store %arg7[%c0_11, %c0_12], %12 {strides = array<i32>} : memref<512x128xf32, #tpu.memory_space<vmem>>, vector<512x128xf32>,
    } else {
    }
    %c0 = arith.constant 0 : index
    %c0_1 = arith.constant 0 : index
    %3 = vector.load %arg7[%c0, %c0_1] : memref<512x128xf32, #tpu.memory_space<vmem>>, vector<512x128xf32>
    %c0_2 = arith.constant 0 : index
    %c0_3 = arith.constant 0 : index
    %4 = vector.load %arg2[%c0_2, %c0_3] : memref<512x4xbf16, #tpu.memory_space<vmem>>, vector<512x4xbf16>
    %c0_4 = arith.constant 0 : index
    %c0_5 = arith.constant 0 : index
    %5 = vector.load %arg3[%c0_4, %c0_5] : memref<4x128xbf16, #tpu.memory_space<vmem>>, vector<4x128xbf16>
    %cst = arith.constant dense<0.000000e+00> : vector<512x128xf32>
    %6 = tpu.matmul %4, %5, %cst {dimension_numbers = #tpu.dot_dimension_numbers<[1], [0], [0], [1], [0, 0, 1, 1], [], []>} : vector<512x4xbf16>, vector<4x128xbf16>, vector<512x128xf32> -> vector<512x128xf32>
    %7 = arith.addf %3, %6 : vector<512x128xf32>
    %c0_6 = arith.constant 0 : index
    %c0_7 = arith.constant 0 : index
    %8 = vector.load %arg7[%c0_6, %c0_7] : memref<512x128xf32, #tpu.memory_space<vmem>>, vector<512x128xf32>
    tpu.vector_store %arg7[%c0_6, %c0_7], %7 {strides = array<i32>} : memref<512x128xf32, #tpu.memory_space<vmem>>, vector<512x128xf32>,
    %c0_i32_8 = arith.constant 0 : i32
    %9 = arith.cmpi eq, %arg1, %c0_i32_8 : i32
    %10 = arith.extui %9 : i1 to i32
    %c0_i32_9 = arith.constant 0 : i32
    %11 = arith.cmpi ne, %10, %c0_i32_9 : i32
    scf.if %11 {
      %c0_10 = arith.constant 0 : index
      %c0_11 = arith.constant 0 : index
      %12 = vector.load %arg7[%c0_10, %c0_11] : memref<512x128xf32, #tpu.memory_space<vmem>>, vector<512x128xf32>
      %c0_12 = arith.constant 0 : index
      %c0_13 = arith.constant 0 : index
      %13 = vector.load %arg4[%c0_12, %c0_13] : memref<512x128xf32, #tpu.memory_space<vmem>>, vector<512x128xf32>
      tpu.vector_store %arg4[%c0_12, %c0_13], %12 {strides = array<i32>} : memref<512x128xf32, #tpu.memory_space<vmem>>, vector<512x128xf32>,
      %cst_14 = arith.constant dense<0.000000e+00> : vector<128xf32>
      %14 = vector.multi_reduction <add>, %12, %cst_14 [0] : vector<512x128xf32> to vector<128xf32>
      %15 = vector.shape_cast %14 : vector<128xf32> to vector<1x128xf32>
      %16 = arith.mulf %12, %12 : vector<512x128xf32>
      %cst_15 = arith.constant dense<0.000000e+00> : vector<128xf32>
      %17 = vector.multi_reduction <add>, %16, %cst_15 [0] : vector<512x128xf32> to vector<128xf32>
      %18 = vector.shape_cast %17 : vector<128xf32> to vector<1x128xf32>
      %19 = vector.shape_cast %15 : vector<1x128xf32> to vector<1x128xf32>
      %20 = vector.broadcast %19 : vector<1x128xf32> to vector<8x128xf32>
      %c0_16 = arith.constant 0 : index
      %c0_17 = arith.constant 0 : index
      %21 = vector.load %arg5[%c0_16, %c0_17] : memref<8x128xf32, #tpu.memory_space<vmem>>, vector<8x128xf32>
      tpu.vector_store %arg5[%c0_16, %c0_17], %20 {strides = array<i32>} : memref<8x128xf32, #tpu.memory_space<vmem>>, vector<8x128xf32>,
      %22 = vector.shape_cast %18 : vector<1x128xf32> to vector<1x128xf32>
      %23 = vector.broadcast %22 : vector<1x128xf32> to vector<8x128xf32>
      %c0_18 = arith.constant 0 : index
      %c0_19 = arith.constant 0 : index
      %24 = vector.load %arg6[%c0_18, %c0_19] : memref<8x128xf32, #tpu.memory_space<vmem>>, vector<8x128xf32>
      tpu.vector_store %arg6[%c0_18, %c0_19], %23 {strides = array<i32>} : memref<8x128xf32, #tpu.memory_space<vmem>>, vector<8x128xf32>,
    } else {
    }
    return
  }
  func.func @transform_0(%arg0: i32, %arg1: i32) -> (i32, i32) {
    %c0_i32 = arith.constant 0 : i32
    return %arg0, %arg1 : i32, i32
  }
  func.func @transform_1(%arg0: i32, %arg1: i32) -> (i32, i32) {
    %c0_i32 = arith.constant 0 : i32
    %c0_i32_0 = arith.constant 0 : i32
    return %arg1, %c0_i32 : i32, i32
  }
  func.func @transform_2(%arg0: i32, %arg1: i32) -> (i32, i32) {
    %c0_i32 = arith.constant 0 : i32
    %c0_i32_0 = arith.constant 0 : i32
    return %arg0, %c0_i32 : i32, i32
  }
  func.func @transform_3(%arg0: i32, %arg1: i32) -> (i32, i32) {
    %c0_i32 = arith.constant 0 : i32
    %c0_i32_0 = arith.constant 0 : i32
    return %arg0, %c0_i32 : i32, i32
  }
  func.func @transform_4(%arg0: i32, %arg1: i32) -> (i32, i32) {
    %c0_i32 = arith.constant 0 : i32
    %c0_i32_0 = arith.constant 0 : i32
    return %arg0, %c0_i32 : i32, i32
  }
}

module attributes {stable_mosaic.version = 11 : i64} {
  func.func @_fused_concat_conv_kernel(%arg0: i32, %arg1: memref<512x128xf32, #tpu.memory_space<vmem>>, %arg2: memref<512x128xf32, #tpu.memory_space<vmem>>, %arg3: memref<512x128xf32, #tpu.memory_space<vmem>>, %arg4: memref<512x128xf32, #tpu.memory_space<vmem>>, %arg5: memref<8x128xf32, #tpu.memory_space<vmem>>, %arg6: memref<512x128xbf16, #tpu.memory_space<vmem>>, %arg7: memref<512x128xf32, #tpu.memory_space<vmem>>, %arg8: memref<8x128xf32, #tpu.memory_space<vmem>>, %arg9: memref<8x128xf32, #tpu.memory_space<vmem>>) attributes {dimension_semantics = [#tpu.dimension_semantics<parallel>], iteration_bounds = array<i64: 1>, scalar_prefetch = 0 : i64, scratch_operands = 0 : i64, tpu.core_type = #tpu.core_type<tc>, window_params = [{transform_indices = @transform_0, window_bounds = array<i64: 512, 128>}, {transform_indices = @transform_1, window_bounds = array<i64: 512, 128>}, {transform_indices = @transform_2, window_bounds = array<i64: 512, 128>}, {transform_indices = @transform_3, window_bounds = array<i64: 512, 128>}, {pipeline_mode = #tpu.pipeline_mode<synchronous>, transform_indices = @transform_4, window_bounds = array<i64: 8, 128>}, {pipeline_mode = #tpu.pipeline_mode<synchronous>, transform_indices = @transform_5, window_bounds = array<i64: 512, 128>}, {transform_indices = @transform_6, window_bounds = array<i64: 512, 128>}, {transform_indices = @transform_7, window_bounds = array<i64: 8, 128>}, {transform_indices = @transform_8, window_bounds = array<i64: 8, 128>}]} {
    %0 = tpu.iota {dimensions = array<i32: 0>} : vector<512x1xi32>
    %c512_i32 = arith.constant 512 : i32
    %1 = arith.muli %arg0, %c512_i32 : i32
    %2 = vector.broadcast %1 : i32 to vector<512x1xi32>
    %3 = arith.addi %0, %2 : vector<512x1xi32>
    %c512_i32_0 = arith.constant 512 : i32
    %4 = vector.broadcast %c512_i32_0 : i32 to vector<512x1xi32>
    %5 = arith.cmpi slt, %3, %4 : vector<512x1xi32>
    %c0 = arith.constant 0 : index
    %c0_1 = arith.constant 0 : index
    %6 = vector.load %arg1[%c0, %c0_1] : memref<512x128xf32, #tpu.memory_space<vmem>>, vector<512x128xf32>
    %c0_2 = arith.constant 0 : index
    %c0_3 = arith.constant 0 : index
    %7 = vector.load %arg5[%c0_2, %c0_3] : memref<8x128xf32, #tpu.memory_space<vmem>>, vector<1x128xf32>
    %8 = vector.broadcast %7 : vector<1x128xf32> to vector<512x128xf32>
    %9 = arith.mulf %6, %8 : vector<512x128xf32>
    %c4 = arith.constant 4 : index
    %c0_4 = arith.constant 0 : index
    %10 = vector.load %arg5[%c4, %c0_4] : memref<8x128xf32, #tpu.memory_space<vmem>>, vector<1x128xf32>
    %11 = vector.broadcast %10 : vector<1x128xf32> to vector<512x128xf32>
    %12 = arith.addf %9, %11 : vector<512x128xf32>
    %cst = arith.constant 0.000000e+00 : f32
    %13 = vector.broadcast %cst : f32 to vector<512x128xf32>
    %14 = arith.maximumf %12, %13 : vector<512x128xf32>
    %cst_5 = arith.constant 0.000000e+00 : f32
    %15 = vector.shape_cast %5 : vector<512x1xi1> to vector<512x1xi1>
    %16 = vector.broadcast %15 : vector<512x1xi1> to vector<512x128xi1>
    %17 = vector.broadcast %cst_5 : f32 to vector<512x128xf32>
    %18 = arith.select %16, %14, %17 : vector<512x128xi1>, vector<512x128xf32>
    %19 = arith.truncf %18 : vector<512x128xf32> to vector<512x128xbf16>
    %c0_6 = arith.constant 0 : index
    %c0_7 = arith.constant 0 : index
    %20 = vector.load %arg6[%c0_6, %c0_7] : memref<512x128xbf16, #tpu.memory_space<vmem>>, vector<128x128xbf16>
    %cst_8 = arith.constant dense<0.000000e+00> : vector<512x128xf32>
    %21 = tpu.matmul %19, %20, %cst_8 {dimension_numbers = #tpu.dot_dimension_numbers<[1], [0], [0], [1], [0, 0, 1, 1], [], []>} : vector<512x128xbf16>, vector<128x128xbf16>, vector<512x128xf32> -> vector<512x128xf32>
    %c0_9 = arith.constant 0 : index
    %c0_10 = arith.constant 0 : index
    %22 = vector.load %arg2[%c0_9, %c0_10] : memref<512x128xf32, #tpu.memory_space<vmem>>, vector<512x128xf32>
    %c1 = arith.constant 1 : index
    %c0_11 = arith.constant 0 : index
    %23 = vector.load %arg5[%c1, %c0_11] : memref<8x128xf32, #tpu.memory_space<vmem>>, vector<1x128xf32>
    %24 = vector.broadcast %23 : vector<1x128xf32> to vector<512x128xf32>
    %25 = arith.mulf %22, %24 : vector<512x128xf32>
    %c5 = arith.constant 5 : index
    %c0_12 = arith.constant 0 : index
    %26 = vector.load %arg5[%c5, %c0_12] : memref<8x128xf32, #tpu.memory_space<vmem>>, vector<1x128xf32>
    %27 = vector.broadcast %26 : vector<1x128xf32> to vector<512x128xf32>
    %28 = arith.addf %25, %27 : vector<512x128xf32>
    %cst_13 = arith.constant 0.000000e+00 : f32
    %29 = vector.broadcast %cst_13 : f32 to vector<512x128xf32>
    %30 = arith.maximumf %28, %29 : vector<512x128xf32>
    %cst_14 = arith.constant 0.000000e+00 : f32
    %31 = vector.shape_cast %5 : vector<512x1xi1> to vector<512x1xi1>
    %32 = vector.broadcast %31 : vector<512x1xi1> to vector<512x128xi1>
    %33 = vector.broadcast %cst_14 : f32 to vector<512x128xf32>
    %34 = arith.select %32, %30, %33 : vector<512x128xi1>, vector<512x128xf32>
    %35 = arith.truncf %34 : vector<512x128xf32> to vector<512x128xbf16>
    %c128 = arith.constant 128 : index
    %c0_15 = arith.constant 0 : index
    %36 = vector.load %arg6[%c128, %c0_15] : memref<512x128xbf16, #tpu.memory_space<vmem>>, vector<128x128xbf16>
    %cst_16 = arith.constant dense<0.000000e+00> : vector<512x128xf32>
    %37 = tpu.matmul %35, %36, %cst_16 {dimension_numbers = #tpu.dot_dimension_numbers<[1], [0], [0], [1], [0, 0, 1, 1], [], []>} : vector<512x128xbf16>, vector<128x128xbf16>, vector<512x128xf32> -> vector<512x128xf32>
    %38 = arith.addf %21, %37 : vector<512x128xf32>
    %c0_17 = arith.constant 0 : index
    %c0_18 = arith.constant 0 : index
    %39 = vector.load %arg3[%c0_17, %c0_18] : memref<512x128xf32, #tpu.memory_space<vmem>>, vector<512x128xf32>
    %c2 = arith.constant 2 : index
    %c0_19 = arith.constant 0 : index
    %40 = vector.load %arg5[%c2, %c0_19] : memref<8x128xf32, #tpu.memory_space<vmem>>, vector<1x128xf32>
    %41 = vector.broadcast %40 : vector<1x128xf32> to vector<512x128xf32>
    %42 = arith.mulf %39, %41 : vector<512x128xf32>
    %c6 = arith.constant 6 : index
    %c0_20 = arith.constant 0 : index
    %43 = vector.load %arg5[%c6, %c0_20] : memref<8x128xf32, #tpu.memory_space<vmem>>, vector<1x128xf32>
    %44 = vector.broadcast %43 : vector<1x128xf32> to vector<512x128xf32>
    %45 = arith.addf %42, %44 : vector<512x128xf32>
    %cst_21 = arith.constant 0.000000e+00 : f32
    %46 = vector.broadcast %cst_21 : f32 to vector<512x128xf32>
    %47 = arith.maximumf %45, %46 : vector<512x128xf32>
    %cst_22 = arith.constant 0.000000e+00 : f32
    %48 = vector.shape_cast %5 : vector<512x1xi1> to vector<512x1xi1>
    %49 = vector.broadcast %48 : vector<512x1xi1> to vector<512x128xi1>
    %50 = vector.broadcast %cst_22 : f32 to vector<512x128xf32>
    %51 = arith.select %49, %47, %50 : vector<512x128xi1>, vector<512x128xf32>
    %52 = arith.truncf %51 : vector<512x128xf32> to vector<512x128xbf16>
    %c256 = arith.constant 256 : index
    %c0_23 = arith.constant 0 : index
    %53 = vector.load %arg6[%c256, %c0_23] : memref<512x128xbf16, #tpu.memory_space<vmem>>, vector<128x128xbf16>
    %cst_24 = arith.constant dense<0.000000e+00> : vector<512x128xf32>
    %54 = tpu.matmul %52, %53, %cst_24 {dimension_numbers = #tpu.dot_dimension_numbers<[1], [0], [0], [1], [0, 0, 1, 1], [], []>} : vector<512x128xbf16>, vector<128x128xbf16>, vector<512x128xf32> -> vector<512x128xf32>
    %55 = arith.addf %38, %54 : vector<512x128xf32>
    %c0_25 = arith.constant 0 : index
    %c0_26 = arith.constant 0 : index
    %56 = vector.load %arg4[%c0_25, %c0_26] : memref<512x128xf32, #tpu.memory_space<vmem>>, vector<512x128xf32>
    %c3 = arith.constant 3 : index
    %c0_27 = arith.constant 0 : index
    %57 = vector.load %arg5[%c3, %c0_27] : memref<8x128xf32, #tpu.memory_space<vmem>>, vector<1x128xf32>
    %58 = vector.broadcast %57 : vector<1x128xf32> to vector<512x128xf32>
    %59 = arith.mulf %56, %58 : vector<512x128xf32>
    %c7 = arith.constant 7 : index
    %c0_28 = arith.constant 0 : index
    %60 = vector.load %arg5[%c7, %c0_28] : memref<8x128xf32, #tpu.memory_space<vmem>>, vector<1x128xf32>
    %61 = vector.broadcast %60 : vector<1x128xf32> to vector<512x128xf32>
    %62 = arith.addf %59, %61 : vector<512x128xf32>
    %cst_29 = arith.constant 0.000000e+00 : f32
    %63 = vector.broadcast %cst_29 : f32 to vector<512x128xf32>
    %64 = arith.maximumf %62, %63 : vector<512x128xf32>
    %cst_30 = arith.constant 0.000000e+00 : f32
    %65 = vector.shape_cast %5 : vector<512x1xi1> to vector<512x1xi1>
    %66 = vector.broadcast %65 : vector<512x1xi1> to vector<512x128xi1>
    %67 = vector.broadcast %cst_30 : f32 to vector<512x128xf32>
    %68 = arith.select %66, %64, %67 : vector<512x128xi1>, vector<512x128xf32>
    %69 = arith.truncf %68 : vector<512x128xf32> to vector<512x128xbf16>
    %c384 = arith.constant 384 : index
    %c0_31 = arith.constant 0 : index
    %70 = vector.load %arg6[%c384, %c0_31] : memref<512x128xbf16, #tpu.memory_space<vmem>>, vector<128x128xbf16>
    %cst_32 = arith.constant dense<0.000000e+00> : vector<512x128xf32>
    %71 = tpu.matmul %69, %70, %cst_32 {dimension_numbers = #tpu.dot_dimension_numbers<[1], [0], [0], [1], [0, 0, 1, 1], [], []>} : vector<512x128xbf16>, vector<128x128xbf16>, vector<512x128xf32> -> vector<512x128xf32>
    %72 = arith.addf %55, %71 : vector<512x128xf32>
    %c0_33 = arith.constant 0 : index
    %c0_34 = arith.constant 0 : index
    %73 = vector.load %arg7[%c0_33, %c0_34] : memref<512x128xf32, #tpu.memory_space<vmem>>, vector<512x128xf32>
    tpu.vector_store %arg7[%c0_33, %c0_34], %72 {strides = array<i32>} : memref<512x128xf32, #tpu.memory_space<vmem>>, vector<512x128xf32>,
    %cst_35 = arith.constant dense<0.000000e+00> : vector<128xf32>
    %74 = vector.multi_reduction <add>, %72, %cst_35 [0] : vector<512x128xf32> to vector<128xf32>
    %75 = vector.shape_cast %74 : vector<128xf32> to vector<1x128xf32>
    %76 = vector.shape_cast %75 : vector<1x128xf32> to vector<1x128xf32>
    %77 = vector.broadcast %76 : vector<1x128xf32> to vector<8x128xf32>
    %c0_36 = arith.constant 0 : index
    %c0_37 = arith.constant 0 : index
    %78 = vector.load %arg8[%c0_36, %c0_37] : memref<8x128xf32, #tpu.memory_space<vmem>>, vector<8x128xf32>
    tpu.vector_store %arg8[%c0_36, %c0_37], %77 {strides = array<i32>} : memref<8x128xf32, #tpu.memory_space<vmem>>, vector<8x128xf32>,
    %79 = arith.mulf %72, %72 : vector<512x128xf32>
    %cst_38 = arith.constant dense<0.000000e+00> : vector<128xf32>
    %80 = vector.multi_reduction <add>, %79, %cst_38 [0] : vector<512x128xf32> to vector<128xf32>
    %81 = vector.shape_cast %80 : vector<128xf32> to vector<1x128xf32>
    %82 = vector.shape_cast %81 : vector<1x128xf32> to vector<1x128xf32>
    %83 = vector.broadcast %82 : vector<1x128xf32> to vector<8x128xf32>
    %c0_39 = arith.constant 0 : index
    %c0_40 = arith.constant 0 : index
    %84 = vector.load %arg9[%c0_39, %c0_40] : memref<8x128xf32, #tpu.memory_space<vmem>>, vector<8x128xf32>
    tpu.vector_store %arg9[%c0_39, %c0_40], %83 {strides = array<i32>} : memref<8x128xf32, #tpu.memory_space<vmem>>, vector<8x128xf32>,
    return
  }
  func.func @transform_0(%arg0: i32) -> (i32, i32) {
    %c0_i32 = arith.constant 0 : i32
    %c0_i32_0 = arith.constant 0 : i32
    return %arg0, %c0_i32 : i32, i32
  }
  func.func @transform_1(%arg0: i32) -> (i32, i32) {
    %c0_i32 = arith.constant 0 : i32
    %c0_i32_0 = arith.constant 0 : i32
    return %arg0, %c0_i32 : i32, i32
  }
  func.func @transform_2(%arg0: i32) -> (i32, i32) {
    %c0_i32 = arith.constant 0 : i32
    %c0_i32_0 = arith.constant 0 : i32
    return %arg0, %c0_i32 : i32, i32
  }
  func.func @transform_3(%arg0: i32) -> (i32, i32) {
    %c0_i32 = arith.constant 0 : i32
    %c0_i32_0 = arith.constant 0 : i32
    return %arg0, %c0_i32 : i32, i32
  }
  func.func @transform_4(%arg0: i32) -> (i32, i32) {
    %c0_i32 = arith.constant 0 : i32
    %c0_i32_0 = arith.constant 0 : i32
    %c0_i32_1 = arith.constant 0 : i32
    return %c0_i32, %c0_i32_0 : i32, i32
  }
  func.func @transform_5(%arg0: i32) -> (i32, i32) {
    %c0_i32 = arith.constant 0 : i32
    %c0_i32_0 = arith.constant 0 : i32
    %c0_i32_1 = arith.constant 0 : i32
    return %c0_i32, %c0_i32_0 : i32, i32
  }
  func.func @transform_6(%arg0: i32) -> (i32, i32) {
    %c0_i32 = arith.constant 0 : i32
    %c0_i32_0 = arith.constant 0 : i32
    return %arg0, %c0_i32 : i32, i32
  }
  func.func @transform_7(%arg0: i32) -> (i32, i32) {
    %c0_i32 = arith.constant 0 : i32
    %c0_i32_0 = arith.constant 0 : i32
    return %arg0, %c0_i32 : i32, i32
  }
  func.func @transform_8(%arg0: i32) -> (i32, i32) {
    %c0_i32 = arith.constant 0 : i32
    %c0_i32_0 = arith.constant 0 : i32
    return %arg0, %c0_i32 : i32, i32
  }
}

module attributes {stable_mosaic.version = 11 : i64} {
  func.func @_scale_bias_relu_kernel(%arg0: i32, %arg1: memref<512x128xf32, #tpu.memory_space<vmem>>, %arg2: memref<8x128xf32, #tpu.memory_space<vmem>>, %arg3: memref<512x128xf32, #tpu.memory_space<vmem>>) attributes {dimension_semantics = [#tpu.dimension_semantics<parallel>], iteration_bounds = array<i64: 1>, scalar_prefetch = 0 : i64, scratch_operands = 0 : i64, tpu.core_type = #tpu.core_type<tc>, window_params = [{transform_indices = @transform_0, window_bounds = array<i64: 512, 128>}, {pipeline_mode = #tpu.pipeline_mode<synchronous>, transform_indices = @transform_1, window_bounds = array<i64: 8, 128>}, {transform_indices = @transform_2, window_bounds = array<i64: 512, 128>}]} {
    %c0 = arith.constant 0 : index
    %c0_0 = arith.constant 0 : index
    %0 = vector.load %arg1[%c0, %c0_0] : memref<512x128xf32, #tpu.memory_space<vmem>>, vector<512x128xf32>
    %c0_1 = arith.constant 0 : index
    %c0_2 = arith.constant 0 : index
    %1 = vector.load %arg2[%c0_1, %c0_2] : memref<8x128xf32, #tpu.memory_space<vmem>>, vector<1x128xf32>
    %2 = vector.broadcast %1 : vector<1x128xf32> to vector<512x128xf32>
    %3 = arith.mulf %0, %2 : vector<512x128xf32>
    %c1 = arith.constant 1 : index
    %c0_3 = arith.constant 0 : index
    %4 = vector.load %arg2[%c1, %c0_3] : memref<8x128xf32, #tpu.memory_space<vmem>>, vector<1x128xf32>
    %5 = vector.broadcast %4 : vector<1x128xf32> to vector<512x128xf32>
    %6 = arith.addf %3, %5 : vector<512x128xf32>
    %cst = arith.constant 0.000000e+00 : f32
    %7 = vector.broadcast %cst : f32 to vector<512x128xf32>
    %8 = arith.maximumf %6, %7 : vector<512x128xf32>
    %c0_4 = arith.constant 0 : index
    %c0_5 = arith.constant 0 : index
    %9 = vector.load %arg3[%c0_4, %c0_5] : memref<512x128xf32, #tpu.memory_space<vmem>>, vector<512x128xf32>
    tpu.vector_store %arg3[%c0_4, %c0_5], %8 {strides = array<i32>} : memref<512x128xf32, #tpu.memory_space<vmem>>, vector<512x128xf32>,
    return
  }
  func.func @transform_0(%arg0: i32) -> (i32, i32) {
    %c0_i32 = arith.constant 0 : i32
    %c0_i32_0 = arith.constant 0 : i32
    return %arg0, %c0_i32 : i32, i32
  }
  func.func @transform_1(%arg0: i32) -> (i32, i32) {
    %c0_i32 = arith.constant 0 : i32
    %c0_i32_0 = arith.constant 0 : i32
    %c0_i32_1 = arith.constant 0 : i32
    return %c0_i32, %c0_i32_0 : i32, i32
  }
  func.func @transform_2(%arg0: i32) -> (i32, i32) {
    %c0_i32 = arith.constant 0 : i32
    %c0_i32_0 = arith.constant 0 : i32
    return %arg0, %c0_i32 : i32, i32
  }
}

</mosaic_0001>

<bundles_post_ra>
// kernel: aspp_forward.8
= control target key start
LH: loop header
LB: loop body
LE: loop exit
PB: predicated region body
PF: predicated region fallthrough
CT: control target
= control target key end

     0   :  { %10 = vsyncpa [#allocation4], 0  ;;  %s1979_s0 = inlined_call_operand.hbm [shape: bf16[512,36], index: 0, kind: input, shape index: {}]   ;;  %s1980_s1 = inlined_call_operand.hbm [shape: bf16[36,128], index: 1, kind: input, shape index: {}]   ;;  %s1981_s2 = inlined_call_operand.hbm [shape: f32[512,128], index: 2, kind: output, shape index: {0}]   ;;  %s1982_s3 = inlined_call_operand.hbm [shape: f32[8,128], index: 3, kind: output, shape index: {1}]   ;;  %s1983_s4 = inlined_call_operand.hbm [shape: f32[8,128], index: 4, kind: output, shape index: {2}]  }
   0x1   :  { %11 = vsyncpa [#allocation7], 0 }
   0x2   :  { %12 = vsyncpa [#allocation5], 0 }
   0x3   :  { %13 = vsyncpa [#allocation10], 0  ;;  %s1661_s15 = smov [#allocation3]   ;;  %s1543_s19 = scalar_lea.hbm %s1979_s0, 4096 }
   0x4   :  { %s19_s16 = sshll.u32 %s1661_s15, 4  ;;  %p1544_p0 = scmp.ne.s32.totalorder %s1979_s0, %s1543_s19  ;;  %s20_s16 = int_to_ptr.vmem [resolvable:$true] %s19_s16 }
   0x5   :  { %p1547_p1 = scmp.lt.u32.totalorder %s1543_s19, %s1979_s0 }
   0x7   :  { %p1549_p2 = pnand %p1547_p1, %p1544_p0 }
   0x9   :  { %1552 = shalt.err (!%p1549_p2)
}
   0xa   :  { %s1553_s24 = scalar_lea.vmem %s20_s16, 4096  ;;  %p1558_p4 = scmp.lt.s32.totalorder %s20_s16, %s20_s16 }
   0xb   :  { %p1554_p3 = scmp.ne.s32.totalorder %s20_s16, %s1553_s24  ;;  %p1559_p5 = scmp.lt.s32.totalorder %s1553_s24, %s1553_s24 }
   0xd   :  { %p1560_p6 = por %p1559_p5, %p1558_p4 }
   0xf   :  { %p1561_p7 = pnand %p1560_p6, %p1554_p3 }
  0x11   :  { %1564 = shalt.err (!%p1561_p7)
}
  0x12   :  { %s1662_s25 = smov 64   ;;  %s1663_s26 = smov 4  }
  0x13   :  { %25 = dma.hbm_to_vmem [thread:$0]  %s1979_s0, 4096, %s20_s16, [#allocation4], %s1662_s25, %s1662_s25, %s1663_s26  }
  0x14   :  { %s1664_s29 = smov [#allocation6]   ;;  %s1565_s7 = scalar_lea.hbm %s1980_s1, 320 }
  0x15   :  { %s31_s30 = sshll.u32 %s1664_s29, 4  ;;  %p1566_p8 = scmp.ne.s32.totalorder %s1980_s1, %s1565_s7  ;;  %s32_s30 = int_to_ptr.vmem [resolvable:$true] %s31_s30 }
  0x16   :  { %p1569_p9 = scmp.lt.u32.totalorder %s1565_s7, %s1980_s1 }
  0x18   :  { %p1571_p10 = pnand %p1569_p9, %p1566_p8 }
  0x1a   :  { %1574 = shalt.err (!%p1571_p10)
}
  0x1b   :  { %s1575_s12 = scalar_lea.vmem %s32_s30, 320  ;;  %p1580_p12 = scmp.lt.s32.totalorder %s32_s30, %s32_s30 }
  0x1c   :  { %p1576_p11 = scmp.ne.s32.totalorder %s32_s30, %s1575_s12  ;;  %p1581_p13 = scmp.lt.s32.totalorder %s1575_s12, %s1575_s12 }
  0x1e   :  { %p1582_p0 = por %p1581_p13, %p1580_p12 }
  0x20   :  { %p1583_p1 = pnand %p1582_p0, %p1576_p11 }
  0x22   :  { %1586 = shalt.err (!%p1583_p1)
}
  0x23   :  { %37 = dma.hbm_to_vmem [thread:$0]  %s1980_s1, 320, %s32_s30, [#allocation7], %s1662_s25, %s1662_s25, %s1663_s26  }
  0x24   :  { %1653 = dma.done.wait [#allocation4], 4096  }
  0x25   :  { %1654 = vsyncadd [#allocation4], 4294963200 }
  0x26   :  { %1655 = dma.done.wait [#allocation7], 320  }
  0x27   :  { %1656 = vsyncadd [#allocation7], 4294966976  ;;  %v1508_v0 = vld [vmem:[#allocation6] sm:$0xff]   ;;  %v1509_v1 = vld [vmem:[#allocation6 + $0x8] sm:$0xff]   ;;  %vm421_vm0 = vcmask 293888   ;;  %vm518_vm1 = vcmask 1041408  }
  0x28   :  { %1421 = vmatprep.subr.bf16.mxu0 %v1508_v0  ;;  %v1510_v2 = vld [vmem:[#allocation6 + $0x10] ss:$0 sps:$4 sm:$0x33]   ;;  %v1511_v3 = vld [vmem:[#allocation3] sm:$0xff]   ;;  %1491 = vmatprep.subr.bf16.mxu1 %v1508_v0  ;;  %v1512_v5 = vld [vmem:[#allocation3 + $0x8] sm:$0xff]   ;;  %s1665_s1 = smov [#allocation8]  }
  0x29   :  { %1422 = vmatpush3.bf16.msra.mxu0 %v1508_v0  ;;  %1494 = vmatpush3.bf16.msra.mxu1 %v1508_v0  ;;  %v520_v4 = vsel %vm518_vm1, %v1510_v2, 0  ;;  %v1513_v6 = vld [vmem:[#allocation3 + $0x10] sm:$0xff]   ;;  %v1514_v7 = vld [vmem:[#allocation3 + $0x18] sm:$0xff]   ;;  %v1515_v8 = vld [vmem:[#allocation3 + $0x20] sm:$0xff]   ;;  %s1279_s14 = sshll.u32 %s1665_s1, 4  ;;  %s1280_s14 = int_to_ptr.vmem [resolvable:$true] %s1279_s14 }
  0x2a   :  { %1423 = vmatprep.subr.bf16.mxu0 %v1509_v1  ;;  %1427 = vmatprep.mubr.msk.bf16.mxu0 %vm421_vm0, %v1511_v3  ;;  %v1527_v9 = vld [vmem:[#allocation3 + $0x80] sm:$0xff]   ;;  %v1528_v10 = vld [vmem:[#allocation3 + $0x88] sm:$0xff]   ;;  %v1529_v11 = vld [vmem:[#allocation3 + $0x90] sm:$0xff]   ;;  %s1587_s15 = scalar_lea.vmem %s1280_s14, 8192  ;;  %p1592_p3 = scmp.lt.s32.totalorder %s1280_s14, %s1280_s14 }
  0x2b   :  { %1492 = vmatprep.subr.bf16.mxu1 %v1509_v1  ;;  %1459 = vmatprep.mubr.msk.bf16.mxu1 %vm421_vm0, %v1527_v9  ;;  %v1516_v12 = vld [vmem:[#allocation3 + $0x28] sm:$0xff]   ;;  %v1517_v13 = vld [vmem:[#allocation3 + $0x30] sm:$0xff]   ;;  %v1530_v14 = vld [vmem:[#allocation3 + $0x98] sm:$0xff]   ;;  %p1588_p2 = scmp.ne.s32.totalorder %s1280_s14, %s1587_s15  ;;  %p1593_p4 = scmp.lt.s32.totalorder %s1587_s15, %s1587_s15 }
  0x2c   :  { %v1531_v15 = vld [vmem:[#allocation3 + $0xa0] sm:$0xff]   ;;  %v1518_v16 = vld [vmem:[#allocation3 + $0x38] sm:$0xff]   ;;  %v1532_v17 = vld [vmem:[#allocation3 + $0xa8] sm:$0xff]  }
  0x2d   :  { %1424 = vmatpush3.bf16.msra.mxu0 %v1509_v1  ;;  %1495 = vmatpush3.bf16.msra.mxu1 %v1509_v1  ;;  %v1519_v18 = vld [vmem:[#allocation3 + $0x40] sm:$0xff]   ;;  %v1533_v19 = vld [vmem:[#allocation3 + $0xb0] sm:$0xff]   ;;  %v1520_v20 = vld [vmem:[#allocation3 + $0x48] sm:$0xff]   ;;  %p1594_p5 = por %p1593_p4, %p1592_p3 }
  0x2e   :  { %1497 = vmatprep.subr.msk.bf16.mxu0 %vm518_vm1, %v1510_v2  ;;  %1498 = vmatprep.subr.msk.bf16.mxu1 %vm518_vm1, %v1510_v2  ;;  %v1534_v21 = vld [vmem:[#allocation3 + $0xb8] sm:$0xff]   ;;  %v1521_v22 = vld [vmem:[#allocation3 + $0x50] sm:$0xff]   ;;  %v1535_v23 = vld [vmem:[#allocation3 + $0xc0] sm:$0xff]  }
  0x2f   :  { %v1522_v24 = vld [vmem:[#allocation3 + $0x58] sm:$0xff]   ;;  %v1536_v25 = vld [vmem:[#allocation3 + $0xc8] sm:$0xff]   ;;  %v1523_v26 = vld [vmem:[#allocation3 + $0x60] sm:$0xff]   ;;  %p1595_p6 = pnand %p1594_p5, %p1588_p2 }
  0x30   :  { %v1537_v27 = vld [vmem:[#allocation3 + $0xd0] sm:$0xff]   ;;  %v1524_v28 = vld [vmem:[#allocation3 + $0x68] sm:$0xff]   ;;  %v1538_v29 = vld [vmem:[#allocation3 + $0xd8] sm:$0xff]  }
  0x31   :  { %1426 = vmatpush3.bf16.msra.mxu0 %v520_v4  ;;  %1496 = vmatpush3.bf16.msra.mxu1 %v520_v4  ;;  %v1525_v30 = vld [vmem:[#allocation3 + $0x70] sm:$0xff]   ;;  %v1539_v31 = vld [vmem:[#allocation3 + $0xe0] sm:$0xff]   ;;  %v1526_v32 = vld [vmem:[#allocation3 + $0x78] sm:$0xff]  }
  0x32   :  { %v1540_v33 = vld [vmem:[#allocation3 + $0xe8] sm:$0xff]   ;;  %v1541_v34 = vld [vmem:[#allocation3 + $0xf0] sm:$0xff]   ;;  %v1542_v35 = vld [vmem:[#allocation3 + $0xf8] sm:$0xff]  }
  0x34   :  { %1428 = vmatmul.mubr.msk.bf16.vlgmr.msra.gmra.mrb[0].mxu0 %vm421_vm0, %v1512_v5  ;;  %1460 = vmatmul.mubr.msk.bf16.vlgmr.msra.gmra.mrb[0].mxu1 %vm421_vm0, %v1528_v10 }
  0x35   :  { %1431 = vmatprep.mubr.msk.bf16.mxu0 %vm421_vm0, %v1513_v6  ;;  %1463 = vmatprep.mubr.msk.bf16.mxu1 %vm421_vm0, %v1529_v11 }
  0x3c   :  { %1432 = vmatmul.mubr.msk.bf16.gmra.mrb[4].mxu0 %vm421_vm0, %v1514_v7  ;;  %1464 = vmatmul.mubr.msk.bf16.gmra.mrb[4].mxu1 %vm421_vm0, %v1530_v14 }
  0x3d   :  { %1435 = vmatprep.mubr.msk.bf16.mxu0 %vm421_vm0, %v1515_v8  ;;  %1467 = vmatprep.mubr.msk.bf16.mxu1 %vm421_vm0, %v1531_v15 }
  0x44   :  { %1436 = vmatmul.mubr.msk.bf16.gmra.mrb[8].mxu0 %vm421_vm0, %v1516_v12  ;;  %1468 = vmatmul.mubr.msk.bf16.gmra.mrb[8].mxu1 %vm421_vm0, %v1532_v17 }
  0x45   :  { %1439 = vmatprep.mubr.msk.bf16.mxu0 %vm421_vm0, %v1517_v13  ;;  %1471 = vmatprep.mubr.msk.bf16.mxu1 %vm421_vm0, %v1533_v19 }
  0x4c   :  { %1440 = vmatmul.mubr.msk.bf16.gmra.mrb[12].mxu0 %vm421_vm0, %v1518_v16  ;;  %1472 = vmatmul.mubr.msk.bf16.gmra.mrb[12].mxu1 %vm421_vm0, %v1534_v21 }
  0x4d   :  { %1443 = vmatprep.mubr.msk.bf16.mxu0 %vm421_vm0, %v1519_v18  ;;  %1475 = vmatprep.mubr.msk.bf16.mxu1 %vm421_vm0, %v1535_v23 }
  0x54   :  { %1444 = vmatmul.mubr.msk.bf16.gmra.mrb[16].mxu0 %vm421_vm0, %v1520_v20  ;;  %1476 = vmatmul.mubr.msk.bf16.gmra.mrb[16].mxu1 %vm421_vm0, %v1536_v25 }
  0x55   :  { %1447 = vmatprep.mubr.msk.bf16.mxu0 %vm421_vm0, %v1521_v22  ;;  %1479 = vmatprep.mubr.msk.bf16.mxu1 %vm421_vm0, %v1537_v27 }
  0x5c   :  { %1448 = vmatmul.mubr.msk.bf16.gmra.mrb[20].mxu0 %vm421_vm0, %v1522_v24  ;;  %1480 = vmatmul.mubr.msk.bf16.gmra.mrb[20].mxu1 %vm421_vm0, %v1538_v29 }
  0x5d   :  { %1451 = vmatprep.mubr.msk.bf16.mxu0 %vm421_vm0, %v1523_v26  ;;  %1483 = vmatprep.mubr.msk.bf16.mxu1 %vm421_vm0, %v1539_v31 }
  0x64   :  { %1452 = vmatmul.mubr.msk.bf16.gmra.mrb[24].mxu0 %vm421_vm0, %v1524_v28  ;;  %1484 = vmatmul.mubr.msk.bf16.gmra.mrb[24].mxu1 %vm421_vm0, %v1540_v33 }
  0x65   :  { %1455 = vmatprep.mubr.msk.bf16.mxu0 %vm421_vm0, %v1525_v30  ;;  %1487 = vmatprep.mubr.msk.bf16.mxu1 %vm421_vm0, %v1541_v34 }
  0x6c   :  { %1456 = vmatmul.mubr.msk.bf16.gmra.mrb[28].mxu0 %vm421_vm0, %v1526_v32  ;;  %1488 = vmatmul.mubr.msk.bf16.gmra.mrb[28].mxu1 %vm421_vm0, %v1542_v35 }
 0x107   :  { %v1429_v36 = vpop.f32.mrb[0].mxu0  ;;  %v1751_v50 = vpop.f32.mrb[0].mxu1 }
 0x108   :  { %1008 = vst [vmem:[#allocation8 + $0x10] sm:$0xff] %v1429_v36  ;;  %v556_v37 = vpop.f32.mrb[1].mxu0  ;;  %v1141_v43 = vmul.f32 %v1429_v36, %v1429_v36  ;;  %1040 = vst [vmem:[#allocation8 + $0x110] sm:$0xff] %v1751_v50  ;;  %v1754_v52 = vpop.f32.mrb[1].mxu1 }
 0x109   :  { %1006 = vst [vmem:[#allocation8] sm:$0xff] %v556_v37  ;;  %v1430_v38 = vpop.f32.mrb[2].mxu0  ;;  %v1139_v40 = vmul.f32 %v556_v37, %v556_v37  ;;  %1038 = vst [vmem:[#allocation8 + $0x100] sm:$0xff] %v1754_v52  ;;  %v1757_v57 = vpop.f32.mrb[2].mxu1 }
 0x10a   :  { %1009 = vst [vmem:[#allocation8 + $0x18] sm:$0xff] %v1430_v38  ;;  %v559_v39 = vpop.f32.mrb[3].mxu0  ;;  %v1142_v46 = vmul.f32 %v1430_v38, %v1430_v38  ;;  %1041 = vst [vmem:[#allocation8 + $0x118] sm:$0xff] %v1757_v57  ;;  %v1760_v59 = vpop.f32.mrb[3].mxu1 }
 0x10b   :  { %1007 = vst [vmem:[#allocation8 + $0x8] sm:$0xff] %v559_v39  ;;  %v1070_v41 = vadd.f32 %v559_v39, %v556_v37  ;;  %v1140_v42 = vmul.f32 %v559_v39, %v559_v39  ;;  %1039 = vst [vmem:[#allocation8 + $0x108] sm:$0xff] %v1760_v59 }
 0x10d   :  { %v1071_v44 = vadd.f32 %v1429_v36, %v1070_v41  ;;  %v1203_v45 = vadd.f32 %v1140_v42, %v1139_v40 }
 0x10f   :  { %v1204_v47 = vadd.f32 %v1203_v45, %v1141_v43  ;;  %v1433_v48 = vpop.f32.mrb[4].mxu0  ;;  %v1072_v49 = vadd.f32 %v1430_v38, %v1071_v44  ;;  %v1763_v6 = vpop.f32.mrb[4].mxu1 }
 0x110   :  { %1012 = vst [vmem:[#allocation8 + $0x30] sm:$0xff] %v1433_v48  ;;  %v572_v51 = vpop.f32.mrb[5].mxu0  ;;  %v1145_v63 = vmul.f32 %v1433_v48, %v1433_v48  ;;  %1044 = vst [vmem:[#allocation8 + $0x130] sm:$0xff] %v1763_v6  ;;  %v1766_v8 = vpop.f32.mrb[5].mxu1 }
 0x111   :  { %1010 = vst [vmem:[#allocation8 + $0x20] sm:$0xff] %v572_v51  ;;  %v1073_v53 = vadd.f32 %v1072_v49, %v572_v51  ;;  %v1143_v54 = vmul.f32 %v572_v51, %v572_v51  ;;  %v1205_v55 = vadd.f32 %v1204_v47, %v1142_v46  ;;  %v1434_v56 = vpop.f32.mrb[6].mxu0  ;;  %1042 = vst [vmem:[#allocation8 + $0x120] sm:$0xff] %v1766_v8  ;;  %v1769_v13 = vpop.f32.mrb[6].mxu1 }
 0x112   :  { %1013 = vst [vmem:[#allocation8 + $0x38] sm:$0xff] %v1434_v56  ;;  %v575_v58 = vpop.f32.mrb[7].mxu0  ;;  %v1146_v2 = vmul.f32 %v1434_v56, %v1434_v56  ;;  %1045 = vst [vmem:[#allocation8 + $0x138] sm:$0xff] %v1769_v13  ;;  %v1772_v15 = vpop.f32.mrb[7].mxu1 }
 0x113   :  { %v1206_v60 = vadd.f32 %v1205_v55, %v1143_v54  ;;  %1011 = vst [vmem:[#allocation8 + $0x28] sm:$0xff] %v575_v58  ;;  %v1074_v61 = vadd.f32 %v1073_v53, %v575_v58  ;;  %v1144_v62 = vmul.f32 %v575_v58, %v575_v58  ;;  %1043 = vst [vmem:[#allocation8 + $0x128] sm:$0xff] %v1772_v15 }
 0x115   :  { %v1075_v0 = vadd.f32 %v1433_v48, %v1074_v61  ;;  %v1207_v1 = vadd.f32 %v1206_v60, %v1144_v62 }
 0x117   :  { %v1208_v3 = vadd.f32 %v1207_v1, %v1145_v63  ;;  %v1437_v4 = vpop.f32.mrb[8].mxu0  ;;  %v1076_v5 = vadd.f32 %v1434_v56, %v1075_v0  ;;  %v1775_v26 = vpop.f32.mrb[8].mxu1 }
 0x118   :  { %1016 = vst [vmem:[#allocation8 + $0x50] sm:$0xff] %v1437_v4  ;;  %v588_v7 = vpop.f32.mrb[9].mxu0  ;;  %v1149_v19 = vmul.f32 %v1437_v4, %v1437_v4  ;;  %1048 = vst [vmem:[#allocation8 + $0x150] sm:$0xff] %v1775_v26  ;;  %v1778_v28 = vpop.f32.mrb[9].mxu1 }
 0x119   :  { %1014 = vst [vmem:[#allocation8 + $0x40] sm:$0xff] %v588_v7  ;;  %v1077_v9 = vadd.f32 %v1076_v5, %v588_v7  ;;  %v1147_v10 = vmul.f32 %v588_v7, %v588_v7  ;;  %v1209_v11 = vadd.f32 %v1208_v3, %v1146_v2  ;;  %v1438_v12 = vpop.f32.mrb[10].mxu0  ;;  %1046 = vst [vmem:[#allocation8 + $0x140] sm:$0xff] %v1778_v28  ;;  %v1781_v33 = vpop.f32.mrb[10].mxu1 }
 0x11a   :  { %1017 = vst [vmem:[#allocation8 + $0x58] sm:$0xff] %v1438_v12  ;;  %v591_v14 = vpop.f32.mrb[11].mxu0  ;;  %v1150_v22 = vmul.f32 %v1438_v12, %v1438_v12  ;;  %1049 = vst [vmem:[#allocation8 + $0x158] sm:$0xff] %v1781_v33  ;;  %v1784_v35 = vpop.f32.mrb[11].mxu1 }
 0x11b   :  { %v1210_v16 = vadd.f32 %v1209_v11, %v1147_v10  ;;  %1015 = vst [vmem:[#allocation8 + $0x48] sm:$0xff] %v591_v14  ;;  %v1078_v17 = vadd.f32 %v1077_v9, %v591_v14  ;;  %v1148_v18 = vmul.f32 %v591_v14, %v591_v14  ;;  %1047 = vst [vmem:[#allocation8 + $0x148] sm:$0xff] %v1784_v35 }
 0x11d   :  { %v1079_v20 = vadd.f32 %v1437_v4, %v1078_v17  ;;  %v1211_v21 = vadd.f32 %v1210_v16, %v1148_v18 }
 0x11f   :  { %v1212_v23 = vadd.f32 %v1211_v21, %v1149_v19  ;;  %v1441_v24 = vpop.f32.mrb[12].mxu0  ;;  %v1080_v25 = vadd.f32 %v1438_v12, %v1079_v20  ;;  %v1787_v46 = vpop.f32.mrb[12].mxu1 }
 0x120   :  { %1020 = vst [vmem:[#allocation8 + $0x70] sm:$0xff] %v1441_v24  ;;  %v604_v27 = vpop.f32.mrb[13].mxu0  ;;  %v1153_v39 = vmul.f32 %v1441_v24, %v1441_v24  ;;  %1052 = vst [vmem:[#allocation8 + $0x170] sm:$0xff] %v1787_v46  ;;  %v1790_v48 = vpop.f32.mrb[13].mxu1 }
 0x121   :  { %1018 = vst [vmem:[#allocation8 + $0x60] sm:$0xff] %v604_v27  ;;  %v1081_v29 = vadd.f32 %v1080_v25, %v604_v27  ;;  %v1151_v30 = vmul.f32 %v604_v27, %v604_v27  ;;  %v1213_v31 = vadd.f32 %v1212_v23, %v1150_v22  ;;  %v1442_v32 = vpop.f32.mrb[14].mxu0  ;;  %1050 = vst [vmem:[#allocation8 + $0x160] sm:$0xff] %v1790_v48  ;;  %v1793_v55 = vpop.f32.mrb[14].mxu1 }
 0x122   :  { %1021 = vst [vmem:[#allocation8 + $0x78] sm:$0xff] %v1442_v32  ;;  %v607_v34 = vpop.f32.mrb[15].mxu0  ;;  %v1154_v42 = vmul.f32 %v1442_v32, %v1442_v32  ;;  %1053 = vst [vmem:[#allocation8 + $0x178] sm:$0xff] %v1793_v55  ;;  %v1796_v58 = vpop.f32.mrb[15].mxu1 }
 0x123   :  { %v1214_v36 = vadd.f32 %v1213_v31, %v1151_v30  ;;  %1019 = vst [vmem:[#allocation8 + $0x68] sm:$0xff] %v607_v34  ;;  %v1082_v37 = vadd.f32 %v1081_v29, %v607_v34  ;;  %v1152_v38 = vmul.f32 %v607_v34, %v607_v34  ;;  %1051 = vst [vmem:[#allocation8 + $0x168] sm:$0xff] %v1796_v58 }
 0x125   :  { %v1083_v40 = vadd.f32 %v1441_v24, %v1082_v37  ;;  %v1215_v41 = vadd.f32 %v1214_v36, %v1152_v38 }
 0x127   :  { %v1216_v43 = vadd.f32 %v1215_v41, %v1153_v39  ;;  %v1445_v44 = vpop.f32.mrb[16].mxu0  ;;  %v1084_v45 = vadd.f32 %v1442_v32, %v1083_v40  ;;  %v1799_v7 = vpop.f32.mrb[16].mxu1 }
 0x128   :  { %1024 = vst [vmem:[#allocation8 + $0x90] sm:$0xff] %v1445_v44  ;;  %v620_v47 = vpop.f32.mrb[17].mxu0  ;;  %v1157_v63 = vmul.f32 %v1445_v44, %v1445_v44  ;;  %1056 = vst [vmem:[#allocation8 + $0x190] sm:$0xff] %v1799_v7  ;;  %v1802_v10 = vpop.f32.mrb[17].mxu1 }
 0x129   :  { %1022 = vst [vmem:[#allocation8 + $0x80] sm:$0xff] %v620_v47  ;;  %v1085_v49 = vadd.f32 %v1084_v45, %v620_v47  ;;  %v1155_v51 = vmul.f32 %v620_v47, %v620_v47  ;;  %v1217_v53 = vadd.f32 %v1216_v43, %v1154_v42  ;;  %v1446_v54 = vpop.f32.mrb[18].mxu0  ;;  %1054 = vst [vmem:[#allocation8 + $0x180] sm:$0xff] %v1802_v10  ;;  %v1805_v17 = vpop.f32.mrb[18].mxu1 }
 0x12a   :  { %1025 = vst [vmem:[#allocation8 + $0x98] sm:$0xff] %v1446_v54  ;;  %v623_v56 = vpop.f32.mrb[19].mxu0  ;;  %v1158_v2 = vmul.f32 %v1446_v54, %v1446_v54  ;;  %1057 = vst [vmem:[#allocation8 + $0x198] sm:$0xff] %v1805_v17  ;;  %v1808_v19 = vpop.f32.mrb[19].mxu1 }
 0x12b   :  { %v1218_v60 = vadd.f32 %v1217_v53, %v1155_v51  ;;  %1023 = vst [vmem:[#allocation8 + $0x88] sm:$0xff] %v623_v56  ;;  %v1086_v61 = vadd.f32 %v1085_v49, %v623_v56  ;;  %v1156_v62 = vmul.f32 %v623_v56, %v623_v56  ;;  %1055 = vst [vmem:[#allocation8 + $0x188] sm:$0xff] %v1808_v19 }
 0x12d   :  { %v1087_v0 = vadd.f32 %v1445_v44, %v1086_v61  ;;  %v1219_v1 = vadd.f32 %v1218_v60, %v1156_v62 }
 0x12f   :  { %v1220_v3 = vadd.f32 %v1219_v1, %v1157_v63  ;;  %v1449_v4 = vpop.f32.mrb[20].mxu0  ;;  %v1088_v5 = vadd.f32 %v1446_v54, %v1087_v0  ;;  %v1811_v32 = vpop.f32.mrb[20].mxu1 }
 0x130   :  { %1028 = vst [vmem:[#allocation8 + $0xb0] sm:$0xff] %v1449_v4  ;;  %v636_v9 = vpop.f32.mrb[21].mxu0  ;;  %v1161_v23 = vmul.f32 %v1449_v4, %v1449_v4  ;;  %1060 = vst [vmem:[#allocation8 + $0x1b0] sm:$0xff] %v1811_v32  ;;  %v1814_v36 = vpop.f32.mrb[21].mxu1 }
 0x131   :  { %1026 = vst [vmem:[#allocation8 + $0xa0] sm:$0xff] %v636_v9  ;;  %v1089_v11 = vadd.f32 %v1088_v5, %v636_v9  ;;  %v1159_v12 = vmul.f32 %v636_v9, %v636_v9  ;;  %v1221_v14 = vadd.f32 %v1220_v3, %v1158_v2  ;;  %v1450_v16 = vpop.f32.mrb[22].mxu0  ;;  %1058 = vst [vmem:[#allocation8 + $0x1a0] sm:$0xff] %v1814_v36  ;;  %v1817_v41 = vpop.f32.mrb[22].mxu1 }
 0x132   :  { %1029 = vst [vmem:[#allocation8 + $0xb8] sm:$0xff] %v1450_v16  ;;  %v639_v18 = vpop.f32.mrb[23].mxu0  ;;  %v1162_v27 = vmul.f32 %v1450_v16, %v1450_v16  ;;  %1061 = vst [vmem:[#allocation8 + $0x1b8] sm:$0xff] %v1817_v41  ;;  %v1820_v43 = vpop.f32.mrb[23].mxu1 }
 0x133   :  { %v1222_v20 = vadd.f32 %v1221_v14, %v1159_v12  ;;  %1027 = vst [vmem:[#allocation8 + $0xa8] sm:$0xff] %v639_v18  ;;  %v1090_v21 = vadd.f32 %v1089_v11, %v639_v18  ;;  %v1160_v22 = vmul.f32 %v639_v18, %v639_v18  ;;  %1059 = vst [vmem:[#allocation8 + $0x1a8] sm:$0xff] %v1820_v43 }
 0x135   :  { %v1091_v24 = vadd.f32 %v1449_v4, %v1090_v21  ;;  %v1223_v25 = vadd.f32 %v1222_v20, %v1160_v22 }
 0x137   :  { %v1224_v29 = vadd.f32 %v1223_v25, %v1161_v23  ;;  %v1453_v30 = vpop.f32.mrb[24].mxu0  ;;  %v1092_v31 = vadd.f32 %v1450_v16, %v1091_v24  ;;  %v1823_v62 = vpop.f32.mrb[24].mxu1  ;;  %v1171_v25 = vmul.f32 %v1754_v52, %v1754_v52 }
 0x138   :  { %1032 = vst [vmem:[#allocation8 + $0xd0] sm:$0xff] %v1453_v30  ;;  %v652_v34 = vpop.f32.mrb[25].mxu0  ;;  %v1165_v49 = vmul.f32 %v1453_v30, %v1453_v30  ;;  %1064 = vst [vmem:[#allocation8 + $0x1d0] sm:$0xff] %v1823_v62  ;;  %v1826_v0 = vpop.f32.mrb[25].mxu1 }
 0x139   :  { %1030 = vst [vmem:[#allocation8 + $0xc0] sm:$0xff] %v652_v34  ;;  %v1093_v37 = vadd.f32 %v1092_v31, %v652_v34  ;;  %v1163_v38 = vmul.f32 %v652_v34, %v652_v34  ;;  %v1225_v39 = vadd.f32 %v1224_v29, %v1162_v27  ;;  %v1454_v40 = vpop.f32.mrb[26].mxu0  ;;  %1062 = vst [vmem:[#allocation8 + $0x1c0] sm:$0xff] %v1826_v0  ;;  %v1829_v5 = vpop.f32.mrb[26].mxu1 }
 0x13a   :  { %1033 = vst [vmem:[#allocation8 + $0xd8] sm:$0xff] %v1454_v40  ;;  %v655_v42 = vpop.f32.mrb[27].mxu0  ;;  %v1166_v54 = vmul.f32 %v1454_v40, %v1454_v40  ;;  %1065 = vst [vmem:[#allocation8 + $0x1d8] sm:$0xff] %v1829_v5  ;;  %v1832_v11 = vpop.f32.mrb[27].mxu1 }
 0x13b   :  { %v1226_v44 = vadd.f32 %v1225_v39, %v1163_v38  ;;  %1031 = vst [vmem:[#allocation8 + $0xc8] sm:$0xff] %v655_v42  ;;  %v1094_v45 = vadd.f32 %v1093_v37, %v655_v42  ;;  %v1164_v47 = vmul.f32 %v655_v42, %v655_v42  ;;  %1063 = vst [vmem:[#allocation8 + $0x1c8] sm:$0xff] %v1832_v11 }
 0x13d   :  { %v1095_v51 = vadd.f32 %v1453_v30, %v1094_v45  ;;  %v1227_v53 = vadd.f32 %v1226_v44, %v1164_v47 }
 0x13f   :  { %v1228_v56 = vadd.f32 %v1227_v53, %v1165_v49  ;;  %v1457_v60 = vpop.f32.mrb[28].mxu0  ;;  %v1096_v61 = vadd.f32 %v1454_v40, %v1095_v51  ;;  %v1837_v27 = vpop.f32.mrb[28].mxu1  ;;  %v1172_v40 = vmul.f32 %v1760_v59, %v1760_v59 }
 0x140   :  { %1036 = vst [vmem:[#allocation8 + $0xf0] sm:$0xff] %v1457_v60  ;;  %v668_v63 = vpop.f32.mrb[29].mxu0  ;;  %v1169_v18 = vmul.f32 %v1457_v60, %v1457_v60  ;;  %1068 = vst [vmem:[#allocation8 + $0x1f0] sm:$0xff] %v1837_v27  ;;  %v1840_v29 = vpop.f32.mrb[29].mxu1 }
 0x141   :  { %1034 = vst [vmem:[#allocation8 + $0xe0] sm:$0xff] %v668_v63  ;;  %v1097_v1 = vadd.f32 %v1096_v61, %v668_v63  ;;  %v1167_v2 = vmul.f32 %v668_v63, %v668_v63  ;;  %v1229_v3 = vadd.f32 %v1228_v56, %v1166_v54  ;;  %v1458_v4 = vpop.f32.mrb[30].mxu0  ;;  %1066 = vst [vmem:[#allocation8 + $0x1e0] sm:$0xff] %v1840_v29  ;;  %v1844_v34 = vpop.f32.mrb[30].mxu1 }
 0x142   :  { %1037 = vst [vmem:[#allocation8 + $0xf8] sm:$0xff] %v1458_v4  ;;  %v671_v9 = vpop.f32.mrb[31].mxu0  ;;  %v1170_v22 = vmul.f32 %v1458_v4, %v1458_v4  ;;  %1069 = vst [vmem:[#allocation8 + $0x1f8] sm:$0xff] %v1844_v34  ;;  %v1847_v37 = vpop.f32.mrb[31].mxu1 }
 0x143   :  { %v1230_v12 = vadd.f32 %v1229_v3, %v1167_v2  ;;  %1035 = vst [vmem:[#allocation8 + $0xe8] sm:$0xff] %v671_v9  ;;  %v1098_v14 = vadd.f32 %v1097_v1, %v671_v9  ;;  %v1168_v16 = vmul.f32 %v671_v9, %v671_v9  ;;  %1067 = vst [vmem:[#allocation8 + $0x1e8] sm:$0xff] %v1847_v37 }
 0x145   :  { %v1099_v20 = vadd.f32 %v1457_v60, %v1098_v14  ;;  %v1231_v21 = vadd.f32 %v1230_v12, %v1168_v16 }
 0x147   :  { %v1232_v23 = vadd.f32 %v1231_v21, %v1169_v18  ;;  %v1100_v24 = vadd.f32 %v1458_v4, %v1099_v20 }
 0x149   :  { %v1101_v30 = vadd.f32 %v1100_v24, %v1754_v52  ;;  %v1233_v31 = vadd.f32 %v1232_v23, %v1170_v22 }
 0x14b   :  { %v1234_v38 = vadd.f32 %v1233_v31, %v1171_v25  ;;  %v1102_v39 = vadd.f32 %v1101_v30, %v1760_v59 }
 0x14c   :  { %1598 = shalt.err (!%p1595_p6)
}
 0x14d   :  { %s1599_s18 = scalar_lea.hbm %s1981_s2, 8192 }
 0x14e   :  { %p1600_p7 = scmp.ne.s32.totalorder %s1981_s2, %s1599_s18  ;;  %p1603_p8 = scmp.lt.u32.totalorder %s1599_s18, %s1981_s2 }
 0x150   :  { %p1605_p9 = pnand %p1603_p8, %p1600_p7 }
 0x152   :  { %1608 = shalt.err (!%p1605_p9)
}
 0x153   :  { %s1666_s23 = smov 128   ;;  %s1667_s24 = smov 8   ;;  %v1173_v52 = vmul.f32 %v1751_v50, %v1751_v50  ;;  %v1103_v59 = vadd.f32 %v1751_v50, %v1102_v39  ;;  %v1235_v42 = vadd.f32 %v1234_v38, %v1172_v40  ;;  %v1174_v44 = vmul.f32 %v1757_v57, %v1757_v57 }
 0x154   :  { %1285 = dma.vmem_to_hbm [thread:$0]  %s1280_s14, 8192, %s1981_s2, [#allocation5], %s1666_s23, %s1666_s23, %s1667_s24   ;;  %v1175_v49 = vmul.f32 %v1766_v8, %v1766_v8  ;;  %v1176_v60 = vmul.f32 %v1772_v15, %v1772_v15  ;;  %v1177_v50 = vmul.f32 %v1763_v6, %v1763_v6  ;;  %v1180_v12 = vmul.f32 %v1784_v35, %v1784_v35 }
 0x155   :  { %v1236_v45 = vadd.f32 %v1235_v42, %v1173_v52  ;;  %v1104_v47 = vadd.f32 %v1757_v57, %v1103_v59  ;;  %v1178_v57 = vmul.f32 %v1769_v13, %v1769_v13  ;;  %v1184_v24 = vmul.f32 %v1796_v58, %v1796_v58  ;;  %s1668_s2 = smov [#allocation9]   ;;  %s1669_s28 = smov [#allocation11]  }
 0x156   :  { %v1188_v59 = vmul.f32 %v1808_v19, %v1808_v19  ;;  %s1292_s27 = sshll.u32 %s1668_s2, 4  ;;  %s1302_s29 = sshll.u32 %s1669_s28, 4  ;;  %s1293_s27 = int_to_ptr.vmem [resolvable:$true] %s1292_s27  ;;  %s1303_s29 = int_to_ptr.vmem [resolvable:$true] %s1302_s29 }
 0x157   :  { %v1105_v51 = vadd.f32 %v1104_v47, %v1766_v8  ;;  %v1237_v53 = vadd.f32 %v1236_v45, %v1174_v44  ;;  %v1179_v8 = vmul.f32 %v1778_v28, %v1778_v28  ;;  %s1609_s30 = scalar_lea.vmem %s1293_s27, 128  ;;  %p1614_p11 = scmp.lt.s32.totalorder %s1293_s27, %s1293_s27 }
 0x158   :  { %p1610_p10 = scmp.ne.s32.totalorder %s1293_s27, %s1609_s30  ;;  %p1615_p12 = scmp.lt.s32.totalorder %s1609_s30, %s1609_s30 }
 0x159   :  { %v1238_v54 = vadd.f32 %v1237_v53, %v1175_v49  ;;  %v1106_v56 = vadd.f32 %v1105_v51, %v1772_v15 }
 0x15a   :  { %p1616_p13 = por %p1615_p12, %p1614_p11 }
 0x15b   :  { %v1107_v61 = vadd.f32 %v1763_v6, %v1106_v56  ;;  %v1239_v63 = vadd.f32 %v1238_v54, %v1176_v60  ;;  %v1181_v6 = vmul.f32 %v1775_v26, %v1775_v26  ;;  %v1192_v54 = vmul.f32 %v1820_v43, %v1820_v43 }
 0x15c   :  { %p1617_p0 = pnand %p1616_p13, %p1610_p10 }
 0x15d   :  { %v1240_v1 = vadd.f32 %v1239_v63, %v1177_v50  ;;  %v1108_v2 = vadd.f32 %v1769_v13, %v1107_v61  ;;  %v1182_v13 = vmul.f32 %v1781_v33, %v1781_v33 }
 0x15f   :  { %v1109_v3 = vadd.f32 %v1108_v2, %v1778_v28  ;;  %v1241_v4 = vadd.f32 %v1240_v1, %v1178_v57  ;;  %v1183_v28 = vmul.f32 %v1790_v48, %v1790_v48  ;;  %v1196_v2 = vmul.f32 %v1832_v11, %v1832_v11 }
 0x161   :  { %v1242_v9 = vadd.f32 %v1241_v4, %v1179_v8  ;;  %v1110_v15 = vadd.f32 %v1109_v3, %v1784_v35 }
 0x163   :  { %v1111_v14 = vadd.f32 %v1775_v26, %v1110_v15  ;;  %v1243_v16 = vadd.f32 %v1242_v9, %v1180_v12  ;;  %v1185_v26 = vmul.f32 %v1787_v46, %v1787_v46 }
 0x165   :  { %v1244_v18 = vadd.f32 %v1243_v16, %v1181_v6  ;;  %v1112_v20 = vadd.f32 %v1781_v33, %v1111_v14  ;;  %v1186_v33 = vmul.f32 %v1793_v55, %v1793_v55  ;;  %v1200_v14 = vmul.f32 %v1847_v37, %v1847_v37 }
 0x167   :  { %v1113_v21 = vadd.f32 %v1112_v20, %v1790_v48  ;;  %v1245_v22 = vadd.f32 %v1244_v18, %v1182_v13  ;;  %v1187_v48 = vmul.f32 %v1802_v10, %v1802_v10 }
 0x169   :  { %v1246_v23 = vadd.f32 %v1245_v22, %v1183_v28  ;;  %v1114_v35 = vadd.f32 %v1113_v21, %v1796_v58 }
 0x16b   :  { %v1115_v25 = vadd.f32 %v1787_v46, %v1114_v35  ;;  %v1247_v30 = vadd.f32 %v1246_v23, %v1184_v24  ;;  %v1189_v46 = vmul.f32 %v1799_v7, %v1799_v7 }
 0x16d   :  { %v1248_v31 = vadd.f32 %v1247_v30, %v1185_v26  ;;  %v1116_v38 = vadd.f32 %v1793_v55, %v1115_v25  ;;  %v1190_v55 = vmul.f32 %v1805_v17, %v1805_v17 }
 0x16f   :  { %v1117_v39 = vadd.f32 %v1116_v38, %v1802_v10  ;;  %v1249_v40 = vadd.f32 %v1248_v31, %v1186_v33  ;;  %v1191_v10 = vmul.f32 %v1814_v36, %v1814_v36 }
 0x171   :  { %v1250_v52 = vadd.f32 %v1249_v40, %v1187_v48  ;;  %v1118_v58 = vadd.f32 %v1117_v39, %v1808_v19 }
 0x173   :  { %v1119_v42 = vadd.f32 %v1799_v7, %v1118_v58  ;;  %v1251_v44 = vadd.f32 %v1250_v52, %v1188_v59  ;;  %v1193_v7 = vmul.f32 %v1811_v32, %v1811_v32 }
 0x175   :  { %v1252_v45 = vadd.f32 %v1251_v44, %v1189_v46  ;;  %v1120_v47 = vadd.f32 %v1805_v17, %v1119_v42  ;;  %v1194_v17 = vmul.f32 %v1817_v41, %v1817_v41 }
 0x177   :  { %v1121_v49 = vadd.f32 %v1120_v47, %v1814_v36  ;;  %v1253_v51 = vadd.f32 %v1252_v45, %v1190_v55  ;;  %v1195_v36 = vmul.f32 %v1826_v0, %v1826_v0 }
 0x179   :  { %v1254_v53 = vadd.f32 %v1253_v51, %v1191_v10  ;;  %v1122_v19 = vadd.f32 %v1121_v49, %v1820_v43 }
 0x17b   :  { %v1123_v56 = vadd.f32 %v1811_v32, %v1122_v19  ;;  %v1255_v60 = vadd.f32 %v1254_v53, %v1192_v54  ;;  %v1197_v32 = vmul.f32 %v1823_v62, %v1823_v62 }
 0x17d   :  { %v1256_v50 = vadd.f32 %v1255_v60, %v1193_v7  ;;  %v1124_v61 = vadd.f32 %v1817_v41, %v1123_v56  ;;  %v1198_v41 = vmul.f32 %v1829_v5, %v1829_v5 }
 0x17f   :  { %v1125_v63 = vadd.f32 %v1124_v61, %v1826_v0  ;;  %v1257_v57 = vadd.f32 %v1256_v50, %v1194_v17  ;;  %v1199_v0 = vmul.f32 %v1840_v29, %v1840_v29 }
 0x181   :  { %v1258_v1 = vadd.f32 %v1257_v57, %v1195_v36  ;;  %v1126_v43 = vadd.f32 %v1125_v63, %v1832_v11 }
 0x183   :  { %v1127_v8 = vadd.f32 %v1823_v62, %v1126_v43  ;;  %v1259_v3 = vadd.f32 %v1258_v1, %v1196_v2  ;;  %v1201_v62 = vmul.f32 %v1837_v27, %v1837_v27 }
 0x185   :  { %v1260_v4 = vadd.f32 %v1259_v3, %v1197_v32  ;;  %v1128_v9 = vadd.f32 %v1829_v5, %v1127_v8  ;;  %v1202_v5 = vmul.f32 %v1844_v34, %v1844_v34 }
 0x187   :  { %v1129_v15 = vadd.f32 %v1128_v9, %v1840_v29  ;;  %v1261_v12 = vadd.f32 %v1260_v4, %v1198_v41 }
 0x189   :  { %v1262_v6 = vadd.f32 %v1261_v12, %v1199_v0  ;;  %v1130_v11 = vadd.f32 %v1129_v15, %v1847_v37 }
 0x18b   :  { %v1131_v16 = vadd.f32 %v1837_v27, %v1130_v11  ;;  %v1263_v13 = vadd.f32 %v1262_v6, %v1200_v14 }
 0x18d   :  { %v1132_v18 = vadd.f32 %v1844_v34, %v1131_v16  ;;  %v1264_v20 = vadd.f32 %v1263_v13, %v1201_v62 }
 0x18f   :  { %v1133_v29 = vrot.slane %v1132_v18, 4  ;;  %v1265_v28 = vadd.f32 %v1264_v20, %v1202_v5 }
 0x191   :  { %v1266_v21 = vrot.slane %v1265_v28, 4  ;;  %v1134_v22 = vadd.f32 %v1133_v29, %v1132_v18 }
 0x193   :  { %v1135_v23 = vrot.slane %v1134_v22, 2  ;;  %v1267_v35 = vadd.f32 %v1266_v21, %v1265_v28 }
 0x195   :  { %v1136_v24 = vadd.f32 %v1135_v23, %v1134_v22  ;;  %v1268_v37 = vrot.slane %v1267_v35, 2 }
 0x197   :  { %v1137_v26 = vrot.slane %v1136_v24, 1  ;;  %v1269_v25 = vadd.f32 %v1268_v37, %v1267_v35 }
 0x199   :  { %v1138_v27 = vadd.f32 %v1137_v26, %v1136_v24  ;;  %v1270_v30 = vrot.slane %v1269_v25, 1 }
 0x19b   :  { %1272 = vst [vmem:[#allocation9] sm:$0xff] %v1138_v27  ;;  %v1271_v34 = vadd.f32 %v1270_v30, %v1269_v25 }
 0x19c   :  { %1620 = shalt.err (!%p1617_p0)
}
 0x19d   :  { %s1621_s7 = scalar_lea.hbm %s1982_s3, 128 }
 0x19e   :  { %p1622_p1 = scmp.ne.s32.totalorder %s1982_s3, %s1621_s7  ;;  %p1625_p2 = scmp.lt.u32.totalorder %s1621_s7, %s1982_s3 }
 0x1a0   :  { %p1627_p3 = pnand %p1625_p2, %p1622_p1 }
 0x1a2   :  { %1630 = shalt.err (!%p1627_p3)
}
 0x1a3   :  { %1295 = dma.vmem_to_hbm [thread:$0]  %s1293_s27, 128, %s1982_s3, [#allocation10]   ;;  %1273 = vst [vmem:[#allocation11] sm:$0xff] %v1271_v34 }
 0x1a4   :  { %s1631_s13 = scalar_lea.vmem %s1303_s29, 128  ;;  %p1636_p5 = scmp.lt.s32.totalorder %s1303_s29, %s1303_s29 }
 0x1a5   :  { %p1632_p4 = scmp.ne.s32.totalorder %s1303_s29, %s1631_s13  ;;  %p1637_p6 = scmp.lt.s32.totalorder %s1631_s13, %s1631_s13 }
 0x1a7   :  { %p1638_p7 = por %p1637_p6, %p1636_p5 }
 0x1a9   :  { %p1639_p8 = pnand %p1638_p7, %p1632_p4 }
 0x1ab   :  { %1642 = shalt.err (!%p1639_p8)
}
 0x1ac   :  { %s1643_s15 = scalar_lea.hbm %s1983_s4, 128 }
 0x1ad   :  { %p1644_p9 = scmp.ne.s32.totalorder %s1983_s4, %s1643_s15  ;;  %p1647_p10 = scmp.lt.u32.totalorder %s1643_s15, %s1983_s4 }
 0x1af   :  { %p1649_p11 = pnand %p1647_p10, %p1644_p9 }
 0x1b1   :  { %1652 = shalt.err (!%p1649_p11)
}
 0x1b2   :  { %1305 = dma.vmem_to_hbm [thread:$0]  %s1303_s29, 128, %s1983_s4, [#allocation10]  }
 0x1b3   :  { %1657 = dma.done.wait [#allocation5], 8192  }
 0x1b4   :  { %1658 = vsyncadd [#allocation5], 4294959104 }
 0x1b5   :  { %1659 = dma.done.wait [#allocation10], 256  }
 0x1b6   :  { %1660 = vsyncadd [#allocation10], 4294967040 }
 0x1b7   :  { %1315 = vsyncpa [#allocation4], 1 }
 0x1b8   :  { %1316 = vsyncpa [#allocation7], 1 }
 0x1b9   :  { %1317 = vsyncpa [#allocation5], 1 }
 0x1ba   :  { %1318 = vsyncpa [#allocation10], 1 }

// kernel: aspp_forward.6
= control target key start
LH: loop header
LB: loop body
LE: loop exit
PB: predicated region body
PF: predicated region fallthrough
CT: control target
= control target key end

     0   :  { %10 = vsyncpa [#allocation4], 0  ;;  %s1942_s0 = inlined_call_operand.hbm [shape: bf16[512,4], index: 0, kind: input, shape index: {}]   ;;  %s1943_s1 = inlined_call_operand.hbm [shape: bf16[4,128], index: 1, kind: input, shape index: {}]   ;;  %s1944_s2 = inlined_call_operand.hbm [shape: f32[512,128], index: 2, kind: output, shape index: {0}]   ;;  %s1945_s3 = inlined_call_operand.hbm [shape: f32[8,128], index: 3, kind: output, shape index: {1}]   ;;  %s1946_s4 = inlined_call_operand.hbm [shape: f32[8,128], index: 4, kind: output, shape index: {2}]  }
   0x1   :  { %11 = vsyncpa [#allocation7], 0 }
   0x2   :  { %12 = vsyncpa [#allocation5], 0 }
   0x3   :  { %13 = vsyncpa [#allocation10], 0  ;;  %s1624_s15 = smov [#allocation3]   ;;  %s1506_s19 = scalar_lea.hbm %s1942_s0, 4096 }
   0x4   :  { %s19_s16 = sshll.u32 %s1624_s15, 4  ;;  %p1507_p0 = scmp.ne.s32.totalorder %s1942_s0, %s1506_s19  ;;  %s20_s16 = int_to_ptr.vmem [resolvable:$true] %s19_s16 }
   0x5   :  { %p1510_p1 = scmp.lt.u32.totalorder %s1506_s19, %s1942_s0 }
   0x7   :  { %p1512_p2 = pnand %p1510_p1, %p1507_p0 }
   0x9   :  { %1515 = shalt.err (!%p1512_p2)
}
   0xa   :  { %s1516_s24 = scalar_lea.vmem %s20_s16, 4096  ;;  %p1521_p4 = scmp.lt.s32.totalorder %s20_s16, %s20_s16 }
   0xb   :  { %p1517_p3 = scmp.ne.s32.totalorder %s20_s16, %s1516_s24  ;;  %p1522_p5 = scmp.lt.s32.totalorder %s1516_s24, %s1516_s24 }
   0xd   :  { %p1523_p6 = por %p1522_p5, %p1521_p4 }
   0xf   :  { %p1524_p7 = pnand %p1523_p6, %p1517_p3 }
  0x11   :  { %1527 = shalt.err (!%p1524_p7)
}
  0x12   :  { %s1625_s25 = smov 64   ;;  %s1626_s26 = smov 4  }
  0x13   :  { %25 = dma.hbm_to_vmem [thread:$0]  %s1942_s0, 4096, %s20_s16, [#allocation4], %s1625_s25, %s1625_s25, %s1626_s26  }
  0x14   :  { %s1627_s29 = smov [#allocation6]   ;;  %s1528_s7 = scalar_lea.hbm %s1943_s1, 32 }
  0x15   :  { %s32_s30 = sshll.u32 %s1627_s29, 4  ;;  %p1529_p8 = scmp.ne.s32.totalorder %s1943_s1, %s1528_s7  ;;  %s33_s30 = int_to_ptr.vmem [resolvable:$true] %s32_s30 }
  0x16   :  { %p1532_p9 = scmp.lt.u32.totalorder %s1528_s7, %s1943_s1 }
  0x18   :  { %p1534_p10 = pnand %p1532_p9, %p1529_p8 }
  0x1a   :  { %1537 = shalt.err (!%p1534_p10)
}
  0x1b   :  { %s1538_s12 = scalar_lea.vmem %s33_s30, 32  ;;  %p1543_p12 = scmp.lt.s32.totalorder %s33_s30, %s33_s30 }
  0x1c   :  { %p1539_p11 = scmp.ne.s32.totalorder %s33_s30, %s1538_s12  ;;  %p1544_p13 = scmp.lt.s32.totalorder %s1538_s12, %s1538_s12 }
  0x1e   :  { %p1545_p0 = por %p1544_p13, %p1543_p12 }
  0x20   :  { %p1546_p1 = pnand %p1545_p0, %p1539_p11 }
  0x22   :  { %1549 = shalt.err (!%p1546_p1)
}
  0x23   :  { %35 = dma.hbm_to_vmem [thread:$0]  %s1943_s1, 32, %s33_s30, [#allocation7]  }
  0x24   :  { %1616 = dma.done.wait [#allocation4], 4096  }
  0x25   :  { %1617 = vsyncadd [#allocation4], 4294963200 }
  0x26   :  { %1618 = dma.done.wait [#allocation7], 32  }
  0x27   :  { %1619 = vsyncadd [#allocation7], 4294967264  ;;  %vm497_vm0 = vcmask 1041408   ;;  %vm400_vm1 = vcmask 31744   ;;  %v239_v0 = vld [vmem:[#allocation6] sm:$0x3] }
  0x28   :  { %1463 = vmatprep.subr.msk.bf16.mxu0 %vm497_vm0, %v239_v0  ;;  %v499_v1 = vsel %vm497_vm0, %v239_v0, 0  ;;  %v1474_v2 = vld [vmem:[#allocation3] sm:$0xff]   ;;  %1464 = vmatprep.subr.msk.bf16.mxu1 %vm497_vm0, %v239_v0  ;;  %v1475_v3 = vld [vmem:[#allocation3 + $0x8] sm:$0xff]   ;;  %v1476_v4 = vld [vmem:[#allocation3 + $0x10] sm:$0xff]   ;;  %s1628_s1 = smov [#allocation8]  }
  0x29   :  { %1396 = vmatpush3.bf16.msra.mxu0 %v499_v1  ;;  %1462 = vmatpush3.bf16.msra.mxu1 %v499_v1  ;;  %v1477_v5 = vld [vmem:[#allocation3 + $0x18] sm:$0xff]   ;;  %v1478_v6 = vld [vmem:[#allocation3 + $0x20] sm:$0xff]   ;;  %v1479_v7 = vld [vmem:[#allocation3 + $0x28] sm:$0xff]   ;;  %s1258_s14 = sshll.u32 %s1628_s1, 4  ;;  %s1259_s14 = int_to_ptr.vmem [resolvable:$true] %s1258_s14 }
  0x2a   :  { %1397 = vmatprep.mubr.msk.bf16.mxu0 %vm400_vm1, %v1474_v2  ;;  %v1480_v8 = vld [vmem:[#allocation3 + $0x30] sm:$0xff]   ;;  %v1490_v9 = vld [vmem:[#allocation3 + $0x80] sm:$0xff]   ;;  %v1491_v10 = vld [vmem:[#allocation3 + $0x88] sm:$0xff]   ;;  %s1550_s15 = scalar_lea.vmem %s1259_s14, 8192  ;;  %p1555_p3 = scmp.lt.s32.totalorder %s1259_s14, %s1259_s14 }
  0x2b   :  { %1429 = vmatprep.mubr.msk.bf16.mxu1 %vm400_vm1, %v1490_v9  ;;  %v1492_v11 = vld [vmem:[#allocation3 + $0x90] sm:$0xff]   ;;  %v1481_v12 = vld [vmem:[#allocation3 + $0x38] sm:$0xff]   ;;  %v1494_v14 = vld [vmem:[#allocation3 + $0xa0] sm:$0xff]   ;;  %p1551_p2 = scmp.ne.s32.totalorder %s1259_s14, %s1550_s15  ;;  %p1556_p4 = scmp.lt.s32.totalorder %s1550_s15, %s1550_s15 }
  0x2c   :  { %1398 = vmatmul.mubr.msk.bf16.vlgmr.msra.gmra.mrb[0].mxu0 %vm400_vm1, %v1475_v3  ;;  %1430 = vmatmul.mubr.msk.bf16.vlgmr.msra.gmra.mrb[0].mxu1 %vm400_vm1, %v1491_v10  ;;  %v1493_v13 = vld [vmem:[#allocation3 + $0x98] sm:$0xff]   ;;  %v1482_v15 = vld [vmem:[#allocation3 + $0x40] sm:$0xff]   ;;  %v1495_v16 = vld [vmem:[#allocation3 + $0xa8] sm:$0xff]  }
  0x2d   :  { %1401 = vmatprep.mubr.msk.bf16.mxu0 %vm400_vm1, %v1476_v4  ;;  %1433 = vmatprep.mubr.msk.bf16.mxu1 %vm400_vm1, %v1492_v11  ;;  %v1483_v17 = vld [vmem:[#allocation3 + $0x48] sm:$0xff]   ;;  %v1496_v18 = vld [vmem:[#allocation3 + $0xb0] sm:$0xff]   ;;  %v1497_v20 = vld [vmem:[#allocation3 + $0xb8] sm:$0xff]   ;;  %p1557_p5 = por %p1556_p4, %p1555_p3 }
  0x2e   :  { %v1484_v19 = vld [vmem:[#allocation3 + $0x50] sm:$0xff]   ;;  %v1485_v21 = vld [vmem:[#allocation3 + $0x58] sm:$0xff]   ;;  %v1498_v22 = vld [vmem:[#allocation3 + $0xc0] sm:$0xff]  }
  0x2f   :  { %v1486_v23 = vld [vmem:[#allocation3 + $0x60] sm:$0xff]   ;;  %v1499_v24 = vld [vmem:[#allocation3 + $0xc8] sm:$0xff]   ;;  %v1500_v26 = vld [vmem:[#allocation3 + $0xd0] sm:$0xff]   ;;  %p1558_p6 = pnand %p1557_p5, %p1551_p2 }
  0x30   :  { %v1487_v25 = vld [vmem:[#allocation3 + $0x68] sm:$0xff]   ;;  %v1488_v27 = vld [vmem:[#allocation3 + $0x70] sm:$0xff]   ;;  %v1501_v28 = vld [vmem:[#allocation3 + $0xd8] sm:$0xff]  }
  0x31   :  { %v1489_v29 = vld [vmem:[#allocation3 + $0x78] sm:$0xff]   ;;  %v1502_v30 = vld [vmem:[#allocation3 + $0xe0] sm:$0xff]   ;;  %v1503_v31 = vld [vmem:[#allocation3 + $0xe8] sm:$0xff]  }
  0x32   :  { %v1504_v32 = vld [vmem:[#allocation3 + $0xf0] sm:$0xff]   ;;  %v1505_v33 = vld [vmem:[#allocation3 + $0xf8] sm:$0xff]  }
  0x34   :  { %1402 = vmatmul.mubr.msk.bf16.gmra.mrb[4].mxu0 %vm400_vm1, %v1477_v5  ;;  %1434 = vmatmul.mubr.msk.bf16.gmra.mrb[4].mxu1 %vm400_vm1, %v1493_v13 }
  0x35   :  { %1405 = vmatprep.mubr.msk.bf16.mxu0 %vm400_vm1, %v1478_v6  ;;  %1437 = vmatprep.mubr.msk.bf16.mxu1 %vm400_vm1, %v1494_v14 }
  0x3c   :  { %1406 = vmatmul.mubr.msk.bf16.gmra.mrb[8].mxu0 %vm400_vm1, %v1479_v7  ;;  %1438 = vmatmul.mubr.msk.bf16.gmra.mrb[8].mxu1 %vm400_vm1, %v1495_v16 }
  0x3d   :  { %1409 = vmatprep.mubr.msk.bf16.mxu0 %vm400_vm1, %v1480_v8  ;;  %1441 = vmatprep.mubr.msk.bf16.mxu1 %vm400_vm1, %v1496_v18 }
  0x44   :  { %1410 = vmatmul.mubr.msk.bf16.gmra.mrb[12].mxu0 %vm400_vm1, %v1481_v12  ;;  %1442 = vmatmul.mubr.msk.bf16.gmra.mrb[12].mxu1 %vm400_vm1, %v1497_v20 }
  0x45   :  { %1413 = vmatprep.mubr.msk.bf16.mxu0 %vm400_vm1, %v1482_v15  ;;  %1445 = vmatprep.mubr.msk.bf16.mxu1 %vm400_vm1, %v1498_v22 }
  0x4c   :  { %1414 = vmatmul.mubr.msk.bf16.gmra.mrb[16].mxu0 %vm400_vm1, %v1483_v17  ;;  %1446 = vmatmul.mubr.msk.bf16.gmra.mrb[16].mxu1 %vm400_vm1, %v1499_v24 }
  0x4d   :  { %1417 = vmatprep.mubr.msk.bf16.mxu0 %vm400_vm1, %v1484_v19  ;;  %1449 = vmatprep.mubr.msk.bf16.mxu1 %vm400_vm1, %v1500_v26 }
  0x54   :  { %1418 = vmatmul.mubr.msk.bf16.gmra.mrb[20].mxu0 %vm400_vm1, %v1485_v21  ;;  %1450 = vmatmul.mubr.msk.bf16.gmra.mrb[20].mxu1 %vm400_vm1, %v1501_v28 }
  0x55   :  { %1421 = vmatprep.mubr.msk.bf16.mxu0 %vm400_vm1, %v1486_v23  ;;  %1453 = vmatprep.mubr.msk.bf16.mxu1 %vm400_vm1, %v1502_v30 }
  0x5c   :  { %1422 = vmatmul.mubr.msk.bf16.gmra.mrb[24].mxu0 %vm400_vm1, %v1487_v25  ;;  %1454 = vmatmul.mubr.msk.bf16.gmra.mrb[24].mxu1 %vm400_vm1, %v1503_v31 }
  0x5d   :  { %1425 = vmatprep.mubr.msk.bf16.mxu0 %vm400_vm1, %v1488_v27  ;;  %1457 = vmatprep.mubr.msk.bf16.mxu1 %vm400_vm1, %v1504_v32 }
  0x64   :  { %1426 = vmatmul.mubr.msk.bf16.gmra.mrb[28].mxu0 %vm400_vm1, %v1489_v29  ;;  %1458 = vmatmul.mubr.msk.bf16.gmra.mrb[28].mxu1 %vm400_vm1, %v1505_v33 }
  0xff   :  { %v1399_v34 = vpop.f32.mrb[0].mxu0  ;;  %v1714_v60 = vpop.f32.mrb[0].mxu1 }
 0x100   :  { %987 = vst [vmem:[#allocation8 + $0x10] sm:$0xff] %v1399_v34  ;;  %v535_v35 = vpop.f32.mrb[1].mxu0  ;;  %v1120_v41 = vmul.f32 %v1399_v34, %v1399_v34  ;;  %1019 = vst [vmem:[#allocation8 + $0x110] sm:$0xff] %v1714_v60  ;;  %v1717_v1 = vpop.f32.mrb[1].mxu1 }
 0x101   :  { %985 = vst [vmem:[#allocation8] sm:$0xff] %v535_v35  ;;  %v1400_v36 = vpop.f32.mrb[2].mxu0  ;;  %v1118_v38 = vmul.f32 %v535_v35, %v535_v35  ;;  %1017 = vst [vmem:[#allocation8 + $0x100] sm:$0xff] %v1717_v1  ;;  %v1720_v3 = vpop.f32.mrb[2].mxu1 }
 0x102   :  { %988 = vst [vmem:[#allocation8 + $0x18] sm:$0xff] %v1400_v36  ;;  %v538_v37 = vpop.f32.mrb[3].mxu0  ;;  %v1121_v44 = vmul.f32 %v1400_v36, %v1400_v36  ;;  %1020 = vst [vmem:[#allocation8 + $0x118] sm:$0xff] %v1720_v3  ;;  %v1723_v8 = vpop.f32.mrb[3].mxu1 }
 0x103   :  { %986 = vst [vmem:[#allocation8 + $0x8] sm:$0xff] %v538_v37  ;;  %v1049_v39 = vadd.f32 %v538_v37, %v535_v35  ;;  %v1119_v40 = vmul.f32 %v538_v37, %v538_v37  ;;  %1018 = vst [vmem:[#allocation8 + $0x108] sm:$0xff] %v1723_v8 }
 0x105   :  { %v1050_v42 = vadd.f32 %v1399_v34, %v1049_v39  ;;  %v1182_v43 = vadd.f32 %v1119_v40, %v1118_v38 }
 0x107   :  { %v1183_v45 = vadd.f32 %v1182_v43, %v1120_v41  ;;  %v1403_v46 = vpop.f32.mrb[4].mxu0  ;;  %v1051_v47 = vadd.f32 %v1400_v36, %v1050_v42  ;;  %v1726_v16 = vpop.f32.mrb[4].mxu1 }
 0x108   :  { %991 = vst [vmem:[#allocation8 + $0x30] sm:$0xff] %v1403_v46  ;;  %v551_v48 = vpop.f32.mrb[5].mxu0  ;;  %v1124_v57 = vmul.f32 %v1403_v46, %v1403_v46  ;;  %1023 = vst [vmem:[#allocation8 + $0x130] sm:$0xff] %v1726_v16  ;;  %v1729_v21 = vpop.f32.mrb[5].mxu1 }
 0x109   :  { %989 = vst [vmem:[#allocation8 + $0x20] sm:$0xff] %v551_v48  ;;  %v1052_v49 = vadd.f32 %v1051_v47, %v551_v48  ;;  %v1122_v50 = vmul.f32 %v551_v48, %v551_v48  ;;  %v1184_v51 = vadd.f32 %v1183_v45, %v1121_v44  ;;  %v1404_v52 = vpop.f32.mrb[6].mxu0  ;;  %1021 = vst [vmem:[#allocation8 + $0x120] sm:$0xff] %v1729_v21  ;;  %v1732_v23 = vpop.f32.mrb[6].mxu1 }
 0x10a   :  { %992 = vst [vmem:[#allocation8 + $0x38] sm:$0xff] %v1404_v52  ;;  %v554_v53 = vpop.f32.mrb[7].mxu0  ;;  %v1125_v61 = vmul.f32 %v1404_v52, %v1404_v52  ;;  %1024 = vst [vmem:[#allocation8 + $0x138] sm:$0xff] %v1732_v23  ;;  %v1735_v28 = vpop.f32.mrb[7].mxu1 }
 0x10b   :  { %v1185_v54 = vadd.f32 %v1184_v51, %v1122_v50  ;;  %990 = vst [vmem:[#allocation8 + $0x28] sm:$0xff] %v554_v53  ;;  %v1053_v55 = vadd.f32 %v1052_v49, %v554_v53  ;;  %v1123_v56 = vmul.f32 %v554_v53, %v554_v53  ;;  %1022 = vst [vmem:[#allocation8 + $0x128] sm:$0xff] %v1735_v28 }
 0x10d   :  { %v1054_v58 = vadd.f32 %v1403_v46, %v1053_v55  ;;  %v1186_v59 = vadd.f32 %v1185_v54, %v1123_v56 }
 0x10f   :  { %v1187_v62 = vadd.f32 %v1186_v59, %v1124_v57  ;;  %v1407_v63 = vpop.f32.mrb[8].mxu0  ;;  %v1055_v0 = vadd.f32 %v1404_v52, %v1054_v58  ;;  %v1738_v36 = vpop.f32.mrb[8].mxu1 }
 0x110   :  { %995 = vst [vmem:[#allocation8 + $0x50] sm:$0xff] %v1407_v63  ;;  %v567_v2 = vpop.f32.mrb[9].mxu0  ;;  %v1128_v13 = vmul.f32 %v1407_v63, %v1407_v63  ;;  %1027 = vst [vmem:[#allocation8 + $0x150] sm:$0xff] %v1738_v36  ;;  %v1741_v41 = vpop.f32.mrb[9].mxu1 }
 0x111   :  { %993 = vst [vmem:[#allocation8 + $0x40] sm:$0xff] %v567_v2  ;;  %v1056_v4 = vadd.f32 %v1055_v0, %v567_v2  ;;  %v1126_v5 = vmul.f32 %v567_v2, %v567_v2  ;;  %v1188_v6 = vadd.f32 %v1187_v62, %v1125_v61  ;;  %v1408_v7 = vpop.f32.mrb[10].mxu0  ;;  %1025 = vst [vmem:[#allocation8 + $0x140] sm:$0xff] %v1741_v41  ;;  %v1744_v43 = vpop.f32.mrb[10].mxu1 }
 0x112   :  { %996 = vst [vmem:[#allocation8 + $0x58] sm:$0xff] %v1408_v7  ;;  %v570_v9 = vpop.f32.mrb[11].mxu0  ;;  %v1129_v17 = vmul.f32 %v1408_v7, %v1408_v7  ;;  %1028 = vst [vmem:[#allocation8 + $0x158] sm:$0xff] %v1744_v43  ;;  %v1747_v48 = vpop.f32.mrb[11].mxu1 }
 0x113   :  { %v1189_v10 = vadd.f32 %v1188_v6, %v1126_v5  ;;  %994 = vst [vmem:[#allocation8 + $0x48] sm:$0xff] %v570_v9  ;;  %v1057_v11 = vadd.f32 %v1056_v4, %v570_v9  ;;  %v1127_v12 = vmul.f32 %v570_v9, %v570_v9  ;;  %1026 = vst [vmem:[#allocation8 + $0x148] sm:$0xff] %v1747_v48 }
 0x115   :  { %v1058_v14 = vadd.f32 %v1407_v63, %v1057_v11  ;;  %v1190_v15 = vadd.f32 %v1189_v10, %v1127_v12 }
 0x117   :  { %v1191_v18 = vadd.f32 %v1190_v15, %v1128_v13  ;;  %v1411_v19 = vpop.f32.mrb[12].mxu0  ;;  %v1059_v20 = vadd.f32 %v1408_v7, %v1058_v14  ;;  %v1750_v56 = vpop.f32.mrb[12].mxu1 }
 0x118   :  { %999 = vst [vmem:[#allocation8 + $0x70] sm:$0xff] %v1411_v19  ;;  %v583_v22 = vpop.f32.mrb[13].mxu0  ;;  %v1132_v33 = vmul.f32 %v1411_v19, %v1411_v19  ;;  %1031 = vst [vmem:[#allocation8 + $0x170] sm:$0xff] %v1750_v56  ;;  %v1753_v62 = vpop.f32.mrb[13].mxu1 }
 0x119   :  { %997 = vst [vmem:[#allocation8 + $0x60] sm:$0xff] %v583_v22  ;;  %v1060_v24 = vadd.f32 %v1059_v20, %v583_v22  ;;  %v1130_v25 = vmul.f32 %v583_v22, %v583_v22  ;;  %v1192_v26 = vadd.f32 %v1191_v18, %v1129_v17  ;;  %v1412_v27 = vpop.f32.mrb[14].mxu0  ;;  %1029 = vst [vmem:[#allocation8 + $0x160] sm:$0xff] %v1753_v62  ;;  %v1756_v0 = vpop.f32.mrb[14].mxu1 }
 0x11a   :  { %1000 = vst [vmem:[#allocation8 + $0x78] sm:$0xff] %v1412_v27  ;;  %v586_v29 = vpop.f32.mrb[15].mxu0  ;;  %v1133_v37 = vmul.f32 %v1412_v27, %v1412_v27  ;;  %1032 = vst [vmem:[#allocation8 + $0x178] sm:$0xff] %v1756_v0  ;;  %v1759_v7 = vpop.f32.mrb[15].mxu1 }
 0x11b   :  { %v1193_v30 = vadd.f32 %v1192_v26, %v1130_v25  ;;  %998 = vst [vmem:[#allocation8 + $0x68] sm:$0xff] %v586_v29  ;;  %v1061_v31 = vadd.f32 %v1060_v24, %v586_v29  ;;  %v1131_v32 = vmul.f32 %v586_v29, %v586_v29  ;;  %1030 = vst [vmem:[#allocation8 + $0x168] sm:$0xff] %v1759_v7 }
 0x11d   :  { %v1062_v34 = vadd.f32 %v1411_v19, %v1061_v31  ;;  %v1194_v35 = vadd.f32 %v1193_v30, %v1131_v32 }
 0x11f   :  { %v1195_v38 = vadd.f32 %v1194_v35, %v1132_v33  ;;  %v1415_v39 = vpop.f32.mrb[16].mxu0  ;;  %v1063_v40 = vadd.f32 %v1412_v27, %v1062_v34  ;;  %v1762_v17 = vpop.f32.mrb[16].mxu1 }
 0x120   :  { %1003 = vst [vmem:[#allocation8 + $0x90] sm:$0xff] %v1415_v39  ;;  %v599_v42 = vpop.f32.mrb[17].mxu0  ;;  %v1136_v53 = vmul.f32 %v1415_v39, %v1415_v39  ;;  %1035 = vst [vmem:[#allocation8 + $0x190] sm:$0xff] %v1762_v17  ;;  %v1765_v24 = vpop.f32.mrb[17].mxu1 }
 0x121   :  { %1001 = vst [vmem:[#allocation8 + $0x80] sm:$0xff] %v599_v42  ;;  %v1064_v44 = vadd.f32 %v1063_v40, %v599_v42  ;;  %v1134_v45 = vmul.f32 %v599_v42, %v599_v42  ;;  %v1196_v46 = vadd.f32 %v1195_v38, %v1133_v37  ;;  %v1416_v47 = vpop.f32.mrb[18].mxu0  ;;  %1033 = vst [vmem:[#allocation8 + $0x180] sm:$0xff] %v1765_v24  ;;  %v1768_v26 = vpop.f32.mrb[18].mxu1 }
 0x122   :  { %1004 = vst [vmem:[#allocation8 + $0x98] sm:$0xff] %v1416_v47  ;;  %v602_v49 = vpop.f32.mrb[19].mxu0  ;;  %v1137_v57 = vmul.f32 %v1416_v47, %v1416_v47  ;;  %1036 = vst [vmem:[#allocation8 + $0x198] sm:$0xff] %v1768_v26  ;;  %v1771_v32 = vpop.f32.mrb[19].mxu1 }
 0x123   :  { %v1197_v50 = vadd.f32 %v1196_v46, %v1134_v45  ;;  %1002 = vst [vmem:[#allocation8 + $0x88] sm:$0xff] %v602_v49  ;;  %v1065_v51 = vadd.f32 %v1064_v44, %v602_v49  ;;  %v1135_v52 = vmul.f32 %v602_v49, %v602_v49  ;;  %1034 = vst [vmem:[#allocation8 + $0x188] sm:$0xff] %v1771_v32 }
 0x125   :  { %v1066_v54 = vadd.f32 %v1415_v39, %v1065_v51  ;;  %v1198_v55 = vadd.f32 %v1197_v50, %v1135_v52 }
 0x127   :  { %v1199_v58 = vadd.f32 %v1198_v55, %v1136_v53  ;;  %v1419_v59 = vpop.f32.mrb[20].mxu0  ;;  %v1067_v61 = vadd.f32 %v1416_v47, %v1066_v54  ;;  %v1774_v42 = vpop.f32.mrb[20].mxu1 }
 0x128   :  { %1007 = vst [vmem:[#allocation8 + $0xb0] sm:$0xff] %v1419_v59  ;;  %v615_v63 = vpop.f32.mrb[21].mxu0  ;;  %v1140_v13 = vmul.f32 %v1419_v59, %v1419_v59  ;;  %1039 = vst [vmem:[#allocation8 + $0x1b0] sm:$0xff] %v1774_v42  ;;  %v1777_v49 = vpop.f32.mrb[21].mxu1 }
 0x129   :  { %1005 = vst [vmem:[#allocation8 + $0xa0] sm:$0xff] %v615_v63  ;;  %v1068_v2 = vadd.f32 %v1067_v61, %v615_v63  ;;  %v1138_v4 = vmul.f32 %v615_v63, %v615_v63  ;;  %v1200_v5 = vadd.f32 %v1199_v58, %v1137_v57  ;;  %v1420_v6 = vpop.f32.mrb[22].mxu0  ;;  %1037 = vst [vmem:[#allocation8 + $0x1a0] sm:$0xff] %v1777_v49  ;;  %v1780_v51 = vpop.f32.mrb[22].mxu1 }
 0x12a   :  { %1008 = vst [vmem:[#allocation8 + $0xb8] sm:$0xff] %v1420_v6  ;;  %v618_v9 = vpop.f32.mrb[23].mxu0  ;;  %v1141_v18 = vmul.f32 %v1420_v6, %v1420_v6  ;;  %1040 = vst [vmem:[#allocation8 + $0x1b8] sm:$0xff] %v1780_v51  ;;  %v1783_v57 = vpop.f32.mrb[23].mxu1 }
 0x12b   :  { %v1201_v10 = vadd.f32 %v1200_v5, %v1138_v4  ;;  %1006 = vst [vmem:[#allocation8 + $0xa8] sm:$0xff] %v618_v9  ;;  %v1069_v11 = vadd.f32 %v1068_v2, %v618_v9  ;;  %v1139_v12 = vmul.f32 %v618_v9, %v618_v9  ;;  %1038 = vst [vmem:[#allocation8 + $0x1a8] sm:$0xff] %v1783_v57 }
 0x12d   :  { %v1070_v14 = vadd.f32 %v1419_v59, %v1069_v11  ;;  %v1202_v15 = vadd.f32 %v1201_v10, %v1139_v12  ;;  %v1150_v12 = vmul.f32 %v1717_v1, %v1717_v1 }
 0x12f   :  { %v1203_v19 = vadd.f32 %v1202_v15, %v1140_v13  ;;  %v1423_v20 = vpop.f32.mrb[24].mxu0  ;;  %v1071_v22 = vadd.f32 %v1420_v6, %v1070_v14  ;;  %v1786_v6 = vpop.f32.mrb[24].mxu1 }
 0x130   :  { %1011 = vst [vmem:[#allocation8 + $0xd0] sm:$0xff] %v1423_v20  ;;  %v631_v25 = vpop.f32.mrb[25].mxu0  ;;  %v1144_v38 = vmul.f32 %v1423_v20, %v1423_v20  ;;  %1043 = vst [vmem:[#allocation8 + $0x1d0] sm:$0xff] %v1786_v6  ;;  %v1791_v13 = vpop.f32.mrb[25].mxu1 }
 0x131   :  { %1009 = vst [vmem:[#allocation8 + $0xc0] sm:$0xff] %v631_v25  ;;  %v1072_v27 = vadd.f32 %v1071_v22, %v631_v25  ;;  %v1142_v29 = vmul.f32 %v631_v25, %v631_v25  ;;  %v1204_v30 = vadd.f32 %v1203_v19, %v1141_v18  ;;  %v1424_v31 = vpop.f32.mrb[26].mxu0  ;;  %1041 = vst [vmem:[#allocation8 + $0x1c0] sm:$0xff] %v1791_v13  ;;  %v1794_v14 = vpop.f32.mrb[26].mxu1 }
 0x132   :  { %1012 = vst [vmem:[#allocation8 + $0xd8] sm:$0xff] %v1424_v31  ;;  %v634_v33 = vpop.f32.mrb[27].mxu0  ;;  %v1145_v44 = vmul.f32 %v1424_v31, %v1424_v31  ;;  %1044 = vst [vmem:[#allocation8 + $0x1d8] sm:$0xff] %v1794_v14  ;;  %v1798_v19 = vpop.f32.mrb[27].mxu1  ;;  %v1151_v25 = vmul.f32 %v1723_v8, %v1723_v8 }
 0x133   :  { %v1205_v34 = vadd.f32 %v1204_v30, %v1142_v29  ;;  %1010 = vst [vmem:[#allocation8 + $0xc8] sm:$0xff] %v634_v33  ;;  %v1073_v35 = vadd.f32 %v1072_v27, %v634_v33  ;;  %v1143_v37 = vmul.f32 %v634_v33, %v634_v33  ;;  %1042 = vst [vmem:[#allocation8 + $0x1c8] sm:$0xff] %v1798_v19 }
 0x134   :  { %v1152_v27 = vmul.f32 %v1714_v60, %v1714_v60 }
 0x135   :  { %v1074_v39 = vadd.f32 %v1423_v20, %v1073_v35  ;;  %v1206_v40 = vadd.f32 %v1205_v34, %v1143_v37  ;;  %v1154_v35 = vmul.f32 %v1729_v21, %v1729_v21 }
 0x137   :  { %v1207_v45 = vadd.f32 %v1206_v40, %v1144_v38  ;;  %v1427_v46 = vpop.f32.mrb[28].mxu0  ;;  %v1075_v47 = vadd.f32 %v1424_v31, %v1074_v39  ;;  %v1807_v30 = vpop.f32.mrb[28].mxu1  ;;  %v1153_v31 = vmul.f32 %v1720_v3, %v1720_v3 }
 0x138   :  { %1015 = vst [vmem:[#allocation8 + $0xf0] sm:$0xff] %v1427_v46  ;;  %v647_v50 = vpop.f32.mrb[29].mxu0  ;;  %v1148_v2 = vmul.f32 %v1427_v46, %v1427_v46  ;;  %1047 = vst [vmem:[#allocation8 + $0x1f0] sm:$0xff] %v1807_v30 }
 0x139   :  { %1013 = vst [vmem:[#allocation8 + $0xe0] sm:$0xff] %v647_v50  ;;  %v1076_v52 = vadd.f32 %v1075_v47, %v647_v50  ;;  %v1146_v53 = vmul.f32 %v647_v50, %v647_v50  ;;  %v1208_v54 = vadd.f32 %v1207_v45, %v1145_v44  ;;  %v1428_v55 = vpop.f32.mrb[30].mxu0  ;;  %v1155_v44 = vmul.f32 %v1735_v28, %v1735_v28 }
 0x13a   :  { %1016 = vst [vmem:[#allocation8 + $0xf8] sm:$0xff] %v1428_v55  ;;  %v650_v58 = vpop.f32.mrb[31].mxu0  ;;  %v1149_v9 = vmul.f32 %v1428_v55, %v1428_v55 }
 0x13b   :  { %v1209_v59 = vadd.f32 %v1208_v54, %v1146_v53  ;;  %1014 = vst [vmem:[#allocation8 + $0xe8] sm:$0xff] %v650_v58  ;;  %v1077_v61 = vadd.f32 %v1076_v52, %v650_v58  ;;  %v1147_v63 = vmul.f32 %v650_v58, %v650_v58 }
 0x13d   :  { %v1078_v4 = vadd.f32 %v1427_v46, %v1077_v61  ;;  %v1210_v5 = vadd.f32 %v1209_v59, %v1147_v63 }
 0x13f   :  { %v1211_v10 = vadd.f32 %v1210_v5, %v1148_v2  ;;  %v1079_v11 = vadd.f32 %v1428_v55, %v1078_v4 }
 0x141   :  { %v1080_v15 = vadd.f32 %v1079_v11, %v1717_v1  ;;  %v1212_v18 = vadd.f32 %v1211_v10, %v1149_v9 }
 0x143   :  { %v1213_v20 = vadd.f32 %v1212_v18, %v1150_v12  ;;  %v1081_v22 = vadd.f32 %v1080_v15, %v1723_v8  ;;  %v1815_v8 = vpop.f32.mrb[29].mxu1 }
 0x144   :  { %1045 = vst [vmem:[#allocation8 + $0x1e0] sm:$0xff] %v1815_v8 }
 0x145   :  { %v1082_v1 = vadd.f32 %v1714_v60, %v1081_v22  ;;  %v1214_v29 = vadd.f32 %v1213_v20, %v1151_v25  ;;  %v1818_v60 = vpop.f32.mrb[30].mxu1 }
 0x146   :  { %1048 = vst [vmem:[#allocation8 + $0x1f8] sm:$0xff] %v1818_v60  ;;  %v1822_v39 = vpop.f32.mrb[31].mxu1 }
 0x147   :  { %v1215_v33 = vadd.f32 %v1214_v29, %v1152_v27  ;;  %v1083_v34 = vadd.f32 %v1720_v3, %v1082_v1  ;;  %1046 = vst [vmem:[#allocation8 + $0x1e8] sm:$0xff] %v1822_v39 }
 0x149   :  { %v1084_v37 = vadd.f32 %v1083_v34, %v1729_v21  ;;  %v1216_v38 = vadd.f32 %v1215_v33, %v1153_v31 }
 0x14b   :  { %v1217_v3 = vadd.f32 %v1216_v38, %v1154_v35  ;;  %v1085_v40 = vadd.f32 %v1084_v37, %v1735_v28 }
 0x14c   :  { %1561 = shalt.err (!%p1558_p6)
}
 0x14d   :  { %s1562_s18 = scalar_lea.hbm %s1944_s2, 8192 }
 0x14e   :  { %p1563_p7 = scmp.ne.s32.totalorder %s1944_s2, %s1562_s18  ;;  %p1566_p8 = scmp.lt.u32.totalorder %s1562_s18, %s1944_s2 }
 0x150   :  { %p1568_p9 = pnand %p1566_p8, %p1563_p7 }
 0x152   :  { %1571 = shalt.err (!%p1568_p9)
}
 0x153   :  { %s1629_s23 = smov 128   ;;  %s1630_s24 = smov 8   ;;  %v1156_v21 = vmul.f32 %v1726_v16, %v1726_v16  ;;  %v1086_v28 = vadd.f32 %v1726_v16, %v1085_v40  ;;  %v1218_v45 = vadd.f32 %v1217_v3, %v1155_v44  ;;  %v1157_v46 = vmul.f32 %v1732_v23, %v1732_v23 }
 0x154   :  { %1264 = dma.vmem_to_hbm [thread:$0]  %s1259_s14, 8192, %s1944_s2, [#allocation5], %s1629_s23, %s1629_s23, %s1630_s24   ;;  %v1158_v52 = vmul.f32 %v1741_v41, %v1741_v41  ;;  %v1159_v59 = vmul.f32 %v1747_v48, %v1747_v48  ;;  %v1160_v16 = vmul.f32 %v1738_v36, %v1738_v36  ;;  %v1163_v11 = vmul.f32 %v1759_v7, %v1759_v7 }
 0x155   :  { %v1219_v47 = vadd.f32 %v1218_v45, %v1156_v21  ;;  %v1087_v50 = vadd.f32 %v1732_v23, %v1086_v28  ;;  %v1161_v23 = vmul.f32 %v1744_v43, %v1744_v43  ;;  %v1167_v1 = vmul.f32 %v1771_v32, %v1771_v32  ;;  %s1631_s2 = smov [#allocation9]   ;;  %s1632_s28 = smov [#allocation11]  }
 0x156   :  { %v1171_v3 = vmul.f32 %v1783_v57, %v1783_v57  ;;  %s1271_s27 = sshll.u32 %s1631_s2, 4  ;;  %s1281_s29 = sshll.u32 %s1632_s28, 4  ;;  %s1272_s27 = int_to_ptr.vmem [resolvable:$true] %s1271_s27  ;;  %s1282_s29 = int_to_ptr.vmem [resolvable:$true] %s1281_s29 }
 0x157   :  { %v1088_v53 = vadd.f32 %v1087_v50, %v1741_v41  ;;  %v1220_v54 = vadd.f32 %v1219_v47, %v1157_v46  ;;  %v1162_v41 = vmul.f32 %v1753_v62, %v1753_v62  ;;  %v1175_v50 = vmul.f32 %v1798_v19, %v1798_v19  ;;  %s1572_s30 = scalar_lea.vmem %s1272_s27, 128  ;;  %p1577_p11 = scmp.lt.s32.totalorder %s1272_s27, %s1272_s27 }
 0x158   :  { %p1573_p10 = scmp.ne.s32.totalorder %s1272_s27, %s1572_s30  ;;  %p1578_p12 = scmp.lt.s32.totalorder %s1572_s30, %s1572_s30 }
 0x159   :  { %v1221_v55 = vadd.f32 %v1220_v54, %v1158_v52  ;;  %v1089_v58 = vadd.f32 %v1088_v53, %v1747_v48 }
 0x15a   :  { %p1579_p13 = por %p1578_p12, %p1577_p11 }
 0x15b   :  { %v1090_v61 = vadd.f32 %v1738_v36, %v1089_v58  ;;  %v1222_v63 = vadd.f32 %v1221_v55, %v1159_v59  ;;  %v1164_v36 = vmul.f32 %v1750_v56, %v1750_v56 }
 0x15c   :  { %p1580_p0 = pnand %p1579_p13, %p1573_p10 }
 0x15d   :  { %v1223_v2 = vadd.f32 %v1222_v63, %v1160_v16  ;;  %v1091_v4 = vadd.f32 %v1744_v43, %v1090_v61  ;;  %v1165_v43 = vmul.f32 %v1756_v0, %v1756_v0  ;;  %v1179_v61 = vmul.f32 %v1822_v39, %v1822_v39 }
 0x15f   :  { %v1092_v5 = vadd.f32 %v1091_v4, %v1753_v62  ;;  %v1224_v9 = vadd.f32 %v1223_v2, %v1161_v23  ;;  %v1166_v62 = vmul.f32 %v1765_v24, %v1765_v24 }
 0x161   :  { %v1225_v10 = vadd.f32 %v1224_v9, %v1162_v41  ;;  %v1093_v48 = vadd.f32 %v1092_v5, %v1759_v7 }
 0x163   :  { %v1094_v12 = vadd.f32 %v1750_v56, %v1093_v48  ;;  %v1226_v15 = vadd.f32 %v1225_v10, %v1163_v11  ;;  %v1168_v56 = vmul.f32 %v1762_v17, %v1762_v17 }
 0x165   :  { %v1227_v18 = vadd.f32 %v1226_v15, %v1164_v36  ;;  %v1095_v20 = vadd.f32 %v1756_v0, %v1094_v12  ;;  %v1169_v0 = vmul.f32 %v1768_v26, %v1768_v26 }
 0x167   :  { %v1096_v22 = vadd.f32 %v1095_v20, %v1765_v24  ;;  %v1228_v25 = vadd.f32 %v1227_v18, %v1165_v43  ;;  %v1170_v24 = vmul.f32 %v1777_v49, %v1777_v49 }
 0x169   :  { %v1229_v27 = vadd.f32 %v1228_v25, %v1166_v62  ;;  %v1097_v7 = vadd.f32 %v1096_v22, %v1771_v32 }
 0x16b   :  { %v1098_v29 = vadd.f32 %v1762_v17, %v1097_v7  ;;  %v1230_v31 = vadd.f32 %v1229_v27, %v1167_v1  ;;  %v1172_v17 = vmul.f32 %v1774_v42, %v1774_v42 }
 0x16d   :  { %v1231_v33 = vadd.f32 %v1230_v31, %v1168_v56  ;;  %v1099_v34 = vadd.f32 %v1768_v26, %v1098_v29  ;;  %v1173_v26 = vmul.f32 %v1780_v51, %v1780_v51 }
 0x16f   :  { %v1100_v35 = vadd.f32 %v1099_v34, %v1777_v49  ;;  %v1232_v37 = vadd.f32 %v1231_v33, %v1169_v0  ;;  %v1174_v49 = vmul.f32 %v1791_v13, %v1791_v13 }
 0x171   :  { %v1233_v38 = vadd.f32 %v1232_v37, %v1170_v24  ;;  %v1101_v32 = vadd.f32 %v1100_v35, %v1783_v57 }
 0x173   :  { %v1102_v40 = vadd.f32 %v1774_v42, %v1101_v32  ;;  %v1234_v44 = vadd.f32 %v1233_v38, %v1171_v3  ;;  %v1176_v42 = vmul.f32 %v1786_v6, %v1786_v6 }
 0x175   :  { %v1235_v21 = vadd.f32 %v1234_v44, %v1172_v17  ;;  %v1103_v28 = vadd.f32 %v1780_v51, %v1102_v40  ;;  %v1177_v51 = vmul.f32 %v1794_v14, %v1794_v14 }
 0x177   :  { %v1104_v45 = vadd.f32 %v1103_v28, %v1791_v13  ;;  %v1236_v46 = vadd.f32 %v1235_v21, %v1173_v26  ;;  %v1178_v13 = vmul.f32 %v1815_v8, %v1815_v8 }
 0x179   :  { %v1237_v47 = vadd.f32 %v1236_v46, %v1174_v49  ;;  %v1105_v57 = vadd.f32 %v1104_v45, %v1798_v19 }
 0x17b   :  { %v1106_v52 = vadd.f32 %v1786_v6, %v1105_v57  ;;  %v1238_v53 = vadd.f32 %v1237_v47, %v1175_v50  ;;  %v1180_v6 = vmul.f32 %v1807_v30, %v1807_v30 }
 0x17d   :  { %v1239_v54 = vadd.f32 %v1238_v53, %v1176_v42  ;;  %v1107_v55 = vadd.f32 %v1794_v14, %v1106_v52  ;;  %v1181_v14 = vmul.f32 %v1818_v60, %v1818_v60 }
 0x17f   :  { %v1108_v58 = vadd.f32 %v1107_v55, %v1815_v8  ;;  %v1240_v59 = vadd.f32 %v1239_v54, %v1177_v51 }
 0x181   :  { %v1241_v16 = vadd.f32 %v1240_v59, %v1178_v13  ;;  %v1109_v19 = vadd.f32 %v1108_v58, %v1822_v39 }
 0x183   :  { %v1110_v63 = vadd.f32 %v1807_v30, %v1109_v19  ;;  %v1242_v23 = vadd.f32 %v1241_v16, %v1179_v61 }
 0x185   :  { %v1111_v2 = vadd.f32 %v1818_v60, %v1110_v63  ;;  %v1243_v4 = vadd.f32 %v1242_v23, %v1180_v6 }
 0x187   :  { %v1112_v8 = vrot.slane %v1111_v2, 4  ;;  %v1244_v41 = vadd.f32 %v1243_v4, %v1181_v14 }
 0x189   :  { %v1245_v5 = vrot.slane %v1244_v41, 4  ;;  %v1113_v9 = vadd.f32 %v1112_v8, %v1111_v2 }
 0x18b   :  { %v1114_v10 = vrot.slane %v1113_v9, 2  ;;  %v1246_v48 = vadd.f32 %v1245_v5, %v1244_v41 }
 0x18d   :  { %v1115_v11 = vadd.f32 %v1114_v10, %v1113_v9  ;;  %v1247_v39 = vrot.slane %v1246_v48, 2 }
 0x18f   :  { %v1116_v36 = vrot.slane %v1115_v11, 1  ;;  %v1248_v12 = vadd.f32 %v1247_v39, %v1246_v48 }
 0x191   :  { %v1117_v30 = vadd.f32 %v1116_v36, %v1115_v11  ;;  %v1249_v15 = vrot.slane %v1248_v12, 1 }
 0x193   :  { %1251 = vst [vmem:[#allocation9] sm:$0xff] %v1117_v30  ;;  %v1250_v60 = vadd.f32 %v1249_v15, %v1248_v12 }
 0x194   :  { %1583 = shalt.err (!%p1580_p0)
}
 0x195   :  { %s1584_s7 = scalar_lea.hbm %s1945_s3, 128 }
 0x196   :  { %p1585_p1 = scmp.ne.s32.totalorder %s1945_s3, %s1584_s7  ;;  %p1588_p2 = scmp.lt.u32.totalorder %s1584_s7, %s1945_s3 }
 0x198   :  { %p1590_p3 = pnand %p1588_p2, %p1585_p1 }
 0x19a   :  { %1593 = shalt.err (!%p1590_p3)
}
 0x19b   :  { %1274 = dma.vmem_to_hbm [thread:$0]  %s1272_s27, 128, %s1945_s3, [#allocation10]   ;;  %1252 = vst [vmem:[#allocation11] sm:$0xff] %v1250_v60 }
 0x19c   :  { %s1594_s13 = scalar_lea.vmem %s1282_s29, 128  ;;  %p1599_p5 = scmp.lt.s32.totalorder %s1282_s29, %s1282_s29 }
 0x19d   :  { %p1595_p4 = scmp.ne.s32.totalorder %s1282_s29, %s1594_s13  ;;  %p1600_p6 = scmp.lt.s32.totalorder %s1594_s13, %s1594_s13 }
 0x19f   :  { %p1601_p7 = por %p1600_p6, %p1599_p5 }
 0x1a1   :  { %p1602_p8 = pnand %p1601_p7, %p1595_p4 }
 0x1a3   :  { %1605 = shalt.err (!%p1602_p8)
}
 0x1a4   :  { %s1606_s15 = scalar_lea.hbm %s1946_s4, 128 }
 0x1a5   :  { %p1607_p9 = scmp.ne.s32.totalorder %s1946_s4, %s1606_s15  ;;  %p1610_p10 = scmp.lt.u32.totalorder %s1606_s15, %s1946_s4 }
 0x1a7   :  { %p1612_p11 = pnand %p1610_p10, %p1607_p9 }
 0x1a9   :  { %1615 = shalt.err (!%p1612_p11)
}
 0x1aa   :  { %1284 = dma.vmem_to_hbm [thread:$0]  %s1282_s29, 128, %s1946_s4, [#allocation10]  }
 0x1ab   :  { %1620 = dma.done.wait [#allocation5], 8192  }
 0x1ac   :  { %1621 = vsyncadd [#allocation5], 4294959104 }
 0x1ad   :  { %1622 = dma.done.wait [#allocation10], 256  }
 0x1ae   :  { %1623 = vsyncadd [#allocation10], 4294967040 }
 0x1af   :  { %1294 = vsyncpa [#allocation4], 1 }
 0x1b0   :  { %1295 = vsyncpa [#allocation7], 1 }
 0x1b1   :  { %1296 = vsyncpa [#allocation5], 1 }
 0x1b2   :  { %1297 = vsyncpa [#allocation10], 1 }

// kernel: aspp_forward.11
= control target key start
LH: loop header
LB: loop body
LE: loop exit
PB: predicated region body
PF: predicated region fallthrough
CT: control target
= control target key end

     0   :  { %7 = vsyncpa [#allocation3], 0  ;;  %s659_s0 = inlined_call_operand.hbm [shape: f32[512,128], index: 0, kind: input, shape index: {}]   ;;  %s660_s1 = inlined_call_operand.hbm [shape: f32[8,128], index: 1, kind: input, shape index: {}]   ;;  %s661_s2 = inlined_call_operand.hbm [shape: f32[512,128], index: 2, kind: output, shape index: {}]  }
   0x1   :  { %8 = vsyncpa [#allocation6], 0 }
   0x2   :  { %9 = vsyncpa [#allocation4], 0  ;;  %s465_s9 = smov [#allocation2]   ;;  %s393_s13 = scalar_lea.hbm %s659_s0, 8192 }
   0x3   :  { %s15_s10 = sshll.u32 %s465_s9, 4  ;;  %p394_p0 = scmp.ne.s32.totalorder %s659_s0, %s393_s13  ;;  %s16_s10 = int_to_ptr.vmem [resolvable:$true] %s15_s10 }
   0x4   :  { %p397_p1 = scmp.lt.u32.totalorder %s393_s13, %s659_s0 }
   0x6   :  { %p399_p2 = pnand %p397_p1, %p394_p0 }
   0x8   :  { %402 = shalt.err (!%p399_p2)
}
   0x9   :  { %s403_s18 = scalar_lea.vmem %s16_s10, 8192  ;;  %p408_p4 = scmp.lt.s32.totalorder %s16_s10, %s16_s10 }
   0xa   :  { %p404_p3 = scmp.ne.s32.totalorder %s16_s10, %s403_s18  ;;  %p409_p5 = scmp.lt.s32.totalorder %s403_s18, %s403_s18 }
   0xc   :  { %p410_p6 = por %p409_p5, %p408_p4 }
   0xe   :  { %p411_p7 = pnand %p410_p6, %p404_p3 }
  0x10   :  { %414 = shalt.err (!%p411_p7)
}
  0x11   :  { %s466_s19 = smov 128   ;;  %s467_s20 = smov 8  }
  0x12   :  { %21 = dma.hbm_to_vmem [thread:$0]  %s659_s0, 8192, %s16_s10, [#allocation3], %s466_s19, %s466_s19, %s467_s20  }
  0x13   :  { %s468_s23 = smov [#allocation5]   ;;  %s415_s27 = scalar_lea.hbm %s660_s1, 128 }
  0x14   :  { %s28_s24 = sshll.u32 %s468_s23, 4  ;;  %p416_p8 = scmp.ne.s32.totalorder %s660_s1, %s415_s27  ;;  %s29_s24 = int_to_ptr.vmem [resolvable:$true] %s28_s24 }
  0x15   :  { %p419_p9 = scmp.lt.u32.totalorder %s415_s27, %s660_s1 }
  0x17   :  { %p421_p10 = pnand %p419_p9, %p416_p8 }
  0x19   :  { %424 = shalt.err (!%p421_p10)
}
  0x1a   :  { %s425_s4 = scalar_lea.vmem %s29_s24, 128  ;;  %p430_p12 = scmp.lt.s32.totalorder %s29_s24, %s29_s24 }
  0x1b   :  { %p426_p11 = scmp.ne.s32.totalorder %s29_s24, %s425_s4  ;;  %p431_p13 = scmp.lt.s32.totalorder %s425_s4, %s425_s4 }
  0x1d   :  { %p432_p0 = por %p431_p13, %p430_p12 }
  0x1f   :  { %p433_p1 = pnand %p432_p0, %p426_p11 }
  0x21   :  { %436 = shalt.err (!%p433_p1)
}
  0x22   :  { %31 = dma.hbm_to_vmem [thread:$0]  %s660_s1, 128, %s29_s24, [#allocation6]  }
  0x23   :  { %459 = dma.done.wait [#allocation3], 8192  }
  0x24   :  { %460 = vsyncadd [#allocation3], 4294959104 }
  0x25   :  { %461 = dma.done.wait [#allocation6], 128  }
  0x26   :  { %462 = vsyncadd [#allocation6], 4294967168  ;;  %v38_v0 = vld [vmem:[#allocation2] sm:$0xff]  ;;  %v39_v4 = vld [vmem:[#allocation2 + $0x8] sm:$0xff]  ;;  %s469_s1 = smov [#allocation7]  }
  0x27   :  { %v512_v1 = vld [vmem:[#allocation5] ss:$0 sm:$0xff]  ;;  %v514_v2 = vld [vmem:[#allocation5 + $0x1] ss:$0 sm:$0xff]  ;;  %v40_v5 = vld [vmem:[#allocation2 + $0x10] sm:$0xff]  ;;  %s373_s6 = sshll.u32 %s469_s1, 4  ;;  %s374_s6 = int_to_ptr.vmem [resolvable:$true] %s373_s6 }
  0x28   :  { %v107_v3 = vmul.f32 %v512_v1, %v38_v0  ;;  %v41_v6 = vld [vmem:[#allocation2 + $0x18] sm:$0xff]  ;;  %v108_v7 = vmul.f32 %v512_v1, %v39_v4  ;;  %v109_v8 = vmul.f32 %v512_v1, %v40_v5  ;;  %v42_v10 = vld [vmem:[#allocation2 + $0x20] sm:$0xff]  ;;  %v43_v11 = vld [vmem:[#allocation2 + $0x28] sm:$0xff]  ;;  %s437_s7 = scalar_lea.vmem %s374_s6, 8192  ;;  %p442_p3 = scmp.lt.s32.totalorder %s374_s6, %s374_s6 }
  0x29   :  { %v110_v9 = vmul.f32 %v512_v1, %v41_v6  ;;  %v44_v12 = vld [vmem:[#allocation2 + $0x30] sm:$0xff]  ;;  %v111_v14 = vmul.f32 %v512_v1, %v42_v10  ;;  %v112_v15 = vmul.f32 %v512_v1, %v43_v11  ;;  %v45_v17 = vld [vmem:[#allocation2 + $0x38] sm:$0xff]  ;;  %v46_v22 = vld [vmem:[#allocation2 + $0x40] sm:$0xff]  ;;  %p438_p2 = scmp.ne.s32.totalorder %s374_s6, %s437_s7  ;;  %p443_p4 = scmp.lt.s32.totalorder %s437_s7, %s437_s7 }
  0x2a   :  { %v176_v13 = vadd.f32 %v514_v2, %v107_v3  ;;  %v113_v16 = vmul.f32 %v512_v1, %v44_v12  ;;  %v177_v18 = vadd.f32 %v514_v2, %v108_v7  ;;  %v178_v19 = vadd.f32 %v514_v2, %v109_v8  ;;  %v47_v27 = vld [vmem:[#allocation2 + $0x48] sm:$0xff]  ;;  %v48_v28 = vld [vmem:[#allocation2 + $0x50] sm:$0xff]  ;;  %v49_v29 = vld [vmem:[#allocation2 + $0x58] sm:$0xff] }
  0x2b   :  { %v179_v20 = vadd.f32 %v514_v2, %v110_v9  ;;  %v114_v21 = vmul.f32 %v512_v1, %v45_v17  ;;  %v180_v24 = vadd.f32 %v514_v2, %v111_v14  ;;  %v181_v25 = vadd.f32 %v514_v2, %v112_v15  ;;  %v50_v34 = vld [vmem:[#allocation2 + $0x60] sm:$0xff]  ;;  %v51_v35 = vld [vmem:[#allocation2 + $0x68] sm:$0xff]  ;;  %v52_v36 = vld [vmem:[#allocation2 + $0x70] sm:$0xff]  ;;  %p444_p5 = por %p443_p4, %p442_p3 }
  0x2c   :  { %v240_v23 = vmax.f32 %v176_v13, 0.0  ;;  %v182_v26 = vadd.f32 %v514_v2, %v113_v16  ;;  %v241_v30 = vmax.f32 %v177_v18, 0.0  ;;  %v242_v31 = vmax.f32 %v178_v19, 0.0  ;;  %v53_v41 = vld [vmem:[#allocation2 + $0x78] sm:$0xff]  ;;  %v54_v54 = vld [vmem:[#allocation2 + $0x80] sm:$0xff]  ;;  %v55_v59 = vld [vmem:[#allocation2 + $0x88] sm:$0xff] }
  0x2d   :  { %v243_v32 = vmax.f32 %v179_v20, 0.0  ;;  %v183_v33 = vadd.f32 %v514_v2, %v114_v21  ;;  %v244_v37 = vmax.f32 %v180_v24, 0.0  ;;  %v245_v38 = vmax.f32 %v181_v25, 0.0  ;;  %v56_v60 = vld [vmem:[#allocation2 + $0x90] sm:$0xff]  ;;  %v57_v61 = vld [vmem:[#allocation2 + $0x98] sm:$0xff]  ;;  %v58_v4 = vld [vmem:[#allocation2 + $0xa0] sm:$0xff]  ;;  %p445_p6 = pnand %p444_p5, %p438_p2 }
  0x2e   :  { %304 = vst [vmem:[#allocation7] sm:$0xff] %v240_v23  ;;  %v246_v39 = vmax.f32 %v182_v26, 0.0  ;;  %v115_v40 = vmul.f32 %v512_v1, %v46_v22  ;;  %305 = vst [vmem:[#allocation7 + $0x8] sm:$0xff] %v241_v30  ;;  %v116_v43 = vmul.f32 %v512_v1, %v47_v27  ;;  %v117_v44 = vmul.f32 %v512_v1, %v48_v28  ;;  %v59_v5 = vld [vmem:[#allocation2 + $0xa8] sm:$0xff]  ;;  %v60_v6 = vld [vmem:[#allocation2 + $0xb0] sm:$0xff] }
  0x2f   :  { %306 = vst [vmem:[#allocation7 + $0x10] sm:$0xff] %v242_v31  ;;  %307 = vst [vmem:[#allocation7 + $0x18] sm:$0xff] %v243_v32  ;;  %v247_v42 = vmax.f32 %v183_v33, 0.0  ;;  %v118_v45 = vmul.f32 %v512_v1, %v49_v29  ;;  %v119_v47 = vmul.f32 %v512_v1, %v50_v34  ;;  %v120_v48 = vmul.f32 %v512_v1, %v51_v35  ;;  %v61_v11 = vld [vmem:[#allocation2 + $0xb8] sm:$0xff]  ;;  %v62_v24 = vld [vmem:[#allocation2 + $0xc0] sm:$0xff] }
  0x30   :  { %308 = vst [vmem:[#allocation7 + $0x20] sm:$0xff] %v244_v37  ;;  %309 = vst [vmem:[#allocation7 + $0x28] sm:$0xff] %v245_v38  ;;  %v184_v46 = vadd.f32 %v514_v2, %v115_v40  ;;  %v121_v49 = vmul.f32 %v512_v1, %v52_v36  ;;  %v185_v50 = vadd.f32 %v514_v2, %v116_v43  ;;  %v63_v29 = vld [vmem:[#allocation2 + $0xc8] sm:$0xff]  ;;  %v64_v30 = vld [vmem:[#allocation2 + $0xd0] sm:$0xff] }
  0x31   :  { %310 = vst [vmem:[#allocation7 + $0x30] sm:$0xff] %v246_v39  ;;  %311 = vst [vmem:[#allocation7 + $0x38] sm:$0xff] %v247_v42  ;;  %v186_v51 = vadd.f32 %v514_v2, %v117_v44  ;;  %v187_v52 = vadd.f32 %v514_v2, %v118_v45  ;;  %v122_v53 = vmul.f32 %v512_v1, %v53_v41  ;;  %v65_v31 = vld [vmem:[#allocation2 + $0xd8] sm:$0xff]  ;;  %v66_v36 = vld [vmem:[#allocation2 + $0xe0] sm:$0xff] }
  0x32   :  { %v248_v55 = vmax.f32 %v184_v46, 0.0  ;;  %v188_v56 = vadd.f32 %v514_v2, %v119_v47  ;;  %v189_v57 = vadd.f32 %v514_v2, %v120_v48  ;;  %v190_v58 = vadd.f32 %v514_v2, %v121_v49  ;;  %v67_v37 = vld [vmem:[#allocation2 + $0xe8] sm:$0xff]  ;;  %v68_v38 = vld [vmem:[#allocation2 + $0xf0] sm:$0xff]  ;;  %v69_v43 = vld [vmem:[#allocation2 + $0xf8] sm:$0xff] }
  0x33   :  { %v249_v62 = vmax.f32 %v185_v50, 0.0  ;;  %v250_v63 = vmax.f32 %v186_v51, 0.0  ;;  %v251_v0 = vmax.f32 %v187_v52, 0.0  ;;  %v191_v3 = vadd.f32 %v514_v2, %v122_v53 }
  0x34   :  { %312 = vst [vmem:[#allocation7 + $0x40] sm:$0xff] %v248_v55  ;;  %v252_v7 = vmax.f32 %v188_v56, 0.0  ;;  %v253_v8 = vmax.f32 %v189_v57, 0.0  ;;  %v254_v9 = vmax.f32 %v190_v58, 0.0  ;;  %v123_v10 = vmul.f32 %v512_v1, %v54_v54  ;;  %v70_v56 = vld [vmem:[#allocation2 + $0x100] sm:$0xff] }
  0x35   :  { %313 = vst [vmem:[#allocation7 + $0x48] sm:$0xff] %v249_v62  ;;  %314 = vst [vmem:[#allocation7 + $0x50] sm:$0xff] %v250_v63  ;;  %v255_v12 = vmax.f32 %v191_v3, 0.0  ;;  %v124_v13 = vmul.f32 %v512_v1, %v55_v59  ;;  %v125_v14 = vmul.f32 %v512_v1, %v56_v60  ;;  %v126_v15 = vmul.f32 %v512_v1, %v57_v61  ;;  %v71_v61 = vld [vmem:[#allocation2 + $0x108] sm:$0xff]  ;;  %v72_v62 = vld [vmem:[#allocation2 + $0x110] sm:$0xff] }
  0x36   :  { %315 = vst [vmem:[#allocation7 + $0x58] sm:$0xff] %v251_v0  ;;  %316 = vst [vmem:[#allocation7 + $0x60] sm:$0xff] %v252_v7  ;;  %v192_v16 = vadd.f32 %v514_v2, %v123_v10  ;;  %v127_v17 = vmul.f32 %v512_v1, %v58_v4  ;;  %v128_v18 = vmul.f32 %v512_v1, %v59_v5  ;;  %v73_v63 = vld [vmem:[#allocation2 + $0x118] sm:$0xff]  ;;  %v75_v7 = vld [vmem:[#allocation2 + $0x128] sm:$0xff] }
  0x37   :  { %317 = vst [vmem:[#allocation7 + $0x68] sm:$0xff] %v253_v8  ;;  %318 = vst [vmem:[#allocation7 + $0x70] sm:$0xff] %v254_v9  ;;  %v129_v19 = vmul.f32 %v512_v1, %v60_v6  ;;  %v193_v20 = vadd.f32 %v514_v2, %v124_v13  ;;  %v194_v21 = vadd.f32 %v514_v2, %v125_v14  ;;  %v74_v6 = vld [vmem:[#allocation2 + $0x120] sm:$0xff]  ;;  %v76_v8 = vld [vmem:[#allocation2 + $0x130] sm:$0xff] }
  0x38   :  { %319 = vst [vmem:[#allocation7 + $0x78] sm:$0xff] %v255_v12  ;;  %v195_v22 = vadd.f32 %v514_v2, %v126_v15  ;;  %v130_v23 = vmul.f32 %v512_v1, %v61_v11  ;;  %v256_v25 = vmax.f32 %v192_v16, 0.0  ;;  %v196_v26 = vadd.f32 %v514_v2, %v127_v17  ;;  %v77_v13 = vld [vmem:[#allocation2 + $0x138] sm:$0xff] }
  0x39   :  { %v197_v27 = vadd.f32 %v514_v2, %v128_v18  ;;  %v198_v28 = vadd.f32 %v514_v2, %v129_v19  ;;  %v257_v32 = vmax.f32 %v193_v20, 0.0  ;;  %v258_v33 = vmax.f32 %v194_v21, 0.0 }
  0x3a   :  { %v259_v34 = vmax.f32 %v195_v22, 0.0  ;;  %v199_v35 = vadd.f32 %v514_v2, %v130_v23  ;;  %320 = vst [vmem:[#allocation7 + $0x80] sm:$0xff] %v256_v25  ;;  %v260_v39 = vmax.f32 %v196_v26, 0.0  ;;  %v131_v42 = vmul.f32 %v512_v1, %v62_v24  ;;  %v78_v26 = vld [vmem:[#allocation2 + $0x140] sm:$0xff] }
  0x3b   :  { %v261_v40 = vmax.f32 %v197_v27, 0.0  ;;  %v262_v41 = vmax.f32 %v198_v28, 0.0  ;;  %321 = vst [vmem:[#allocation7 + $0x88] sm:$0xff] %v257_v32  ;;  %322 = vst [vmem:[#allocation7 + $0x90] sm:$0xff] %v258_v33  ;;  %v132_v45 = vmul.f32 %v512_v1, %v63_v29  ;;  %v133_v46 = vmul.f32 %v512_v1, %v64_v30  ;;  %v80_v32 = vld [vmem:[#allocation2 + $0x150] sm:$0xff]  ;;  %v81_v33 = vld [vmem:[#allocation2 + $0x158] sm:$0xff] }
  0x3c   :  { %323 = vst [vmem:[#allocation7 + $0x98] sm:$0xff] %v259_v34  ;;  %v263_v44 = vmax.f32 %v199_v35, 0.0  ;;  %v134_v47 = vmul.f32 %v512_v1, %v65_v31  ;;  %324 = vst [vmem:[#allocation7 + $0xa0] sm:$0xff] %v260_v39  ;;  %v200_v48 = vadd.f32 %v514_v2, %v131_v42  ;;  %v135_v49 = vmul.f32 %v512_v1, %v66_v36  ;;  %v79_v31 = vld [vmem:[#allocation2 + $0x148] sm:$0xff] }
  0x3d   :  { %325 = vst [vmem:[#allocation7 + $0xa8] sm:$0xff] %v261_v40  ;;  %326 = vst [vmem:[#allocation7 + $0xb0] sm:$0xff] %v262_v41  ;;  %v136_v50 = vmul.f32 %v512_v1, %v67_v37  ;;  %v137_v51 = vmul.f32 %v512_v1, %v68_v38  ;;  %v201_v52 = vadd.f32 %v514_v2, %v132_v45  ;;  %v82_v38 = vld [vmem:[#allocation2 + $0x160] sm:$0xff]  ;;  %v83_v39 = vld [vmem:[#allocation2 + $0x168] sm:$0xff] }
  0x3e   :  { %327 = vst [vmem:[#allocation7 + $0xb8] sm:$0xff] %v263_v44  ;;  %v202_v53 = vadd.f32 %v514_v2, %v133_v46  ;;  %v203_v54 = vadd.f32 %v514_v2, %v134_v47  ;;  %v138_v55 = vmul.f32 %v512_v1, %v69_v43  ;;  %v264_v57 = vmax.f32 %v200_v48, 0.0  ;;  %v84_v40 = vld [vmem:[#allocation2 + $0x170] sm:$0xff]  ;;  %v85_v45 = vld [vmem:[#allocation2 + $0x178] sm:$0xff] }
  0x3f   :  { %v204_v58 = vadd.f32 %v514_v2, %v135_v49  ;;  %v205_v59 = vadd.f32 %v514_v2, %v136_v50  ;;  %v206_v60 = vadd.f32 %v514_v2, %v137_v51  ;;  %v265_v0 = vmax.f32 %v201_v52, 0.0 }
  0x40   :  { %v266_v3 = vmax.f32 %v202_v53, 0.0  ;;  %v267_v4 = vmax.f32 %v203_v54, 0.0  ;;  %v207_v5 = vadd.f32 %v514_v2, %v138_v55  ;;  %328 = vst [vmem:[#allocation7 + $0xc0] sm:$0xff] %v264_v57  ;;  %v139_v12 = vmul.f32 %v512_v1, %v70_v56 }
  0x41   :  { %v268_v9 = vmax.f32 %v204_v58, 0.0  ;;  %v269_v10 = vmax.f32 %v205_v59, 0.0  ;;  %v270_v11 = vmax.f32 %v206_v60, 0.0  ;;  %329 = vst [vmem:[#allocation7 + $0xc8] sm:$0xff] %v265_v0  ;;  %v140_v15 = vmul.f32 %v512_v1, %v71_v61  ;;  %v86_v58 = vld [vmem:[#allocation2 + $0x180] sm:$0xff]  ;;  %v88_v0 = vld [vmem:[#allocation2 + $0x190] sm:$0xff] }
  0x42   :  { %330 = vst [vmem:[#allocation7 + $0xd0] sm:$0xff] %v266_v3  ;;  %331 = vst [vmem:[#allocation7 + $0xd8] sm:$0xff] %v267_v4  ;;  %v271_v14 = vmax.f32 %v207_v5, 0.0  ;;  %v141_v16 = vmul.f32 %v512_v1, %v72_v62  ;;  %v142_v17 = vmul.f32 %v512_v1, %v73_v63  ;;  %v208_v18 = vadd.f32 %v514_v2, %v139_v12  ;;  %v87_v63 = vld [vmem:[#allocation2 + $0x188] sm:$0xff]  ;;  %v89_v3 = vld [vmem:[#allocation2 + $0x198] sm:$0xff] }
  0x43   :  { %332 = vst [vmem:[#allocation7 + $0xe0] sm:$0xff] %v268_v9  ;;  %333 = vst [vmem:[#allocation7 + $0xe8] sm:$0xff] %v269_v10  ;;  %v143_v19 = vmul.f32 %v512_v1, %v74_v6  ;;  %v144_v20 = vmul.f32 %v512_v1, %v75_v7  ;;  %v145_v21 = vmul.f32 %v512_v1, %v76_v8  ;;  %v90_v8 = vld [vmem:[#allocation2 + $0x1a0] sm:$0xff]  ;;  %v91_v9 = vld [vmem:[#allocation2 + $0x1a8] sm:$0xff] }
  0x44   :  { %334 = vst [vmem:[#allocation7 + $0xf0] sm:$0xff] %v270_v11  ;;  %335 = vst [vmem:[#allocation7 + $0xf8] sm:$0xff] %v271_v14  ;;  %v209_v22 = vadd.f32 %v514_v2, %v140_v15  ;;  %v210_v23 = vadd.f32 %v514_v2, %v141_v16  ;;  %v211_v24 = vadd.f32 %v514_v2, %v142_v17  ;;  %v272_v27 = vmax.f32 %v208_v18, 0.0  ;;  %v92_v10 = vld [vmem:[#allocation2 + $0x1b0] sm:$0xff]  ;;  %v93_v15 = vld [vmem:[#allocation2 + $0x1b8] sm:$0xff] }
  0x45   :  { %v146_v25 = vmul.f32 %v512_v1, %v77_v13  ;;  %v212_v28 = vadd.f32 %v514_v2, %v143_v19  ;;  %v213_v29 = vadd.f32 %v514_v2, %v144_v20  ;;  %v214_v30 = vadd.f32 %v514_v2, %v145_v21 }
  0x46   :  { %v273_v34 = vmax.f32 %v209_v22, 0.0  ;;  %v274_v35 = vmax.f32 %v210_v23, 0.0  ;;  %v275_v36 = vmax.f32 %v211_v24, 0.0  ;;  %336 = vst [vmem:[#allocation7 + $0x100] sm:$0xff] %v272_v27  ;;  %v147_v44 = vmul.f32 %v512_v1, %v78_v26 }
  0x47   :  { %v215_v37 = vadd.f32 %v514_v2, %v146_v25  ;;  %v276_v41 = vmax.f32 %v212_v28, 0.0  ;;  %v277_v42 = vmax.f32 %v213_v29, 0.0  ;;  %v278_v43 = vmax.f32 %v214_v30, 0.0  ;;  %v94_v28 = vld [vmem:[#allocation2 + $0x1c0] sm:$0xff] }
  0x48   :  { %337 = vst [vmem:[#allocation7 + $0x108] sm:$0xff] %v273_v34  ;;  %338 = vst [vmem:[#allocation7 + $0x110] sm:$0xff] %v274_v35  ;;  %v148_v47 = vmul.f32 %v512_v1, %v79_v31  ;;  %v149_v48 = vmul.f32 %v512_v1, %v80_v32  ;;  %v150_v49 = vmul.f32 %v512_v1, %v81_v33  ;;  %v95_v33 = vld [vmem:[#allocation2 + $0x1c8] sm:$0xff]  ;;  %v96_v34 = vld [vmem:[#allocation2 + $0x1d0] sm:$0xff] }
  0x49   :  { %339 = vst [vmem:[#allocation7 + $0x118] sm:$0xff] %v275_v36  ;;  %v279_v46 = vmax.f32 %v215_v37, 0.0  ;;  %340 = vst [vmem:[#allocation7 + $0x120] sm:$0xff] %v276_v41  ;;  %v216_v50 = vadd.f32 %v514_v2, %v147_v44  ;;  %v151_v51 = vmul.f32 %v512_v1, %v82_v38  ;;  %v152_v52 = vmul.f32 %v512_v1, %v83_v39  ;;  %v97_v35 = vld [vmem:[#allocation2 + $0x1d8] sm:$0xff]  ;;  %v99_v41 = vld [vmem:[#allocation2 + $0x1e8] sm:$0xff] }
  0x4a   :  { %341 = vst [vmem:[#allocation7 + $0x128] sm:$0xff] %v277_v42  ;;  %342 = vst [vmem:[#allocation7 + $0x130] sm:$0xff] %v278_v43  ;;  %v153_v53 = vmul.f32 %v512_v1, %v84_v40  ;;  %v217_v54 = vadd.f32 %v514_v2, %v148_v47  ;;  %v218_v55 = vadd.f32 %v514_v2, %v149_v48  ;;  %v98_v40 = vld [vmem:[#allocation2 + $0x1e0] sm:$0xff]  ;;  %v100_v42 = vld [vmem:[#allocation2 + $0x1f0] sm:$0xff] }
  0x4b   :  { %343 = vst [vmem:[#allocation7 + $0x138] sm:$0xff] %v279_v46  ;;  %v219_v56 = vadd.f32 %v514_v2, %v150_v49  ;;  %v154_v57 = vmul.f32 %v512_v1, %v85_v45  ;;  %v280_v59 = vmax.f32 %v216_v50, 0.0  ;;  %v220_v60 = vadd.f32 %v514_v2, %v151_v51  ;;  %v101_v47 = vld [vmem:[#allocation2 + $0x1f8] sm:$0xff] }
  0x4c   :  { %v221_v61 = vadd.f32 %v514_v2, %v152_v52  ;;  %v222_v62 = vadd.f32 %v514_v2, %v153_v53  ;;  %v281_v4 = vmax.f32 %v217_v54, 0.0  ;;  %v282_v5 = vmax.f32 %v218_v55, 0.0 }
  0x4d   :  { %v283_v6 = vmax.f32 %v219_v56, 0.0  ;;  %v223_v7 = vadd.f32 %v514_v2, %v154_v57  ;;  %344 = vst [vmem:[#allocation7 + $0x140] sm:$0xff] %v280_v59  ;;  %v284_v11 = vmax.f32 %v220_v60, 0.0  ;;  %v155_v14 = vmul.f32 %v512_v1, %v86_v58 }
  0x4e   :  { %v285_v12 = vmax.f32 %v221_v61, 0.0  ;;  %v286_v13 = vmax.f32 %v222_v62, 0.0  ;;  %345 = vst [vmem:[#allocation7 + $0x148] sm:$0xff] %v281_v4  ;;  %346 = vst [vmem:[#allocation7 + $0x150] sm:$0xff] %v282_v5  ;;  %v156_v17 = vmul.f32 %v512_v1, %v87_v63  ;;  %v157_v18 = vmul.f32 %v512_v1, %v88_v0 }
  0x4f   :  { %347 = vst [vmem:[#allocation7 + $0x158] sm:$0xff] %v283_v6  ;;  %v287_v16 = vmax.f32 %v223_v7, 0.0  ;;  %v158_v19 = vmul.f32 %v512_v1, %v89_v3  ;;  %348 = vst [vmem:[#allocation7 + $0x160] sm:$0xff] %v284_v11  ;;  %v224_v20 = vadd.f32 %v514_v2, %v155_v14  ;;  %v159_v21 = vmul.f32 %v512_v1, %v90_v8 }
  0x50   :  { %349 = vst [vmem:[#allocation7 + $0x168] sm:$0xff] %v285_v12  ;;  %350 = vst [vmem:[#allocation7 + $0x170] sm:$0xff] %v286_v13  ;;  %v160_v22 = vmul.f32 %v512_v1, %v91_v9  ;;  %v161_v23 = vmul.f32 %v512_v1, %v92_v10  ;;  %v225_v24 = vadd.f32 %v514_v2, %v156_v17 }
  0x51   :  { %351 = vst [vmem:[#allocation7 + $0x178] sm:$0xff] %v287_v16  ;;  %v226_v25 = vadd.f32 %v514_v2, %v157_v18  ;;  %v227_v26 = vadd.f32 %v514_v2, %v158_v19  ;;  %v162_v27 = vmul.f32 %v512_v1, %v93_v15  ;;  %v288_v29 = vmax.f32 %v224_v20, 0.0 }
  0x52   :  { %v228_v30 = vadd.f32 %v514_v2, %v159_v21  ;;  %v229_v31 = vadd.f32 %v514_v2, %v160_v22  ;;  %v230_v32 = vadd.f32 %v514_v2, %v161_v23  ;;  %v289_v36 = vmax.f32 %v225_v24, 0.0 }
  0x53   :  { %v290_v37 = vmax.f32 %v226_v25, 0.0  ;;  %v291_v38 = vmax.f32 %v227_v26, 0.0  ;;  %v231_v39 = vadd.f32 %v514_v2, %v162_v27  ;;  %352 = vst [vmem:[#allocation7 + $0x180] sm:$0xff] %v288_v29  ;;  %v163_v46 = vmul.f32 %v512_v1, %v94_v28 }
  0x54   :  { %v292_v43 = vmax.f32 %v228_v30, 0.0  ;;  %v293_v44 = vmax.f32 %v229_v31, 0.0  ;;  %v294_v45 = vmax.f32 %v230_v32, 0.0  ;;  %353 = vst [vmem:[#allocation7 + $0x188] sm:$0xff] %v289_v36  ;;  %v164_v49 = vmul.f32 %v512_v1, %v95_v33 }
  0x55   :  { %354 = vst [vmem:[#allocation7 + $0x190] sm:$0xff] %v290_v37  ;;  %355 = vst [vmem:[#allocation7 + $0x198] sm:$0xff] %v291_v38  ;;  %v295_v48 = vmax.f32 %v231_v39, 0.0  ;;  %v165_v50 = vmul.f32 %v512_v1, %v96_v34  ;;  %v166_v51 = vmul.f32 %v512_v1, %v97_v35  ;;  %v232_v52 = vadd.f32 %v514_v2, %v163_v46 }
  0x56   :  { %356 = vst [vmem:[#allocation7 + $0x1a0] sm:$0xff] %v292_v43  ;;  %357 = vst [vmem:[#allocation7 + $0x1a8] sm:$0xff] %v293_v44  ;;  %v167_v53 = vmul.f32 %v512_v1, %v98_v40  ;;  %v168_v54 = vmul.f32 %v512_v1, %v99_v41  ;;  %v169_v55 = vmul.f32 %v512_v1, %v100_v42 }
  0x57   :  { %358 = vst [vmem:[#allocation7 + $0x1b0] sm:$0xff] %v294_v45  ;;  %359 = vst [vmem:[#allocation7 + $0x1b8] sm:$0xff] %v295_v48  ;;  %v233_v56 = vadd.f32 %v514_v2, %v164_v49  ;;  %v234_v57 = vadd.f32 %v514_v2, %v165_v50  ;;  %v235_v58 = vadd.f32 %v514_v2, %v166_v51  ;;  %v296_v60 = vmax.f32 %v232_v52, 0.0 }
  0x58   :  { %v170_v59 = vmul.f32 %v512_v1, %v101_v47  ;;  %v236_v61 = vadd.f32 %v514_v2, %v167_v53  ;;  %v237_v62 = vadd.f32 %v514_v2, %v168_v54  ;;  %v238_v63 = vadd.f32 %v514_v2, %v169_v55 }
  0x59   :  { %v297_v0 = vmax.f32 %v233_v56, 0.0  ;;  %v298_v3 = vmax.f32 %v234_v57, 0.0  ;;  %v299_v4 = vmax.f32 %v235_v58, 0.0  ;;  %360 = vst [vmem:[#allocation7 + $0x1c0] sm:$0xff] %v296_v60 }
  0x5a   :  { %v239_v5 = vadd.f32 %v514_v2, %v170_v59  ;;  %v300_v6 = vmax.f32 %v236_v61, 0.0  ;;  %v301_v7 = vmax.f32 %v237_v62, 0.0  ;;  %v302_v8 = vmax.f32 %v238_v63, 0.0 }
  0x5b   :  { %361 = vst [vmem:[#allocation7 + $0x1c8] sm:$0xff] %v297_v0  ;;  %362 = vst [vmem:[#allocation7 + $0x1d0] sm:$0xff] %v298_v3 }
  0x5c   :  { %363 = vst [vmem:[#allocation7 + $0x1d8] sm:$0xff] %v299_v4  ;;  %v303_v1 = vmax.f32 %v239_v5, 0.0  ;;  %364 = vst [vmem:[#allocation7 + $0x1e0] sm:$0xff] %v300_v6 }
  0x5d   :  { %365 = vst [vmem:[#allocation7 + $0x1e8] sm:$0xff] %v301_v7  ;;  %366 = vst [vmem:[#allocation7 + $0x1f0] sm:$0xff] %v302_v8 }
  0x5e   :  { %367 = vst [vmem:[#allocation7 + $0x1f8] sm:$0xff] %v303_v1 }
  0x5f   :  { %448 = shalt.err (!%p445_p6)
}
  0x60   :  { %s449_s10 = scalar_lea.hbm %s661_s2, 8192 }
  0x61   :  { %p450_p7 = scmp.ne.s32.totalorder %s661_s2, %s449_s10  ;;  %p453_p8 = scmp.lt.u32.totalorder %s449_s10, %s661_s2 }
  0x63   :  { %p455_p9 = pnand %p453_p8, %p450_p7 }
  0x65   :  { %458 = shalt.err (!%p455_p9)
}
  0x66   :  { %379 = dma.vmem_to_hbm [thread:$0]  %s374_s6, 8192, %s661_s2, [#allocation4], %s466_s19, %s466_s19, %s467_s20  }
  0x67   :  { %463 = dma.done.wait [#allocation4], 8192  }
  0x68   :  { %464 = vsyncadd [#allocation4], 4294959104 }
  0x69   :  { %383 = vsyncpa [#allocation3], 1 }
  0x6a   :  { %384 = vsyncpa [#allocation6], 1 }
  0x6b   :  { %385 = vsyncpa [#allocation4], 1 }

// kernel: aspp_forward.10
= control target key start
LH: loop header
LB: loop body
LE: loop exit
PB: predicated region body
PF: predicated region fallthrough
CT: control target
= control target key end

     0   :  { %14 = vsyncpa [#allocation3], 0  ;;  %s5456_s0 = inlined_call_operand.hbm [shape: f32[512,128], index: 0, kind: input, shape index: {}]   ;;  %s5457_s1 = inlined_call_operand.hbm [shape: f32[512,128], index: 1, kind: input, shape index: {}]   ;;  %s5458_s2 = inlined_call_operand.hbm [shape: f32[512,128], index: 2, kind: input, shape index: {}]   ;;  %s5459_s3 = inlined_call_operand.hbm [shape: f32[512,128], index: 3, kind: input, shape index: {}]   ;;  %s5460_s4 = inlined_call_operand.hbm [shape: f32[8,128], index: 4, kind: input, shape index: {}]   ;;  %s5461_s5 = inlined_call_operand.hbm [shape: bf16[512,128], index: 5, kind: input, shape index: {}]   ;;  %s5462_s6 = inlined_call_operand.hbm [shape: f32[512,128], index: 6, kind: output, shape index: {0}]   ;;  %s5463_s7 = inlined_call_operand.hbm [shape: f32[8,128], index: 7, kind: output, shape index: {1}]   ;;  %s5464_s8 = inlined_call_operand.hbm [shape: f32[8,128], index: 8, kind: output, shape index: {2}]  }
   0x1   :  { %15 = vsyncpa [#allocation6], 0 }
   0x2   :  { %16 = vsyncpa [#allocation9], 0 }
   0x3   :  { %17 = vsyncpa [#allocation12], 0 }
   0x4   :  { %18 = vsyncpa [#allocation4], 0 }
   0x5   :  { %19 = vsyncpa [#allocation15], 0  ;;  %s4710_s27 = smov [#allocation5]   ;;  %s4711_s29 = smov [#allocation8]  }
   0x6   :  { %s37_s28 = sshll.u32 %s4710_s27, 4  ;;  %s61_s30 = sshll.u32 %s4711_s29, 4  ;;  %s38_s28 = int_to_ptr.vmem [resolvable:$true] %s37_s28  ;;  %s4768_s30 = int_to_ptr.vmem [resolvable:$true] %s61_s30 }
   0x7   :  { %s4500_s11 = scalar_lea.hbm %s5457_s1, 8192 }
   0x8   :  { %p4501_p0 = scmp.ne.s32.totalorder %s5457_s1, %s4500_s11  ;;  %p4504_p1 = scmp.lt.u32.totalorder %s4500_s11, %s5457_s1 }
   0xa   :  { %p4506_p2 = pnand %p4504_p1, %p4501_p0 }
   0xc   :  { %4509 = shalt.err (!%p4506_p2)
}
   0xd   :  { %s4510_s16 = scalar_lea.vmem %s38_s28, 8192  ;;  %p4515_p4 = scmp.lt.s32.totalorder %s38_s28, %s38_s28 }
   0xe   :  { %p4511_p3 = scmp.ne.s32.totalorder %s38_s28, %s4510_s16  ;;  %p4516_p5 = scmp.lt.s32.totalorder %s4510_s16, %s4510_s16 }
  0x10   :  { %p4517_p6 = por %p4516_p5, %p4515_p4 }
  0x12   :  { %p4518_p7 = pnand %p4517_p6, %p4511_p3 }
  0x14   :  { %4521 = shalt.err (!%p4518_p7)
}
  0x15   :  { %s4712_s17 = smov 128   ;;  %s4713_s18 = smov 8  }
  0x16   :  { %43 = dma.hbm_to_vmem [thread:$0]  %s5457_s1, 8192, %s38_s28, [#allocation6], %s4712_s17, %s4712_s17, %s4713_s18  }
  0x17   :  { %s4522_s23 = scalar_lea.hbm %s5459_s3, 8192 }
  0x18   :  { %p4523_p8 = scmp.ne.s32.totalorder %s5459_s3, %s4522_s23  ;;  %p4526_p9 = scmp.lt.u32.totalorder %s4522_s23, %s5459_s3 }
  0x1a   :  { %p4528_p10 = pnand %p4526_p9, %p4523_p8 }
  0x1c   :  { %4531 = shalt.err (!%p4528_p10)
}
  0x1d   :  { %s4532_s29 = scalar_lea.vmem %s4768_s30, 8192  ;;  %p4537_p12 = scmp.lt.s32.totalorder %s4768_s30, %s4768_s30 }
  0x1e   :  { %p4533_p11 = scmp.ne.s32.totalorder %s4768_s30, %s4532_s29  ;;  %p4538_p13 = scmp.lt.s32.totalorder %s4532_s29, %s4532_s29 }
  0x20   :  { %p4539_p0 = por %p4538_p13, %p4537_p12 }
  0x22   :  { %p4540_p1 = pnand %p4539_p0, %p4533_p11 }
  0x24   :  { %4543 = shalt.err (!%p4540_p1)
}
  0x25   :  { %67 = dma.hbm_to_vmem [thread:$0]  %s5459_s3, 8192, %s4768_s30, [#allocation9], %s4712_s17, %s4712_s17, %s4713_s18  }
  0x26   :  { %s4714_s9 = smov [#allocation2]   ;;  %s4715_s11 = smov [#allocation7]  }
  0x27   :  { %s25_s10 = sshll.u32 %s4714_s9, 4  ;;  %s49_s12 = sshll.u32 %s4715_s11, 4  ;;  %s26_s10 = int_to_ptr.vmem [resolvable:$true] %s25_s10  ;;  %s4805_s12 = int_to_ptr.vmem [resolvable:$true] %s49_s12 }
  0x28   :  { %s4544_s15 = scalar_lea.hbm %s5456_s0, 8192 }
  0x29   :  { %p4545_p2 = scmp.ne.s32.totalorder %s5456_s0, %s4544_s15  ;;  %p4548_p3 = scmp.lt.u32.totalorder %s4544_s15, %s5456_s0 }
  0x2b   :  { %p4550_p4 = pnand %p4548_p3, %p4545_p2 }
  0x2d   :  { %4553 = shalt.err (!%p4550_p4)
}
  0x2e   :  { %s4554_s3 = scalar_lea.vmem %s26_s10, 8192  ;;  %p4559_p6 = scmp.lt.s32.totalorder %s26_s10, %s26_s10 }
  0x2f   :  { %p4555_p5 = scmp.ne.s32.totalorder %s26_s10, %s4554_s3  ;;  %p4560_p7 = scmp.lt.s32.totalorder %s4554_s3, %s4554_s3 }
  0x31   :  { %p4561_p8 = por %p4560_p7, %p4559_p6 }
  0x33   :  { %p4562_p9 = pnand %p4561_p8, %p4555_p5 }
  0x35   :  { %4565 = shalt.err (!%p4562_p9)
}
  0x36   :  { %31 = dma.hbm_to_vmem [thread:$0]  %s5456_s0, 8192, %s26_s10, [#allocation3], %s4712_s17, %s4712_s17, %s4713_s18  }
  0x37   :  { %s4566_s25 = scalar_lea.hbm %s5458_s2, 8192 }
  0x38   :  { %p4567_p10 = scmp.ne.s32.totalorder %s5458_s2, %s4566_s25  ;;  %p4570_p11 = scmp.lt.u32.totalorder %s4566_s25, %s5458_s2 }
  0x3a   :  { %p4572_p12 = pnand %p4570_p11, %p4567_p10 }
  0x3c   :  { %4575 = shalt.err (!%p4572_p12)
}
  0x3d   :  { %s4576_s28 = scalar_lea.vmem %s4805_s12, 8192  ;;  %p4581_p0 = scmp.lt.s32.totalorder %s4805_s12, %s4805_s12 }
  0x3e   :  { %p4577_p13 = scmp.ne.s32.totalorder %s4805_s12, %s4576_s28  ;;  %p4582_p1 = scmp.lt.s32.totalorder %s4576_s28, %s4576_s28 }
  0x40   :  { %p4583_p2 = por %p4582_p1, %p4581_p0 }
  0x42   :  { %p4584_p3 = pnand %p4583_p2, %p4577_p13 }
  0x44   :  { %4587 = shalt.err (!%p4584_p3)
}
  0x45   :  { %55 = dma.hbm_to_vmem [thread:$0]  %s5458_s2, 8192, %s4805_s12, [#allocation6], %s4712_s17, %s4712_s17, %s4713_s18  }
  0x46   :  { %s4716_s10 = smov [#allocation10]   ;;  %s4717_s13 = smov [#allocation11]  }
  0x47   :  { %s74_s11 = sshll.u32 %s4716_s10, 4  ;;  %s83_s14 = sshll.u32 %s4717_s13, 4  ;;  %s75_s11 = int_to_ptr.vmem [resolvable:$true] %s74_s11  ;;  %s4842_s14 = int_to_ptr.vmem [resolvable:$true] %s83_s14 }
  0x48   :  { %s4588_s19 = scalar_lea.hbm %s5460_s4, 128 }
  0x49   :  { %p4589_p4 = scmp.ne.s32.totalorder %s5460_s4, %s4588_s19  ;;  %p4592_p5 = scmp.lt.u32.totalorder %s4588_s19, %s5460_s4 }
  0x4b   :  { %p4594_p6 = pnand %p4592_p5, %p4589_p4 }
  0x4d   :  { %4597 = shalt.err (!%p4594_p6)
}
  0x4e   :  { %s4598_s2 = scalar_lea.vmem %s75_s11, 128  ;;  %p4603_p8 = scmp.lt.s32.totalorder %s75_s11, %s75_s11 }
  0x4f   :  { %p4599_p7 = scmp.ne.s32.totalorder %s75_s11, %s4598_s2  ;;  %p4604_p9 = scmp.lt.s32.totalorder %s4598_s2, %s4598_s2 }
  0x51   :  { %p4605_p10 = por %p4604_p9, %p4603_p8 }
  0x53   :  { %p4606_p11 = pnand %p4605_p10, %p4599_p7 }
  0x55   :  { %4609 = shalt.err (!%p4606_p11)
}
  0x56   :  { %77 = dma.hbm_to_vmem [thread:$0]  %s5460_s4, 128, %s75_s11, [#allocation9]  }
  0x57   :  { %s4610_s25 = scalar_lea.hbm %s5461_s5, 4096 }
  0x58   :  { %p4611_p12 = scmp.ne.s32.totalorder %s5461_s5, %s4610_s25  ;;  %p4614_p13 = scmp.lt.u32.totalorder %s4610_s25, %s5461_s5 }
  0x5a   :  { %p4616_p0 = pnand %p4614_p13, %p4611_p12 }
  0x5c   :  { %4619 = shalt.err (!%p4616_p0)
}
  0x5d   :  { %s4620_s28 = scalar_lea.vmem %s4842_s14, 4096  ;;  %p4625_p2 = scmp.lt.s32.totalorder %s4842_s14, %s4842_s14 }
  0x5e   :  { %p4621_p1 = scmp.ne.s32.totalorder %s4842_s14, %s4620_s28  ;;  %p4626_p3 = scmp.lt.s32.totalorder %s4620_s28, %s4620_s28 }
  0x60   :  { %p4627_p4 = por %p4626_p3, %p4625_p2 }
  0x62   :  { %p4628_p5 = pnand %p4627_p4, %p4621_p1 }
  0x64   :  { %4631 = shalt.err (!%p4628_p5)
}
  0x65   :  { %s4718_s4 = smov 64   ;;  %s4719_s0 = smov 4  }
  0x66   :  { %89 = dma.hbm_to_vmem [thread:$0]  %s5461_s5, 4096, %s4842_s14, [#allocation12], %s4718_s4, %s4718_s4, %s4719_s0  }
  0x67   :  { %4698 = dma.done.wait [#allocation3], 8192  }
  0x68   :  { %4699 = vsyncadd [#allocation3], 4294959104 }
  0x69   :  { %4700 = dma.done.wait [#allocation6], 16384  }
  0x6a   :  { %4701 = vsyncadd [#allocation6], 4294950912 }
  0x6b   :  { %4702 = dma.done.wait [#allocation9], 8320  }
  0x6c   :  { %4703 = vsyncadd [#allocation9], 4294958976 }
  0x6d   :  { %4704 = dma.done.wait [#allocation12], 4096  }
  0x6e   :  { %4705 = vsyncadd [#allocation12], 4294963200  ;;  %v4460_v0 = vld [vmem:[#allocation11 + $0x40] sm:$0xff]   ;;  %v4462_v2 = vld [vmem:[#allocation11 + $0x48] sm:$0xff]   ;;  %s4720_s5 = smov [#allocation13]  }
  0x6f   :  { %v4461_v1 = vld [vmem:[#allocation11 + $0x80] sm:$0xff]   ;;  %3935 = vmatprep.subr.bf16.mxu1 %v4460_v0  ;;  %v4463_v3 = vld [vmem:[#allocation11 + $0x88] sm:$0xff]   ;;  %v4464_v4 = vld [vmem:[#allocation11 + $0x50] sm:$0xff]   ;;  %s3693_s11 = sshll.u32 %s4720_s5, 4  ;;  %s3694_s11 = int_to_ptr.vmem [resolvable:$true] %s3693_s11 }
  0x70   :  { %4095 = vmatprep.subr.bf16.mxu0 %v4461_v1  ;;  %3936 = vmatpush3.bf16.msra.mxu1 %v4460_v0  ;;  %v4465_v5 = vld [vmem:[#allocation11 + $0x90] sm:$0xff]   ;;  %v4466_v6 = vld [vmem:[#allocation11 + $0x58] sm:$0xff]   ;;  %v4468_v8 = vld [vmem:[#allocation11 + $0x60] sm:$0xff]   ;;  %s4632_s13 = scalar_lea.vmem %s3694_s11, 8192  ;;  %p4637_p7 = scmp.lt.s32.totalorder %s3694_s11, %s3694_s11 }
  0x71   :  { %4096 = vmatpush3.bf16.msra.mxu0 %v4461_v1  ;;  %3937 = vmatprep.subr.bf16.mxu1 %v4462_v2  ;;  %v4467_v7 = vld [vmem:[#allocation11 + $0x98] sm:$0xff]   ;;  %v4469_v9 = vld [vmem:[#allocation11 + $0xa0] sm:$0xff]   ;;  %v4470_v10 = vld [vmem:[#allocation11 + $0x68] sm:$0xff]   ;;  %p4633_p6 = scmp.ne.s32.totalorder %s3694_s11, %s4632_s13  ;;  %p4638_p8 = scmp.lt.s32.totalorder %s4632_s13, %s4632_s13 }
  0x72   :  { %4097 = vmatprep.subr.bf16.mxu0 %v4463_v3  ;;  %v4471_v11 = vld [vmem:[#allocation11 + $0xa8] sm:$0xff]   ;;  %v810_v12 = vld [vmem:[#allocation5] sm:$0xff]  ;;  %v811_v13 = vld [vmem:[#allocation5 + $0x8] sm:$0xff] }
  0x73   :  { %v4873_v14 = vld [vmem:[#allocation10 + $0x1] ss:$0 sm:$0xff]  ;;  %v4877_v17 = vld [vmem:[#allocation10 + $0x5] ss:$0 sm:$0xff]  ;;  %v1863_v19 = vld [vmem:[#allocation7 + $0x8] sm:$0xff]  ;;  %p4639_p9 = por %p4638_p8, %p4637_p7 }
  0x74   :  { %3938 = vmatpush3.bf16.msra.mxu1 %v4462_v2  ;;  %v879_v15 = vmul.f32 %v4873_v14, %v810_v12  ;;  %v880_v16 = vmul.f32 %v4873_v14, %v811_v13  ;;  %v1862_v18 = vld [vmem:[#allocation7] sm:$0xff]  ;;  %v4472_v20 = vld [vmem:[#allocation11 + $0x70] sm:$0xff]   ;;  %v812_v23 = vld [vmem:[#allocation5 + $0x10] sm:$0xff] }
  0x75   :  { %4098 = vmatpush3.bf16.msra.mxu0 %v4463_v3  ;;  %3939 = vmatprep.subr.bf16.mxu1 %v4464_v4  ;;  %v4879_v21 = vld [vmem:[#allocation10 + $0x2] ss:$0 sm:$0xff]  ;;  %v4881_v22 = vld [vmem:[#allocation10 + $0x6] ss:$0 sm:$0xff]  ;;  %v813_v28 = vld [vmem:[#allocation5 + $0x18] sm:$0xff]  ;;  %v881_v30 = vmul.f32 %v4873_v14, %v812_v23  ;;  %p4640_p10 = pnand %p4639_p9, %p4633_p6 }
  0x76   :  { %4099 = vmatprep.subr.bf16.mxu0 %v4465_v5  ;;  %v948_v24 = vadd.f32 %v4877_v17, %v879_v15  ;;  %v949_v25 = vadd.f32 %v4877_v17, %v880_v16  ;;  %v1931_v26 = vmul.f32 %v4879_v21, %v1862_v18  ;;  %v1932_v27 = vmul.f32 %v4879_v21, %v1863_v19  ;;  %v4473_v29 = vld [vmem:[#allocation11 + $0xb0] sm:$0xff]   ;;  %v1864_v32 = vld [vmem:[#allocation7 + $0x10] sm:$0xff]  ;;  %v814_v42 = vld [vmem:[#allocation5 + $0x20] sm:$0xff] }
  0x77   :  { %v882_v31 = vmul.f32 %v4873_v14, %v813_v28  ;;  %v1865_v33 = vld [vmem:[#allocation7 + $0x18] sm:$0xff]  ;;  %v950_v38 = vadd.f32 %v4877_v17, %v881_v30  ;;  %v1933_v40 = vmul.f32 %v4879_v21, %v1864_v32  ;;  %v815_v43 = vld [vmem:[#allocation5 + $0x28] sm:$0xff]  ;;  %v883_v47 = vmul.f32 %v4873_v14, %v814_v42  ;;  %v1866_v48 = vld [vmem:[#allocation7 + $0x20] sm:$0xff] }
  0x78   :  { %3940 = vmatpush3.bf16.msra.mxu1 %v4464_v4  ;;  %v1012_v34 = vmax.f32 %v948_v24, 0.0  ;;  %v1013_v35 = vmax.f32 %v949_v25, 0.0  ;;  %v2000_v36 = vadd.f32 %v4881_v22, %v1931_v26  ;;  %v2001_v37 = vadd.f32 %v4881_v22, %v1932_v27  ;;  %v4474_v49 = vld [vmem:[#allocation11 + $0x78] sm:$0xff]   ;;  %v1867_v54 = vld [vmem:[#allocation7 + $0x28] sm:$0xff]  ;;  %v816_v55 = vld [vmem:[#allocation5 + $0x30] sm:$0xff] }
  0x79   :  { %4100 = vmatpush3.bf16.msra.mxu0 %v4465_v5  ;;  %3941 = vmatprep.subr.bf16.mxu1 %v4466_v6  ;;  %v951_v39 = vadd.f32 %v4877_v17, %v882_v31  ;;  %v1934_v41 = vmul.f32 %v4879_v21, %v1865_v33  ;;  %v1014_v50 = vmax.f32 %v950_v38, 0.0  ;;  %v2002_v52 = vadd.f32 %v4881_v22, %v1933_v40  ;;  %v4475_v56 = vld [vmem:[#allocation11 + $0xb8] sm:$0xff]   ;;  %v817_v60 = vld [vmem:[#allocation5 + $0x38] sm:$0xff]  ;;  %v1868_v1 = vld [vmem:[#allocation7 + $0x30] sm:$0xff] }
  0x7a   :  { %4101 = vmatprep.subr.bf16.mxu0 %v4467_v7  ;;  %v1140_v44 = vpack.c.bf16 %v1013_v35, %v1012_v34  ;;  %v2064_v45 = vmax.f32 %v2000_v36, 0.0  ;;  %v2065_v46 = vmax.f32 %v2001_v37, 0.0  ;;  %v884_v58 = vmul.f32 %v4873_v14, %v815_v43  ;;  %v1869_v2 = vld [vmem:[#allocation7 + $0x38] sm:$0xff]  ;;  %v4477_v12 = vld [vmem:[#allocation11 + $0xc0] sm:$0xff]   ;;  %v1870_v26 = vld [vmem:[#allocation7 + $0x40] sm:$0xff] }
  0x7b   :  { %v1015_v51 = vmax.f32 %v951_v39, 0.0  ;;  %v2003_v53 = vadd.f32 %v4881_v22, %v1934_v41  ;;  %v952_v59 = vadd.f32 %v4877_v17, %v883_v47  ;;  %v2066_v62 = vmax.f32 %v2002_v52, 0.0  ;;  %v819_v19 = vld [vmem:[#allocation5 + $0x48] sm:$0xff]  ;;  %v820_v36 = vld [vmem:[#allocation5 + $0x50] sm:$0xff]  ;;  %v821_v41 = vld [vmem:[#allocation5 + $0x58] sm:$0xff] }
  0x7c   :  { %3942 = vmatpush3.bf16.msra.mxu1 %v4466_v6  ;;  %3951 = vmatprep.mubr.bf16.mxu1 %v1140_v44  ;;  %v2192_v57 = vpack.c.bf16 %v2065_v46, %v2064_v45  ;;  %v1935_v0 = vmul.f32 %v4879_v21, %v1866_v48  ;;  %v953_v3 = vadd.f32 %v4877_v17, %v884_v58  ;;  %v1871_v27 = vld [vmem:[#allocation7 + $0x48] sm:$0xff]  ;;  %v4478_v42 = vld [vmem:[#allocation11 + $0x8] sm:$0xff]   ;;  %v1873_v48 = vld [vmem:[#allocation7 + $0x58] sm:$0xff] }
  0x7d   :  { %4102 = vmatpush3.bf16.msra.mxu0 %v4467_v7  ;;  %3943 = vmatprep.subr.bf16.mxu1 %v4468_v8  ;;  %v1141_v61 = vpack.c.bf16 %v1015_v51, %v1014_v50  ;;  %v2067_v63 = vmax.f32 %v2003_v53, 0.0  ;;  %v1016_v4 = vmax.f32 %v952_v59, 0.0  ;;  %v1936_v5 = vmul.f32 %v4879_v21, %v1867_v54  ;;  %v818_v7 = vld [vmem:[#allocation5 + $0x40] sm:$0xff]  ;;  %v1872_v43 = vld [vmem:[#allocation7 + $0x50] sm:$0xff]  ;;  %v823_v54 = vld [vmem:[#allocation5 + $0x68] sm:$0xff] }
  0x7e   :  { %4103 = vmatprep.subr.bf16.mxu0 %v4469_v9  ;;  %4111 = vmatprep.mubr.bf16.mxu0 %v2192_v57  ;;  %v885_v6 = vmul.f32 %v4873_v14, %v816_v55  ;;  %v1017_v13 = vmax.f32 %v953_v3, 0.0  ;;  %v1937_v18 = vmul.f32 %v4879_v21, %v1868_v1  ;;  %v1938_v24 = vmul.f32 %v4879_v21, %v1869_v2  ;;  %v822_v53 = vld [vmem:[#allocation5 + $0x60] sm:$0xff]  ;;  %v4480_v59 = vld [vmem:[#allocation11 + $0x10] sm:$0xff]  }
  0x7f   :  { %v2005_v15 = vadd.f32 %v4881_v22, %v1936_v5  ;;  %v887_v25 = vmul.f32 %v4873_v14, %v818_v7  ;;  %v888_v34 = vmul.f32 %v4873_v14, %v819_v19  ;;  %v1939_v39 = vmul.f32 %v4879_v21, %v1870_v26  ;;  %v4481_v1 = vld [vmem:[#allocation11 + $0xd0] sm:$0xff]   ;;  %v824_v7 = vld [vmem:[#allocation5 + $0x70] sm:$0xff] }
  0x80   :  { %3944 = vmatpush3.bf16.msra.mxu1 %v4468_v8  ;;  %v4476_v8 = vld [vmem:[#allocation11] sm:$0xff]   ;;  %v954_v16 = vadd.f32 %v4877_v17, %v885_v6  ;;  %v1142_v28 = vpack.c.bf16 %v1017_v13, %v1016_v4  ;;  %v2006_v31 = vadd.f32 %v4881_v22, %v1937_v18  ;;  %v2007_v33 = vadd.f32 %v4881_v22, %v1938_v24  ;;  %v1877_v26 = vld [vmem:[#allocation7 + $0x78] sm:$0xff] }
  0x81   :  { %4104 = vmatpush3.bf16.msra.mxu0 %v4469_v9  ;;  %3945 = vmatprep.subr.bf16.mxu1 %v4470_v10  ;;  %v2193_v9 = vpack.c.bf16 %v2067_v63, %v2066_v62  ;;  %v956_v35 = vadd.f32 %v4877_v17, %v887_v25  ;;  %v1940_v40 = vmul.f32 %v4879_v21, %v1871_v27  ;;  %v1875_v6 = vld [vmem:[#allocation7 + $0x68] sm:$0xff]  ;;  %v1876_v25 = vld [vmem:[#allocation7 + $0x70] sm:$0xff] }
  0x82   :  { %4105 = vmatprep.subr.bf16.mxu0 %v4471_v11  ;;  %v1018_v30 = vmax.f32 %v954_v16, 0.0  ;;  %v2070_v38 = vmax.f32 %v2006_v31, 0.0  ;;  %v2071_v45 = vmax.f32 %v2007_v33, 0.0  ;;  %v957_v46 = vadd.f32 %v4877_v17, %v888_v34  ;;  %v4482_v31 = vld [vmem:[#allocation11 + $0x18] sm:$0xff]  }
  0x83   :  { %v1020_v47 = vmax.f32 %v956_v35, 0.0  ;;  %v2008_v50 = vadd.f32 %v4881_v22, %v1939_v39  ;;  %v2009_v51 = vadd.f32 %v4881_v22, %v1940_v40  ;;  %v889_v52 = vmul.f32 %v4873_v14, %v820_v36  ;;  %v827_v36 = vld [vmem:[#allocation5 + $0x88] sm:$0xff] }
  0x84   :  { %3946 = vmatpush3.bf16.msra.mxu1 %v4470_v10  ;;  %v2004_v10 = vadd.f32 %v4881_v22, %v1935_v0  ;;  %v2195_v55 = vpack.c.bf16 %v2071_v45, %v2070_v38  ;;  %v890_v57 = vmul.f32 %v4873_v14, %v821_v41  ;;  %v1941_v58 = vmul.f32 %v4879_v21, %v1872_v43  ;;  %v1874_v0 = vld [vmem:[#allocation7 + $0x60] sm:$0xff] }
  0x85   :  { %4106 = vmatpush3.bf16.msra.mxu0 %v4471_v11  ;;  %3947 = vmatprep.subr.bf16.mxu1 %v4472_v20  ;;  %v886_v11 = vmul.f32 %v4873_v14, %v817_v60  ;;  %v2072_v60 = vmax.f32 %v2008_v50, 0.0  ;;  %v958_v62 = vadd.f32 %v4877_v17, %v889_v52  ;;  %v1942_v63 = vmul.f32 %v4879_v21, %v1873_v48  ;;  %v1878_v41 = vld [vmem:[#allocation7 + $0x80] sm:$0xff]  ;;  %v828_v52 = vld [vmem:[#allocation5 + $0x90] sm:$0xff] }
  0x86   :  { %4107 = vmatprep.subr.bf16.mxu0 %v4473_v29  ;;  %v959_v3 = vadd.f32 %v4877_v17, %v890_v57  ;;  %v2010_v4 = vadd.f32 %v4881_v22, %v1941_v58  ;;  %v891_v5 = vmul.f32 %v4873_v14, %v822_v53  ;;  %v1943_v18 = vmul.f32 %v4879_v21, %v1874_v0  ;;  %v4483_v43 = vld [vmem:[#allocation11 + $0xd8] sm:$0xff]   ;;  %v829_v57 = vld [vmem:[#allocation5 + $0x98] sm:$0xff]  ;;  %v1880_v58 = vld [vmem:[#allocation7 + $0x90] sm:$0xff] }
  0x87   :  { %v955_v23 = vadd.f32 %v4877_v17, %v886_v11  ;;  %v892_v11 = vmul.f32 %v4873_v14, %v823_v54  ;;  %v893_v24 = vmul.f32 %v4873_v14, %v824_v7  ;;  %v1945_v39 = vmul.f32 %v4879_v21, %v1876_v25 }
  0x88   :  { %3948 = vmatpush3.bf16.msra.mxu1 %v4472_v20  ;;  %v2068_v20 = vmax.f32 %v2004_v10, 0.0  ;;  %v2011_v10 = vadd.f32 %v4881_v22, %v1942_v63  ;;  %v1023_v13 = vmax.f32 %v959_v3, 0.0  ;;  %v960_v16 = vadd.f32 %v4877_v17, %v891_v5  ;;  %v830_v63 = vld [vmem:[#allocation5 + $0xa0] sm:$0xff] }
  0x89   :  { %4108 = vmatpush3.bf16.msra.mxu0 %v4473_v29  ;;  %3949 = vmatprep.subr.bf16.mxu1 %v4474_v49  ;;  %v2069_v29 = vmax.f32 %v2005_v15, 0.0  ;;  %v1019_v32 = vmax.f32 %v955_v23, 0.0  ;;  %v2074_v15 = vmax.f32 %v2010_v4, 0.0  ;;  %v1944_v23 = vmul.f32 %v4879_v21, %v1875_v6  ;;  %v4484_v4 = vld [vmem:[#allocation11 + $0x20] sm:$0xff]  }
  0x8a   :  { %4109 = vmatprep.subr.bf16.mxu0 %v4475_v56  ;;  %v2075_v19 = vmax.f32 %v2011_v10, 0.0  ;;  %v1024_v27 = vmax.f32 %v960_v16, 0.0  ;;  %v962_v35 = vadd.f32 %v4877_v17, %v893_v24  ;;  %v1946_v40 = vmul.f32 %v4879_v21, %v1877_v26 }
  0x8b   :  { %v2194_v37 = vpack.c.bf16 %v2069_v29, %v2068_v20  ;;  %v1143_v44 = vpack.c.bf16 %v1019_v32, %v1018_v30  ;;  %v961_v20 = vadd.f32 %v4877_v17, %v892_v11  ;;  %v826_v30 = vld [vmem:[#allocation5 + $0x80] sm:$0xff]  ;;  %v2013_v34 = vadd.f32 %v4881_v22, %v1944_v23 }
  0x8c   :  { %3950 = vmatpush3.bf16.msra.mxu1 %v4474_v49  ;;  %v4479_v49 = vld [vmem:[#allocation11 + $0xc8] sm:$0xff]   ;;  %v1026_v48 = vmax.f32 %v962_v35, 0.0  ;;  %v2015_v50 = vadd.f32 %v4881_v22, %v1946_v40  ;;  %v897_v3 = vmul.f32 %v4873_v14, %v828_v52  ;;  %v898_v7 = vmul.f32 %v4873_v14, %v829_v57 }
  0x8d   :  { %4110 = vmatpush3.bf16.msra.mxu0 %v4475_v56  ;;  %4015 = vmatprep.subr.bf16.mxu1 %v4476_v8  ;;  %v1021_v56 = vmax.f32 %v957_v46, 0.0  ;;  %v1025_v33 = vmax.f32 %v961_v20, 0.0  ;;  %v2077_v46 = vmax.f32 %v2013_v34, 0.0  ;;  %v1883_v20 = vld [vmem:[#allocation7 + $0xa8] sm:$0xff]  ;;  %v1884_v35 = vld [vmem:[#allocation7 + $0xb0] sm:$0xff] }
  0x8e   :  { %4175 = vmatprep.subr.bf16.mxu0 %v4477_v12  ;;  %v2079_v0 = vmax.f32 %v2015_v50, 0.0  ;;  %v967_v24 = vadd.f32 %v4877_v17, %v898_v7  ;;  %v1952_v34 = vmul.f32 %v4879_v21, %v1883_v20  ;;  %v1953_v50 = vmul.f32 %v4879_v21, %v1884_v35  ;;  %v4487_v52 = vld [vmem:[#allocation11 + $0xe8] sm:$0xff]  }
  0x8f   :  { %3952 = vmatmul.mubr.bf16.vlgmr.msra.gmra.mrb[0].mxu1 %v1141_v61  ;;  %v2073_v61 = vmax.f32 %v2009_v51, 0.0  ;;  %v1144_v2 = vpack.c.bf16 %v1021_v56, %v1020_v47  ;;  %v1146_v45 = vpack.c.bf16 %v1025_v33, %v1024_v27  ;;  %v895_v47 = vmul.f32 %v4873_v14, %v826_v30  ;;  %v833_v30 = vld [vmem:[#allocation5 + $0xb8] sm:$0xff] }
  0x90   :  { %4112 = vmatmul.mubr.bf16.vlgmr.msra.gmra.mrb[0].mxu0 %v2193_v9  ;;  %4016 = vmatpush3.bf16.msra.mxu1 %v4476_v8  ;;  %v1022_v9 = vmax.f32 %v958_v62, 0.0  ;;  %v896_v51 = vmul.f32 %v4873_v14, %v827_v36  ;;  %v1881_v62 = vld [vmem:[#allocation7 + $0x98] sm:$0xff] }
  0x91   :  { %4176 = vmatpush3.bf16.msra.mxu0 %v4477_v12  ;;  %3955 = vmatprep.mubr.bf16.mxu1 %v1142_v28  ;;  %v2196_v8 = vpack.c.bf16 %v2073_v61, %v2072_v60  ;;  %v825_v12 = vld [vmem:[#allocation5 + $0x78] sm:$0xff]  ;;  %v2012_v28 = vadd.f32 %v4881_v22, %v1943_v18  ;;  %v964_v54 = vadd.f32 %v4877_v17, %v895_v47  ;;  %v1887_v47 = vld [vmem:[#allocation7 + $0xc8] sm:$0xff] }
  0x92   :  { %4115 = vmatprep.mubr.bf16.mxu0 %v2194_v37  ;;  %4017 = vmatprep.subr.bf16.mxu1 %v4478_v42  ;;  %v894_v29 = vmul.f32 %v4873_v14, %v825_v12  ;;  %v1145_v32 = vpack.c.bf16 %v1023_v13, %v1022_v9  ;;  %v965_v61 = vadd.f32 %v4877_v17, %v896_v51  ;;  %v831_v9 = vld [vmem:[#allocation5 + $0xa8] sm:$0xff]  ;;  %v1882_v12 = vld [vmem:[#allocation7 + $0xa0] sm:$0xff]  ;;  %v1885_v36 = vld [vmem:[#allocation7 + $0xb8] sm:$0xff] }
  0x93   :  { %4177 = vmatprep.subr.bf16.mxu0 %v4479_v49  ;;  %v2076_v37 = vmax.f32 %v2012_v28, 0.0  ;;  %v1028_v5 = vmax.f32 %v964_v54, 0.0  ;;  %v1950_v11 = vmul.f32 %v4879_v21, %v1881_v62  ;;  %v4485_v13 = vld [vmem:[#allocation11 + $0xe0] sm:$0xff]   ;;  %v966_v18 = vadd.f32 %v4877_v17, %v897_v3  ;;  %v836_v3 = vld [vmem:[#allocation5 + $0xd0] sm:$0xff] }
  0x94   :  { %4018 = vmatpush3.bf16.msra.mxu1 %v4478_v42  ;;  %v963_v38 = vadd.f32 %v4877_v17, %v894_v29  ;;  %v1879_v42 = vld [vmem:[#allocation7 + $0x88] sm:$0xff]  ;;  %v1029_v6 = vmax.f32 %v965_v61, 0.0  ;;  %v900_v25 = vmul.f32 %v4873_v14, %v831_v9  ;;  %v1951_v28 = vmul.f32 %v4879_v21, %v1882_v12  ;;  %v832_v29 = vld [vmem:[#allocation5 + $0xb0] sm:$0xff] }
  0x95   :  { %4178 = vmatpush3.bf16.msra.mxu0 %v4479_v49  ;;  %4019 = vmatprep.subr.bf16.mxu1 %v4480_v59  ;;  %v2014_v49 = vadd.f32 %v4881_v22, %v1945_v39  ;;  %v1948_v56 = vmul.f32 %v4879_v21, %v1879_v42  ;;  %v1030_v39 = vmax.f32 %v966_v18, 0.0  ;;  %v1031_v42 = vmax.f32 %v967_v24, 0.0  ;;  %v4488_v18 = vld [vmem:[#allocation11 + $0x30] sm:$0xff]  }
  0x96   :  { %4179 = vmatprep.subr.bf16.mxu0 %v4481_v1  ;;  %v1027_v53 = vmax.f32 %v963_v38, 0.0  ;;  %v1148_v26 = vpack.c.bf16 %v1029_v6, %v1028_v5  ;;  %v969_v33 = vadd.f32 %v4877_v17, %v900_v25  ;;  %v2020_v40 = vadd.f32 %v4881_v22, %v1951_v28  ;;  %v1888_v5 = vld [vmem:[#allocation7 + $0xd0] sm:$0xff]  ;;  %v1890_v25 = vld [vmem:[#allocation7 + $0xe0] sm:$0xff] }
  0x97   :  { %3956 = vmatmul.mubr.bf16.gmra.mrb[4].mxu1 %v1143_v44  ;;  %v2197_v44 = vpack.c.bf16 %v2075_v19, %v2074_v15  ;;  %v2078_v60 = vmax.f32 %v2014_v49, 0.0  ;;  %v899_v19 = vmul.f32 %v4873_v14, %v830_v63  ;;  %v1954_v51 = vmul.f32 %v4879_v21, %v1885_v36 }
  0x98   :  { %4116 = vmatmul.mubr.bf16.gmra.mrb[4].mxu0 %v2195_v55  ;;  %3959 = vmatprep.mubr.bf16.mxu1 %v1144_v2  ;;  %v1947_v55 = vmul.f32 %v4879_v21, %v1878_v41  ;;  %v2017_v2 = vadd.f32 %v4881_v22, %v1948_v56  ;;  %v1147_v10 = vpack.c.bf16 %v1027_v53, %v1026_v48  ;;  %v835_v41 = vld [vmem:[#allocation5 + $0xc8] sm:$0xff]  ;;  %v4486_v48 = vld [vmem:[#allocation11 + $0x28] sm:$0xff]   ;;  %v2084_v57 = vmax.f32 %v2020_v40, 0.0 }
  0x99   :  { %4119 = vmatprep.mubr.bf16.mxu0 %v2196_v8  ;;  %4020 = vmatpush3.bf16.msra.mxu1 %v4480_v59  ;;  %v2198_v59 = vpack.c.bf16 %v2077_v46, %v2076_v37  ;;  %v1949_v8 = vmul.f32 %v4879_v21, %v1880_v58  ;;  %v2199_v23 = vpack.c.bf16 %v2079_v0, %v2078_v60  ;;  %v834_v37 = vld [vmem:[#allocation5 + $0xc0] sm:$0xff] }
  0x9a   :  { %4180 = vmatpush3.bf16.msra.mxu0 %v4481_v1  ;;  %4021 = vmatprep.subr.bf16.mxu1 %v4482_v31  ;;  %v2016_v1 = vadd.f32 %v4881_v22, %v1947_v55  ;;  %v2081_v16 = vmax.f32 %v2017_v2, 0.0  ;;  %v1886_v46 = vld [vmem:[#allocation7 + $0xc0] sm:$0xff]  ;;  %v1033_v55 = vmax.f32 %v969_v33, 0.0  ;;  %v903_v56 = vmul.f32 %v4873_v14, %v834_v37 }
  0x9b   :  { %4181 = vmatprep.subr.bf16.mxu0 %v4483_v43  ;;  %v2018_v27 = vadd.f32 %v4881_v22, %v1949_v8  ;;  %v1955_v62 = vmul.f32 %v4879_v21, %v1886_v46  ;;  %v1956_v63 = vmul.f32 %v4879_v21, %v1887_v47  ;;  %v1149_v0 = vpack.c.bf16 %v1031_v42, %v1030_v39  ;;  %v840_v42 = vld [vmem:[#allocation5 + $0xf0] sm:$0xff]  ;;  %v841_v46 = vld [vmem:[#allocation5 + $0xf8] sm:$0xff] }
  0x9c   :  { %v2080_v15 = vmax.f32 %v2016_v1, 0.0  ;;  %v2022_v1 = vadd.f32 %v4881_v22, %v1953_v50  ;;  %v2023_v2 = vadd.f32 %v4881_v22, %v1954_v51  ;;  %v972_v8 = vadd.f32 %v4877_v17, %v903_v56  ;;  %v1892_v47 = vld [vmem:[#allocation7 + $0xf0] sm:$0xff] }
  0x9d   :  { %4022 = vmatpush3.bf16.msra.mxu1 %v4482_v31  ;;  %v2019_v31 = vadd.f32 %v4881_v22, %v1950_v11  ;;  %v2082_v49 = vmax.f32 %v2018_v27, 0.0  ;;  %v838_v11 = vld [vmem:[#allocation5 + $0xe0] sm:$0xff] }
  0x9e   :  { %4182 = vmatpush3.bf16.msra.mxu0 %v4483_v43  ;;  %4023 = vmatprep.subr.bf16.mxu1 %v4484_v4  ;;  %v2200_v38 = vpack.c.bf16 %v2081_v16, %v2080_v15  ;;  %v2021_v43 = vadd.f32 %v4881_v22, %v1952_v34  ;;  %v2025_v15 = vadd.f32 %v4881_v22, %v1956_v63  ;;  %v839_v16 = vld [vmem:[#allocation5 + $0xe8] sm:$0xff]  ;;  %v2086_v27 = vmax.f32 %v2022_v1, 0.0  ;;  %v1894_v63 = vld [vmem:[#allocation7 + $0x100] sm:$0xff] }
  0x9f   :  { %3960 = vmatmul.mubr.bf16.gmra.mrb[8].mxu1 %v1145_v32  ;;  %4183 = vmatprep.subr.bf16.mxu0 %v4485_v13  ;;  %v968_v32 = vadd.f32 %v4877_v17, %v899_v19  ;;  %v2083_v53 = vmax.f32 %v2019_v31, 0.0  ;;  %v2087_v28 = vmax.f32 %v2023_v2, 0.0  ;;  %v1891_v31 = vld [vmem:[#allocation7 + $0xe8] sm:$0xff]  ;;  %v907_v34 = vmul.f32 %v4873_v14, %v838_v11 }
  0xa0   :  { %4120 = vmatmul.mubr.bf16.gmra.mrb[8].mxu0 %v2197_v44  ;;  %3963 = vmatprep.mubr.bf16.mxu1 %v1146_v45  ;;  %v901_v44 = vmul.f32 %v4873_v14, %v832_v29  ;;  %v902_v45 = vmul.f32 %v4873_v14, %v833_v30  ;;  %v2085_v58 = vmax.f32 %v2021_v43, 0.0  ;;  %v1957_v29 = vmul.f32 %v4879_v21, %v1888_v5  ;;  %v1895_v5 = vld [vmem:[#allocation7 + $0x108] sm:$0xff] }
  0xa1   :  { %4123 = vmatprep.mubr.bf16.mxu0 %v2198_v59  ;;  %4024 = vmatpush3.bf16.msra.mxu1 %v4484_v4  ;;  %v1032_v54 = vmax.f32 %v968_v32, 0.0  ;;  %v904_v59 = vmul.f32 %v4873_v14, %v835_v41  ;;  %v837_v4 = vld [vmem:[#allocation5 + $0xd8] sm:$0xff]  ;;  %v2201_v6 = vpack.c.bf16 %v2083_v53, %v2082_v49  ;;  %v1036_v32 = vmax.f32 %v972_v8, 0.0  ;;  %v4490_v53 = vld [vmem:[#allocation11 + $0x38] sm:$0xff]  }
  0xa2   :  { %4184 = vmatpush3.bf16.msra.mxu0 %v4485_v13  ;;  %4025 = vmatprep.subr.bf16.mxu1 %v4486_v48  ;;  %v970_v60 = vadd.f32 %v4877_v17, %v901_v44  ;;  %v971_v61 = vadd.f32 %v4877_v17, %v902_v45  ;;  %v2202_v12 = vpack.c.bf16 %v2085_v58, %v2084_v57  ;;  %v2089_v37 = vmax.f32 %v2025_v15, 0.0  ;;  %v842_v57 = vld [vmem:[#allocation5 + $0x100] sm:$0xff]  ;;  %v843_v58 = vld [vmem:[#allocation5 + $0x108] sm:$0xff] }
  0xa3   :  { %4185 = vmatprep.subr.bf16.mxu0 %v4487_v52  ;;  %v1150_v7 = vpack.c.bf16 %v1033_v55, %v1032_v54  ;;  %v973_v9 = vadd.f32 %v4877_v17, %v904_v59  ;;  %v2024_v13 = vadd.f32 %v4881_v22, %v1955_v62  ;;  %v906_v24 = vmul.f32 %v4873_v14, %v837_v4 }
  0xa4   :  { %v1034_v19 = vmax.f32 %v970_v60, 0.0  ;;  %v1035_v20 = vmax.f32 %v971_v61, 0.0  ;;  %v908_v35 = vmul.f32 %v4873_v14, %v839_v16  ;;  %v1960_v41 = vmul.f32 %v4879_v21, %v1891_v31 }
  0xa5   :  { %4026 = vmatpush3.bf16.msra.mxu1 %v4486_v48  ;;  %v1037_v33 = vmax.f32 %v973_v9, 0.0  ;;  %v2088_v36 = vmax.f32 %v2024_v13, 0.0  ;;  %v975_v40 = vadd.f32 %v4877_v17, %v906_v24  ;;  %v2026_v44 = vadd.f32 %v4881_v22, %v1957_v29  ;;  %v1893_v48 = vld [vmem:[#allocation7 + $0xf8] sm:$0xff]  ;;  %v1896_v29 = vld [vmem:[#allocation7 + $0x110] sm:$0xff] }
  0xa6   :  { %4186 = vmatpush3.bf16.msra.mxu0 %v4487_v52  ;;  %4027 = vmatprep.subr.bf16.mxu1 %v4488_v18  ;;  %v1151_v43 = vpack.c.bf16 %v1035_v20, %v1034_v19  ;;  %v2203_v49 = vpack.c.bf16 %v2087_v28, %v2086_v27  ;;  %v976_v51 = vadd.f32 %v4877_v17, %v907_v34  ;;  %v845_v24 = vld [vmem:[#allocation5 + $0x118] sm:$0xff]  ;;  %v846_v34 = vld [vmem:[#allocation5 + $0x120] sm:$0xff] }
  0xa7   :  { %3964 = vmatmul.mubr.bf16.gmra.mrb[12].mxu1 %v1147_v10  ;;  %v1889_v10 = vld [vmem:[#allocation7 + $0xd8] sm:$0xff]  ;;  %v1152_v50 = vpack.c.bf16 %v1037_v33, %v1036_v32  ;;  %v977_v52 = vadd.f32 %v4877_v17, %v908_v35  ;;  %v2204_v54 = vpack.c.bf16 %v2089_v37, %v2088_v36  ;;  %v2029_v56 = vadd.f32 %v4881_v22, %v1960_v41  ;;  %v847_v35 = vld [vmem:[#allocation5 + $0x128] sm:$0xff] }
  0xa8   :  { %4124 = vmatmul.mubr.bf16.gmra.mrb[12].mxu0 %v2199_v23  ;;  %3967 = vmatprep.mubr.bf16.mxu1 %v1148_v26  ;;  %v905_v23 = vmul.f32 %v4873_v14, %v836_v3  ;;  %v4489_v26 = vld [vmem:[#allocation11 + $0xf0] sm:$0xff]   ;;  %v1958_v30 = vmul.f32 %v4879_v21, %v1889_v10  ;;  %v1039_v60 = vmax.f32 %v975_v40, 0.0  ;;  %v909_v61 = vmul.f32 %v4873_v14, %v840_v42  ;;  %v1898_v40 = vld [vmem:[#allocation7 + $0x120] sm:$0xff]  ;;  %v1899_v41 = vld [vmem:[#allocation7 + $0x128] sm:$0xff] }
  0xa9   :  { %4127 = vmatprep.mubr.bf16.mxu0 %v2200_v38  ;;  %v1959_v38 = vmul.f32 %v4879_v21, %v1890_v25  ;;  %4187 = vmatprep.subr.bf16.mxu0 %v4489_v26  ;;  %v910_v62 = vmul.f32 %v4873_v14, %v841_v46  ;;  %v2090_v1 = vmax.f32 %v2026_v44, 0.0  ;;  %v1961_v3 = vmul.f32 %v4879_v21, %v1892_v47 }
  0xaa   :  { %v974_v39 = vadd.f32 %v4877_v17, %v905_v23  ;;  %4028 = vmatpush3.bf16.msra.mxu1 %v4488_v18  ;;  %v2027_v45 = vadd.f32 %v4881_v22, %v1958_v30  ;;  %4188 = vmatpush3.bf16.msra.mxu0 %v4489_v26  ;;  %v1962_v4 = vmul.f32 %v4879_v21, %v1893_v48  ;;  %v2093_v11 = vmax.f32 %v2029_v56, 0.0  ;;  %v844_v23 = vld [vmem:[#allocation5 + $0x110] sm:$0xff]  ;;  %v1897_v30 = vld [vmem:[#allocation7 + $0x118] sm:$0xff] }
  0xab   :  { %v2028_v55 = vadd.f32 %v4881_v22, %v1959_v38  ;;  %4029 = vmatprep.subr.bf16.mxu1 %v4490_v53  ;;  %v911_v8 = vmul.f32 %v4873_v14, %v842_v57  ;;  %v912_v9 = vmul.f32 %v4873_v14, %v843_v58  ;;  %v978_v13 = vadd.f32 %v4877_v17, %v909_v61 }
  0xac   :  { %v1038_v59 = vmax.f32 %v974_v39, 0.0  ;;  %v2091_v2 = vmax.f32 %v2027_v45, 0.0  ;;  %v979_v15 = vadd.f32 %v4877_v17, %v910_v62  ;;  %v1964_v16 = vmul.f32 %v4879_v21, %v1895_v5 }
  0xad   :  { %v2092_v10 = vmax.f32 %v2028_v55, 0.0  ;;  %v2030_v19 = vadd.f32 %v4881_v22, %v1961_v3  ;;  %v2031_v20 = vadd.f32 %v4881_v22, %v1962_v4  ;;  %v980_v27 = vadd.f32 %v4877_v17, %v911_v8 }
  0xae   :  { %4030 = vmatpush3.bf16.msra.mxu1 %v4490_v53  ;;  %v1153_v18 = vpack.c.bf16 %v1039_v60, %v1038_v59  ;;  %v2205_v25 = vpack.c.bf16 %v2091_v2, %v2090_v1  ;;  %v981_v28 = vadd.f32 %v4877_v17, %v912_v9  ;;  %v2033_v33 = vadd.f32 %v4881_v22, %v1964_v16  ;;  %v848_v59 = vld [vmem:[#allocation5 + $0x130] sm:$0xff]  ;;  %v849_v60 = vld [vmem:[#allocation5 + $0x138] sm:$0xff] }
  0xaf   :  { %3968 = vmatmul.mubr.bf16.gmra.mrb[16].mxu1 %v1149_v0  ;;  %v4491_v0 = vld [vmem:[#allocation11 + $0xf8] sm:$0xff]   ;;  %v2206_v31 = vpack.c.bf16 %v2093_v11, %v2092_v10  ;;  %v1042_v36 = vmax.f32 %v978_v13, 0.0  ;;  %v1043_v37 = vmax.f32 %v979_v15, 0.0  ;;  %v913_v38 = vmul.f32 %v4873_v14, %v844_v23  ;;  %v1900_v1 = vld [vmem:[#allocation7 + $0x130] sm:$0xff]  ;;  %v1901_v2 = vld [vmem:[#allocation7 + $0x138] sm:$0xff] }
  0xb0   :  { %4128 = vmatmul.mubr.bf16.gmra.mrb[16].mxu0 %v2201_v6  ;;  %3971 = vmatprep.mubr.bf16.mxu1 %v1150_v7  ;;  %v1040_v6 = vmax.f32 %v976_v51, 0.0  ;;  %v1041_v7 = vmax.f32 %v977_v52, 0.0  ;;  %v914_v39 = vmul.f32 %v4873_v14, %v845_v24  ;;  %v2094_v42 = vmax.f32 %v2030_v19, 0.0  ;;  %v1903_v13 = vld [vmem:[#allocation7 + $0x148] sm:$0xff] }
  0xb1   :  { %4131 = vmatprep.mubr.bf16.mxu0 %v2202_v12  ;;  %v1963_v12 = vmul.f32 %v4879_v21, %v1894_v63  ;;  %4189 = vmatprep.subr.bf16.mxu0 %v4491_v0  ;;  %v1965_v44 = vmul.f32 %v4879_v21, %v1896_v29  ;;  %v1966_v45 = vmul.f32 %v4879_v21, %v1897_v30  ;;  %v1044_v46 = vmax.f32 %v980_v27, 0.0 }
  0xb2   :  { %4190 = vmatpush3.bf16.msra.mxu0 %v4491_v0  ;;  %v1154_v26 = vpack.c.bf16 %v1041_v7, %v1040_v6  ;;  %v1045_v47 = vmax.f32 %v981_v28, 0.0  ;;  %v915_v48 = vmul.f32 %v4873_v14, %v846_v34  ;;  %v2097_v51 = vmax.f32 %v2033_v33, 0.0  ;;  %v850_v6 = vld [vmem:[#allocation5 + $0x140] sm:$0xff]  ;;  %v851_v7 = vld [vmem:[#allocation5 + $0x148] sm:$0xff] }
  0xb3   :  { %v2032_v32 = vadd.f32 %v4881_v22, %v1963_v12  ;;  %v1967_v52 = vmul.f32 %v4879_v21, %v1898_v40  ;;  %v1968_v53 = vmul.f32 %v4879_v21, %v1899_v41  ;;  %v983_v55 = vadd.f32 %v4877_v17, %v914_v39  ;;  %v1902_v12 = vld [vmem:[#allocation7 + $0x140] sm:$0xff]  ;;  %v1904_v41 = vld [vmem:[#allocation7 + $0x150] sm:$0xff] }
  0xb4   :  { %v1155_v56 = vpack.c.bf16 %v1043_v37, %v1042_v36  ;;  %v2034_v57 = vadd.f32 %v4881_v22, %v1965_v44  ;;  %v2035_v58 = vadd.f32 %v4881_v22, %v1966_v45  ;;  %v1156_v62 = vpack.c.bf16 %v1045_v47, %v1044_v46  ;;  %v853_v36 = vld [vmem:[#allocation5 + $0x158] sm:$0xff]  ;;  %v854_v46 = vld [vmem:[#allocation5 + $0x160] sm:$0xff]  ;;  %v855_v47 = vld [vmem:[#allocation5 + $0x168] sm:$0xff] }
  0xb5   :  { %v984_v63 = vadd.f32 %v4877_v17, %v915_v48  ;;  %v2036_v4 = vadd.f32 %v4881_v22, %v1967_v52  ;;  %v2037_v5 = vadd.f32 %v4881_v22, %v1968_v53  ;;  %v1047_v9 = vmax.f32 %v983_v55, 0.0  ;;  %v1906_v52 = vld [vmem:[#allocation7 + $0x160] sm:$0xff]  ;;  %v1907_v53 = vld [vmem:[#allocation7 + $0x168] sm:$0xff] }
  0xb6   :  { %v917_v10 = vmul.f32 %v4873_v14, %v848_v59  ;;  %v918_v11 = vmul.f32 %v4873_v14, %v849_v60  ;;  %v2098_v15 = vmax.f32 %v2034_v57, 0.0  ;;  %v2099_v16 = vmax.f32 %v2035_v58, 0.0  ;;  %v5053_v58 = vld [vmem:[#allocation10 + $0x1] ss:$0 sm:$0xff] }
  0xb7   :  { %3972 = vmatmul.mubr.bf16.gmra.mrb[20].mxu1 %v1151_v43  ;;  %v2095_v43 = vmax.f32 %v2031_v20, 0.0  ;;  %v1970_v19 = vmul.f32 %v4879_v21, %v1901_v2  ;;  %v1048_v20 = vmax.f32 %v984_v63, 0.0  ;;  %v919_v24 = vmul.f32 %v4873_v14, %v850_v6 }
  0xb8   :  { %4132 = vmatmul.mubr.bf16.gmra.mrb[20].mxu0 %v2203_v49  ;;  %3975 = vmatprep.mubr.bf16.mxu1 %v1152_v50  ;;  %v916_v49 = vmul.f32 %v4873_v14, %v847_v35  ;;  %v2096_v50 = vmax.f32 %v2032_v32, 0.0  ;;  %v2101_v27 = vmax.f32 %v2037_v5, 0.0  ;;  %v1971_v28 = vmul.f32 %v4879_v21, %v1902_v12  ;;  %v852_v35 = vld [vmem:[#allocation5 + $0x150] sm:$0xff] }
  0xb9   :  { %4135 = vmatprep.mubr.bf16.mxu0 %v2204_v54  ;;  %v982_v54 = vadd.f32 %v4877_v17, %v913_v38  ;;  %v2207_v61 = vpack.c.bf16 %v2095_v43, %v2094_v42  ;;  %v1972_v29 = vmul.f32 %v4879_v21, %v1903_v13  ;;  %v986_v30 = vadd.f32 %v4877_v17, %v917_v10  ;;  %v1905_v42 = vld [vmem:[#allocation7 + $0x158] sm:$0xff]  ;;  %v1908_v13 = vld [vmem:[#allocation7 + $0x170] sm:$0xff] }
  0xba   :  { %v985_v0 = vadd.f32 %v4877_v17, %v916_v49  ;;  %v2208_v3 = vpack.c.bf16 %v2097_v51, %v2096_v50  ;;  %v2039_v34 = vadd.f32 %v4881_v22, %v1970_v19  ;;  %v2209_v37 = vpack.c.bf16 %v2099_v16, %v2098_v15  ;;  %v1909_v15 = vld [vmem:[#allocation7 + $0x178] sm:$0xff] }
  0xbb   :  { %v1046_v8 = vmax.f32 %v982_v54, 0.0  ;;  %v988_v39 = vadd.f32 %v4877_v17, %v919_v24  ;;  %v2040_v44 = vadd.f32 %v4881_v22, %v1971_v28  ;;  %v2041_v45 = vadd.f32 %v4881_v22, %v1972_v29  ;;  %v1910_v28 = vld [vmem:[#allocation7 + $0x180] sm:$0xff]  ;;  %v1911_v29 = vld [vmem:[#allocation7 + $0x188] sm:$0xff] }
  0xbc   :  { %v1049_v23 = vmax.f32 %v985_v0, 0.0  ;;  %v1050_v48 = vmax.f32 %v986_v30, 0.0  ;;  %v921_v50 = vmul.f32 %v4873_v14, %v852_v35  ;;  %v922_v51 = vmul.f32 %v4873_v14, %v853_v36 }
  0xbd   :  { %v1157_v32 = vpack.c.bf16 %v1047_v9, %v1046_v8  ;;  %v1973_v55 = vmul.f32 %v4879_v21, %v1904_v41  ;;  %v923_v59 = vmul.f32 %v5053_v58, %v854_v46  ;;  %v924_v60 = vmul.f32 %v5053_v58, %v855_v47  ;;  %v857_v8 = vld [vmem:[#allocation5 + $0x178] sm:$0xff]  ;;  %v860_v47 = vld [vmem:[#allocation5 + $0x190] sm:$0xff] }
  0xbe   :  { %v1158_v38 = vpack.c.bf16 %v1049_v23, %v1048_v20  ;;  %v858_v20 = vld [vmem:[#allocation5 + $0x180] sm:$0xff]  ;;  %v859_v23 = vld [vmem:[#allocation5 + $0x188] sm:$0xff] }
  0xbf   :  { %3976 = vmatmul.mubr.bf16.gmra.mrb[24].mxu1 %v1153_v18  ;;  %v1969_v18 = vmul.f32 %v4879_v21, %v1900_v1  ;;  %v927_v36 = vmul.f32 %v5053_v58, %v858_v20 }
  0xc0   :  { %4136 = vmatmul.mubr.bf16.gmra.mrb[24].mxu0 %v2205_v25  ;;  %3979 = vmatprep.mubr.bf16.mxu1 %v1154_v26  ;;  %v920_v25 = vmul.f32 %v4873_v14, %v851_v7  ;;  %v2100_v26 = vmax.f32 %v2036_v4, 0.0  ;;  %v2104_v14 = vmax.f32 %v2040_v44, 0.0  ;;  %v5065_v4 = vld [vmem:[#allocation10 + $0x6] ss:$0 sm:$0xff]  ;;  %v856_v7 = vld [vmem:[#allocation5 + $0x170] sm:$0xff] }
  0xc1   :  { %4139 = vmatprep.mubr.bf16.mxu0 %v2206_v31  ;;  %v987_v31 = vadd.f32 %v4877_v17, %v918_v11  ;;  %v2038_v33 = vadd.f32 %v4881_v22, %v1969_v18  ;;  %v1052_v22 = vmax.f32 %v988_v39, 0.0  ;;  %v2042_v5 = vadd.f32 %v5065_v4, %v1973_v55 }
  0xc2   :  { %v989_v40 = vadd.f32 %v4877_v17, %v920_v25  ;;  %v2210_v43 = vpack.c.bf16 %v2101_v27, %v2100_v26  ;;  %v2103_v17 = vmax.f32 %v2039_v34, 0.0  ;;  %v925_v26 = vmul.f32 %v5053_v58, %v856_v7 }
  0xc3   :  { %v1051_v49 = vmax.f32 %v987_v31, 0.0  ;;  %v2102_v54 = vmax.f32 %v2038_v33, 0.0  ;;  %v926_v27 = vmul.f32 %v5053_v58, %v857_v8  ;;  %v2106_v30 = vmax.f32 %v2042_v5, 0.0 }
  0xc4   :  { %v1053_v57 = vmax.f32 %v989_v40, 0.0 }
  0xc5   :  { %v2211_v9 = vpack.c.bf16 %v2103_v17, %v2102_v54  ;;  %v1913_v54 = vld [vmem:[#allocation7 + $0x198] sm:$0xff] }
  0xc6   :  { %v1160_v10 = vpack.c.bf16 %v1053_v57, %v1052_v22  ;;  %v862_v22 = vld [vmem:[#allocation5 + $0x1a0] sm:$0xff]  ;;  %v863_v57 = vld [vmem:[#allocation5 + $0x1a8] sm:$0xff] }
  0xc7   :  { %3980 = vmatmul.mubr.bf16.gmra.mrb[28].mxu1 %v1155_v56  ;;  %v1974_v56 = vmul.f32 %v4879_v21, %v1905_v42  ;;  %v5061_v21 = vld [vmem:[#allocation10 + $0x5] ss:$0 sm:$0xff]  ;;  %v931_v8 = vmul.f32 %v5053_v58, %v862_v22 }
  0xc8   :  { %4140 = vmatmul.mubr.bf16.gmra.mrb[28].mxu0 %v2207_v61  ;;  %3983 = vmatprep.mubr.bf16.mxu1 %v1156_v62  ;;  %v2105_v61 = vmax.f32 %v2041_v45, 0.0  ;;  %v5057_v62 = vld [vmem:[#allocation10 + $0x2] ss:$0 sm:$0xff]  ;;  %v990_v1 = vadd.f32 %v5061_v21, %v921_v50  ;;  %v991_v2 = vadd.f32 %v5061_v21, %v922_v51  ;;  %v992_v11 = vadd.f32 %v5061_v21, %v923_v59 }
  0xc9   :  { %4143 = vmatprep.mubr.bf16.mxu0 %v2208_v3  ;;  %v1975_v63 = vmul.f32 %v5057_v62, %v1906_v52  ;;  %v1976_v0 = vmul.f32 %v5057_v62, %v1907_v53  ;;  %v1159_v3 = vpack.c.bf16 %v1051_v49, %v1050_v48  ;;  %v2043_v6 = vadd.f32 %v5065_v4, %v1974_v56  ;;  %v861_v48 = vld [vmem:[#allocation5 + $0x198] sm:$0xff]  ;;  %v1912_v53 = vld [vmem:[#allocation7 + $0x190] sm:$0xff] }
  0xca   :  { %v993_v12 = vadd.f32 %v5061_v21, %v924_v60  ;;  %v2212_v16 = vpack.c.bf16 %v2105_v61, %v2104_v14  ;;  %v1054_v24 = vmax.f32 %v990_v1, 0.0  ;;  %v1055_v25 = vmax.f32 %v991_v2, 0.0 }
  0xcb   :  { %v2044_v18 = vadd.f32 %v5065_v4, %v1975_v63  ;;  %v2045_v19 = vadd.f32 %v5065_v4, %v1976_v0  ;;  %v2107_v31 = vmax.f32 %v2043_v6, 0.0  ;;  %v1978_v33 = vmul.f32 %v5057_v62, %v1909_v15  ;;  %v1914_v63 = vld [vmem:[#allocation7 + $0x1a0] sm:$0xff]  ;;  %v1915_v0 = vld [vmem:[#allocation7 + $0x1a8] sm:$0xff] }
  0xcc   :  { %v1056_v34 = vmax.f32 %v992_v11, 0.0  ;;  %v1057_v35 = vmax.f32 %v993_v12, 0.0  ;;  %v1979_v40 = vmul.f32 %v5057_v62, %v1910_v28  ;;  %v1980_v41 = vmul.f32 %v5057_v62, %v1911_v29  ;;  %v1916_v29 = vld [vmem:[#allocation7 + $0x1b0] sm:$0xff] }
  0xcd   :  { %v2109_v39 = vmax.f32 %v2045_v19, 0.0  ;;  %v994_v42 = vadd.f32 %v5061_v21, %v925_v26  ;;  %v1161_v44 = vpack.c.bf16 %v1055_v25, %v1054_v24  ;;  %v2047_v46 = vadd.f32 %v5065_v4, %v1978_v33  ;;  %v865_v24 = vld [vmem:[#allocation5 + $0x1b8] sm:$0xff] }
  0xce   :  { %v2213_v49 = vpack.c.bf16 %v2107_v31, %v2106_v30  ;;  %v1162_v50 = vpack.c.bf16 %v1057_v35, %v1056_v34  ;;  %v996_v51 = vadd.f32 %v5061_v21, %v927_v36  ;;  %v2048_v55 = vadd.f32 %v5065_v4, %v1979_v40  ;;  %v1917_v30 = vld [vmem:[#allocation7 + $0x1b8] sm:$0xff]  ;;  %v866_v34 = vld [vmem:[#allocation5 + $0x1c0] sm:$0xff]  ;;  %v867_v35 = vld [vmem:[#allocation5 + $0x1c8] sm:$0xff] }
  0xcf   :  { %3984 = vmatmul.mubr.bf16.gmra.mrb[32].mxu1 %v1157_v32  ;;  %v1977_v32 = vmul.f32 %v5057_v62, %v1908_v13  ;;  %v2049_v56 = vadd.f32 %v5065_v4, %v1980_v41  ;;  %v1058_v59 = vmax.f32 %v994_v42, 0.0  ;;  %v929_v14 = vmul.f32 %v5053_v58, %v860_v47  ;;  %v1918_v40 = vld [vmem:[#allocation7 + $0x1c0] sm:$0xff]  ;;  %v1919_v41 = vld [vmem:[#allocation7 + $0x1c8] sm:$0xff] }
  0xd0   :  { %4144 = vmatmul.mubr.bf16.gmra.mrb[32].mxu0 %v2209_v37  ;;  %3987 = vmatprep.mubr.bf16.mxu1 %v1158_v38  ;;  %v928_v37 = vmul.f32 %v5053_v58, %v859_v23  ;;  %v2108_v38 = vmax.f32 %v2044_v18, 0.0  ;;  %v930_v61 = vmul.f32 %v5053_v58, %v861_v48  ;;  %v2111_v2 = vmax.f32 %v2047_v46, 0.0  ;;  %v864_v23 = vld [vmem:[#allocation5 + $0x1b0] sm:$0xff] }
  0xd1   :  { %4147 = vmatprep.mubr.bf16.mxu0 %v2210_v43  ;;  %v995_v43 = vadd.f32 %v5061_v21, %v926_v27  ;;  %v2046_v45 = vadd.f32 %v5065_v4, %v1977_v32  ;;  %v1982_v5 = vmul.f32 %v5057_v62, %v1913_v54  ;;  %v1060_v6 = vmax.f32 %v996_v51, 0.0 }
  0xd2   :  { %v997_v52 = vadd.f32 %v5061_v21, %v928_v37  ;;  %v2214_v17 = vpack.c.bf16 %v2109_v39, %v2108_v38  ;;  %v2113_v11 = vmax.f32 %v2049_v56, 0.0  ;;  %v1983_v12 = vmul.f32 %v5057_v62, %v1914_v63 }
  0xd3   :  { %v1059_v60 = vmax.f32 %v995_v43, 0.0  ;;  %v2110_v1 = vmax.f32 %v2046_v45, 0.0  ;;  %v1984_v13 = vmul.f32 %v5057_v62, %v1915_v0  ;;  %v998_v15 = vadd.f32 %v5061_v21, %v929_v14  ;;  %v1920_v0 = vld [vmem:[#allocation7 + $0x1d0] sm:$0xff] }
  0xd4   :  { %v1061_v7 = vmax.f32 %v997_v52, 0.0  ;;  %v2051_v20 = vadd.f32 %v5065_v4, %v1982_v5  ;;  %v1000_v27 = vadd.f32 %v5061_v21, %v931_v8  ;;  %v2052_v32 = vadd.f32 %v5065_v4, %v1983_v12  ;;  %v1922_v12 = vld [vmem:[#allocation7 + $0x1e0] sm:$0xff] }
  0xd5   :  { %v1163_v18 = vpack.c.bf16 %v1059_v60, %v1058_v59  ;;  %v2215_v25 = vpack.c.bf16 %v2111_v2, %v2110_v1  ;;  %v2053_v33 = vadd.f32 %v5065_v4, %v1984_v13  ;;  %v1062_v36 = vmax.f32 %v998_v15, 0.0  ;;  %v869_v59 = vld [vmem:[#allocation5 + $0x1d8] sm:$0xff]  ;;  %v1923_v13 = vld [vmem:[#allocation7 + $0x1e8] sm:$0xff] }
  0xd6   :  { %v1164_v26 = vpack.c.bf16 %v1061_v7, %v1060_v6  ;;  %v933_v38 = vmul.f32 %v5053_v58, %v864_v23  ;;  %v934_v39 = vmul.f32 %v5053_v58, %v865_v24  ;;  %v2115_v43 = vmax.f32 %v2051_v20, 0.0  ;;  %v1921_v1 = vld [vmem:[#allocation7 + $0x1d8] sm:$0xff]  ;;  %v870_v6 = vld [vmem:[#allocation5 + $0x1e0] sm:$0xff]  ;;  %v871_v7 = vld [vmem:[#allocation5 + $0x1e8] sm:$0xff] }
  0xd7   :  { %3988 = vmatmul.mubr.bf16.gmra.mrb[36].mxu1 %v1159_v3  ;;  %v1981_v3 = vmul.f32 %v5057_v62, %v1912_v53  ;;  %v1986_v45 = vmul.f32 %v5057_v62, %v1917_v30  ;;  %v1064_v46 = vmax.f32 %v1000_v27, 0.0  ;;  %v935_v48 = vmul.f32 %v5053_v58, %v866_v34 }
  0xd8   :  { %4148 = vmatmul.mubr.bf16.gmra.mrb[36].mxu0 %v2211_v9  ;;  %3991 = vmatprep.mubr.bf16.mxu1 %v1160_v10  ;;  %v932_v9 = vmul.f32 %v5053_v58, %v863_v57  ;;  %v2112_v10 = vmax.f32 %v2048_v55, 0.0  ;;  %v2117_v51 = vmax.f32 %v2053_v33, 0.0  ;;  %v1987_v52 = vmul.f32 %v5057_v62, %v1918_v40  ;;  %v868_v57 = vld [vmem:[#allocation5 + $0x1d0] sm:$0xff] }
  0xd9   :  { %4151 = vmatprep.mubr.bf16.mxu0 %v2212_v16  ;;  %v999_v16 = vadd.f32 %v5061_v21, %v930_v61  ;;  %v2050_v19 = vadd.f32 %v5065_v4, %v1981_v3  ;;  %v1988_v53 = vmul.f32 %v5057_v62, %v1919_v41  ;;  %v1002_v54 = vadd.f32 %v5061_v21, %v933_v38  ;;  %v1924_v41 = vld [vmem:[#allocation7 + $0x1f0] sm:$0xff] }
  0xda   :  { %v1001_v28 = vadd.f32 %v5061_v21, %v932_v9  ;;  %v2216_v31 = vpack.c.bf16 %v2113_v11, %v2112_v10  ;;  %v2055_v22 = vadd.f32 %v5065_v4, %v1986_v45  ;;  %v1004_v61 = vadd.f32 %v5061_v21, %v935_v48  ;;  %v5137_v48 = vld [vmem:[#allocation10] ss:$0 sm:$0xff] }
  0xdb   :  { %v1063_v37 = vmax.f32 %v999_v16, 0.0  ;;  %v2114_v42 = vmax.f32 %v2050_v19, 0.0  ;;  %v2056_v3 = vadd.f32 %v5065_v4, %v1987_v52  ;;  %v2057_v5 = vadd.f32 %v5065_v4, %v1988_v53  ;;  %v2641_v53 = vld [vmem:[#allocation8] sm:$0xff] }
  0xdc   :  { %v1065_v47 = vmax.f32 %v1001_v28, 0.0  ;;  %v1066_v8 = vmax.f32 %v1002_v54, 0.0  ;;  %v937_v10 = vmul.f32 %v5053_v58, %v868_v57  ;;  %v938_v11 = vmul.f32 %v5053_v58, %v869_v59  ;;  %v2642_v54 = vld [vmem:[#allocation8 + $0x8] sm:$0xff] }
  0xdd   :  { %v1165_v55 = vpack.c.bf16 %v1063_v37, %v1062_v36  ;;  %v2217_v60 = vpack.c.bf16 %v2115_v43, %v2114_v42  ;;  %v2119_v16 = vmax.f32 %v2055_v22, 0.0  ;;  %v1990_v19 = vmul.f32 %v5057_v62, %v1921_v1  ;;  %v873_v36 = vld [vmem:[#allocation5 + $0x1f8] sm:$0xff] }
  0xde   :  { %v1166_v14 = vpack.c.bf16 %v1065_v47, %v1064_v46  ;;  %v1068_v20 = vmax.f32 %v1004_v61, 0.0  ;;  %v939_v24 = vmul.f32 %v5053_v58, %v870_v6  ;;  %v2121_v27 = vmax.f32 %v2057_v5, 0.0  ;;  %v1925_v42 = vld [vmem:[#allocation7 + $0x1f8] sm:$0xff]  ;;  %v304_v46 = vld [vmem:[#allocation2] sm:$0xff]  ;;  %v305_v47 = vld [vmem:[#allocation2 + $0x8] sm:$0xff] }
  0xdf   :  { %3992 = vmatmul.mubr.bf16.gmra.mrb[40].mxu1 %v1161_v44  ;;  %v1985_v44 = vmul.f32 %v5057_v62, %v1916_v29  ;;  %v1991_v28 = vmul.f32 %v5057_v62, %v1922_v12  ;;  %v1992_v29 = vmul.f32 %v5057_v62, %v1923_v13  ;;  %v1006_v30 = vadd.f32 %v5061_v21, %v937_v10  ;;  %v5153_v5 = vld [vmem:[#allocation10 + $0x7] ss:$0 sm:$0xff]  ;;  %v307_v10 = vld [vmem:[#allocation2 + $0x18] sm:$0xff] }
  0xe0   :  { %4152 = vmatmul.mubr.bf16.gmra.mrb[40].mxu0 %v2213_v49  ;;  %3995 = vmatprep.mubr.bf16.mxu1 %v1162_v50  ;;  %v936_v49 = vmul.f32 %v5053_v58, %v867_v35  ;;  %v2116_v50 = vmax.f32 %v2052_v32, 0.0  ;;  %v2059_v34 = vadd.f32 %v5065_v4, %v1990_v19  ;;  %v872_v35 = vld [vmem:[#allocation5 + $0x1f0] sm:$0xff]  ;;  %v942_v52 = vmul.f32 %v5053_v58, %v873_v36 }
  0xe1   :  { %4155 = vmatprep.mubr.bf16.mxu0 %v2214_v17  ;;  %v1003_v17 = vadd.f32 %v5061_v21, %v934_v39  ;;  %v2054_v56 = vadd.f32 %v5065_v4, %v1985_v44  ;;  %v1008_v39 = vadd.f32 %v5061_v21, %v939_v24  ;;  %v2060_v44 = vadd.f32 %v5065_v4, %v1991_v28  ;;  %v309_v24 = vld [vmem:[#allocation2 + $0x28] sm:$0xff]  ;;  %v2645_v28 = vld [vmem:[#allocation8 + $0x20] sm:$0xff] }
  0xe2   :  { %v1005_v63 = vadd.f32 %v5061_v21, %v936_v49  ;;  %v2218_v2 = vpack.c.bf16 %v2117_v51, %v2116_v50  ;;  %v2061_v45 = vadd.f32 %v5065_v4, %v1992_v29  ;;  %v1070_v49 = vmax.f32 %v1006_v30, 0.0  ;;  %v2646_v29 = vld [vmem:[#allocation8 + $0x28] sm:$0xff] }
  0xe3   :  { %v1067_v9 = vmax.f32 %v1003_v17, 0.0  ;;  %v2118_v15 = vmax.f32 %v2054_v56, 0.0  ;;  %v941_v51 = vmul.f32 %v5053_v58, %v872_v35  ;;  %v5141_v17 = vld [vmem:[#allocation10 + $0x3] ss:$0 sm:$0xff]  ;;  %v2123_v56 = vmax.f32 %v2059_v34, 0.0 }
  0xe4   :  { %v1069_v23 = vmax.f32 %v1005_v63, 0.0  ;;  %v1993_v22 = vmul.f32 %v5057_v62, %v1924_v41  ;;  %v1994_v57 = vmul.f32 %v5057_v62, %v1925_v42  ;;  %v1072_v59 = vmax.f32 %v1008_v39, 0.0 }
  0xe5   :  { %v1167_v32 = vpack.c.bf16 %v1067_v9, %v1066_v8  ;;  %v2219_v37 = vpack.c.bf16 %v2119_v16, %v2118_v15  ;;  %v374_v61 = vmul.f32 %v5137_v48, %v305_v47  ;;  %v2125_v63 = vmax.f32 %v2061_v45, 0.0  ;;  %v306_v9 = vld [vmem:[#allocation2 + $0x10] sm:$0xff] }
  0xe6   :  { %v1168_v38 = vpack.c.bf16 %v1069_v23, %v1068_v20  ;;  %v2710_v1 = vmul.f32 %v5141_v17, %v2641_v53  ;;  %v2063_v8 = vadd.f32 %v5065_v4, %v1994_v57  ;;  %v2643_v16 = vld [vmem:[#allocation8 + $0x10] sm:$0xff]  ;;  %v308_v23 = vld [vmem:[#allocation2 + $0x20] sm:$0xff]  ;;  %v2715_v41 = vmul.f32 %v5141_v17, %v2646_v29 }
  0xe7   :  { %3996 = vmatmul.mubr.bf16.gmra.mrb[44].mxu1 %v1163_v18  ;;  %v1989_v18 = vmul.f32 %v5057_v62, %v1920_v0  ;;  %v5147_v0 = vld [vmem:[#allocation10 + $0x4] ss:$0 sm:$0xff]  ;;  %v1011_v62 = vadd.f32 %v5061_v21, %v942_v52  ;;  %v377_v36 = vmul.f32 %v5137_v48, %v308_v23  ;;  %v310_v47 = vld [vmem:[#allocation2 + $0x30] sm:$0xff] }
  0xe8   :  { %4156 = vmatmul.mubr.bf16.gmra.mrb[44].mxu0 %v2215_v25  ;;  %3999 = vmatprep.mubr.bf16.mxu1 %v1164_v26  ;;  %v940_v25 = vmul.f32 %v5053_v58, %v871_v7  ;;  %v2120_v26 = vmax.f32 %v2056_v3, 0.0  ;;  %v2124_v58 = vmax.f32 %v2060_v44, 0.0  ;;  %v1010_v3 = vadd.f32 %v5061_v21, %v941_v51  ;;  %v2651_v29 = vld [vmem:[#allocation8 + $0x50] sm:$0xff] }
  0xe9   :  { %4159 = vmatprep.mubr.bf16.mxu0 %v2216_v31  ;;  %v1007_v31 = vadd.f32 %v5061_v21, %v938_v11  ;;  %v2058_v33 = vadd.f32 %v5065_v4, %v1989_v18  ;;  %v2062_v7 = vadd.f32 %v5065_v4, %v1993_v22  ;;  %v443_v15 = vadd.f32 %v5147_v0, %v374_v61  ;;  %v2644_v18 = vld [vmem:[#allocation8 + $0x18] sm:$0xff] }
  0xea   :  { %v1009_v40 = vadd.f32 %v5061_v21, %v940_v25  ;;  %v2220_v43 = vpack.c.bf16 %v2121_v27, %v2120_v26  ;;  %v2222_v19 = vpack.c.bf16 %v2125_v63, %v2124_v58  ;;  %v2779_v21 = vadd.f32 %v5153_v5, %v2710_v1  ;;  %v2649_v1 = vld [vmem:[#allocation8 + $0x40] sm:$0xff] }
  0xeb   :  { %v1071_v50 = vmax.f32 %v1007_v31, 0.0  ;;  %v1074_v25 = vmax.f32 %v1010_v3, 0.0  ;;  %v1075_v26 = vmax.f32 %v1011_v62, 0.0  ;;  %v375_v4 = vmul.f32 %v5137_v48, %v306_v9 }
  0xec   :  { %v376_v27 = vmul.f32 %v5137_v48, %v307_v10  ;;  %v2126_v30 = vmax.f32 %v2062_v7, 0.0  ;;  %v2127_v31 = vmax.f32 %v2063_v8, 0.0  ;;  %v507_v35 = vmax.f32 %v443_v15, 0.0 }
  0xed   :  { %v1169_v6 = vpack.c.bf16 %v1071_v50, %v1070_v49  ;;  %v444_v42 = vadd.f32 %v5147_v0, %v375_v4  ;;  %v1171_v44 = vpack.c.bf16 %v1075_v26, %v1074_v25  ;;  %v311_v49 = vld [vmem:[#allocation2 + $0x38] sm:$0xff]  ;;  %v446_v52 = vadd.f32 %v5147_v0, %v377_v36 }
  0xee   :  { %v2223_v50 = vpack.c.bf16 %v2127_v31, %v2126_v30  ;;  %v2784_v57 = vadd.f32 %v5153_v5, %v2715_v41  ;;  %v379_v58 = vmul.f32 %v5137_v48, %v310_v47  ;;  %v380_v63 = vmul.f32 %v5137_v48, %v311_v49  ;;  %v315_v25 = vld [vmem:[#allocation2 + $0x58] sm:$0xff]  ;;  %v2654_v41 = vld [vmem:[#allocation8 + $0x68] sm:$0xff] }
  0xef   :  { %4000 = vmatmul.mubr.bf16.gmra.mrb[48].mxu1 %v1165_v55  ;;  %v2122_v55 = vmax.f32 %v2058_v33, 0.0  ;;  %v2713_v33 = vmul.f32 %v5141_v17, %v2644_v18  ;;  %v510_v8 = vmax.f32 %v446_v52, 0.0  ;;  %v2718_v15 = vmul.f32 %v5141_v17, %v2649_v1  ;;  %v2652_v30 = vld [vmem:[#allocation8 + $0x58] sm:$0xff] }
  0xf0   :  { %4160 = vmatmul.mubr.bf16.gmra.mrb[48].mxu0 %v2217_v60  ;;  %4003 = vmatprep.mubr.bf16.mxu1 %v1166_v14  ;;  %v1073_v60 = vmax.f32 %v1009_v40, 0.0  ;;  %v373_v14 = vmul.f32 %v5137_v48, %v304_v46  ;;  %v2714_v40 = vmul.f32 %v5141_v17, %v2645_v28  ;;  %v448_v18 = vadd.f32 %v5147_v0, %v379_v58 }
  0xf1   :  { %4163 = vmatprep.mubr.bf16.mxu0 %v2218_v2  ;;  %v2711_v2 = vmul.f32 %v5141_v17, %v2642_v54  ;;  %v2221_v11 = vpack.c.bf16 %v2123_v56, %v2122_v55  ;;  %v2782_v46 = vadd.f32 %v5153_v5, %v2713_v33  ;;  %v2647_v54 = vld [vmem:[#allocation8 + $0x30] sm:$0xff]  ;;  %v2648_v55 = vld [vmem:[#allocation8 + $0x38] sm:$0xff] }
  0xf2   :  { %v1170_v12 = vpack.c.bf16 %v1073_v60, %v1072_v59  ;;  %v442_v13 = vadd.f32 %v5147_v0, %v373_v14  ;;  %v2783_v22 = vadd.f32 %v5153_v5, %v2714_v40  ;;  %v312_v59 = vld [vmem:[#allocation2 + $0x40] sm:$0xff]  ;;  %v313_v60 = vld [vmem:[#allocation2 + $0x48] sm:$0xff]  ;;  %v508_v14 = vmax.f32 %v444_v42, 0.0 }
  0xf3   :  { %v2780_v20 = vadd.f32 %v5153_v5, %v2711_v2  ;;  %v2650_v2 = vld [vmem:[#allocation8 + $0x48] sm:$0xff]  ;;  %v2846_v62 = vmax.f32 %v2782_v46, 0.0  ;;  %v2717_v7 = vmul.f32 %v5141_v17, %v2648_v55  ;;  %v381_v10 = vmul.f32 %v5137_v48, %v312_v59  ;;  %v2653_v40 = vld [vmem:[#allocation8 + $0x60] sm:$0xff] }
  0xf4   :  { %v506_v34 = vmax.f32 %v442_v13, 0.0  ;;  %v2848_v13 = vmax.f32 %v2784_v57, 0.0  ;;  %v512_v36 = vmax.f32 %v448_v18, 0.0 }
  0xf5   :  { %v2844_v39 = vmax.f32 %v2780_v20, 0.0  ;;  %v2786_v23 = vadd.f32 %v5153_v5, %v2717_v7 }
  0xf6   :  { %v762_v51 = vpack.c.bf16 %v507_v35, %v506_v34  ;;  %v316_v34 = vld [vmem:[#allocation2 + $0x60] sm:$0xff]  ;;  %v317_v35 = vld [vmem:[#allocation2 + $0x68] sm:$0xff] }
  0xf7   :  { %4004 = vmatmul.mubr.bf16.gmra.mrb[52].mxu1 %v1167_v32  ;;  %v2712_v32 = vmul.f32 %v5141_v17, %v2643_v16  ;;  %v2719_v16 = vmul.f32 %v5141_v17, %v2650_v2  ;;  %v385_v49 = vmul.f32 %v5137_v48, %v316_v34  ;;  %v2655_v2 = vld [vmem:[#allocation8 + $0x70] sm:$0xff] }
  0xf8   :  { %4164 = vmatmul.mubr.bf16.gmra.mrb[52].mxu0 %v2219_v37  ;;  %4007 = vmatprep.mubr.bf16.mxu1 %v1168_v38  ;;  %v378_v37 = vmul.f32 %v5137_v48, %v309_v24  ;;  %v2843_v38 = vmax.f32 %v2779_v21, 0.0  ;;  %v314_v24 = vld [vmem:[#allocation2 + $0x50] sm:$0xff] }
  0xf9   :  { %4167 = vmatprep.mubr.bf16.mxu0 %v2220_v43  ;;  %v445_v43 = vadd.f32 %v5147_v0, %v376_v27  ;;  %v2781_v45 = vadd.f32 %v5153_v5, %v2712_v32  ;;  %v450_v27 = vadd.f32 %v5147_v0, %v381_v10  ;;  %v2787_v32 = vadd.f32 %v5153_v5, %v2718_v15  ;;  %v2657_v15 = vld [vmem:[#allocation8 + $0x80] sm:$0xff] }
  0xfa   :  { %v447_v53 = vadd.f32 %v5147_v0, %v378_v37  ;;  %v2971_v56 = vpack.c.bf16 %v2844_v39, %v2843_v38  ;;  %v2788_v33 = vadd.f32 %v5153_v5, %v2719_v16  ;;  %v383_v38 = vmul.f32 %v5137_v48, %v314_v24  ;;  %v2658_v16 = vld [vmem:[#allocation8 + $0x88] sm:$0xff] }
  0xfb   :  { %v509_v61 = vmax.f32 %v445_v43, 0.0  ;;  %v2845_v3 = vmax.f32 %v2781_v45, 0.0  ;;  %v384_v39 = vmul.f32 %v5137_v48, %v315_v25  ;;  %v2850_v43 = vmax.f32 %v2786_v23, 0.0 }
  0xfc   :  { %v511_v9 = vmax.f32 %v447_v53, 0.0  ;;  %v2721_v45 = vmul.f32 %v5141_v17, %v2652_v30  ;;  %v514_v46 = vmax.f32 %v450_v27, 0.0  ;;  %v2852_v52 = vmax.f32 %v2788_v33, 0.0 }
  0xfd   :  { %v763_v21 = vpack.c.bf16 %v509_v61, %v508_v14  ;;  %v2972_v26 = vpack.c.bf16 %v2846_v62, %v2845_v3  ;;  %v2722_v53 = vmul.f32 %v5141_v17, %v2653_v40  ;;  %v452_v55 = vadd.f32 %v5147_v0, %v383_v38  ;;  %v319_v14 = vld [vmem:[#allocation2 + $0x78] sm:$0xff] }
  0xfe   :  { %v764_v4 = vpack.c.bf16 %v511_v9, %v510_v8  ;;  %v2790_v59 = vadd.f32 %v5153_v5, %v2721_v45  ;;  %v2656_v3 = vld [vmem:[#allocation8 + $0x78] sm:$0xff]  ;;  %v320_v8 = vld [vmem:[#allocation2 + $0x80] sm:$0xff]  ;;  %v321_v9 = vld [vmem:[#allocation2 + $0x88] sm:$0xff] }
  0xff   :  { %4008 = vmatmul.mubr.bf16.gmra.mrb[56].mxu1 %v1169_v6  ;;  %v2716_v6 = vmul.f32 %v5141_v17, %v2647_v54  ;;  %v2723_v54 = vmul.f32 %v5141_v17, %v2654_v41  ;;  %v516_v10 = vmax.f32 %v452_v55, 0.0  ;;  %v389_v25 = vmul.f32 %v5137_v48, %v320_v8  ;;  %v2659_v41 = vld [vmem:[#allocation8 + $0x90] sm:$0xff] }
 0x100   :  { %4168 = vmatmul.mubr.bf16.gmra.mrb[56].mxu0 %v2221_v11  ;;  %4011 = vmatprep.mubr.bf16.mxu1 %v1170_v12  ;;  %v382_v11 = vmul.f32 %v5137_v48, %v313_v60  ;;  %v2847_v12 = vmax.f32 %v2783_v22, 0.0  ;;  %v318_v60 = vld [vmem:[#allocation2 + $0x70] sm:$0xff] }
 0x101   :  { %4171 = vmatprep.mubr.bf16.mxu0 %v2222_v19  ;;  %v449_v19 = vadd.f32 %v5147_v0, %v380_v63  ;;  %v2785_v20 = vadd.f32 %v5153_v5, %v2716_v6  ;;  %v454_v63 = vadd.f32 %v5147_v0, %v385_v49  ;;  %v2791_v6 = vadd.f32 %v5153_v5, %v2722_v53  ;;  %v2661_v53 = vld [vmem:[#allocation8 + $0xa0] sm:$0xff] }
 0x102   :  { %v451_v28 = vadd.f32 %v5147_v0, %v382_v11  ;;  %v2973_v31 = vpack.c.bf16 %v2848_v13, %v2847_v12  ;;  %v2792_v7 = vadd.f32 %v5153_v5, %v2723_v54  ;;  %v387_v12 = vmul.f32 %v5137_v48, %v318_v60  ;;  %v2662_v54 = vld [vmem:[#allocation8 + $0xa8] sm:$0xff] }
 0x103   :  { %v513_v37 = vmax.f32 %v449_v19, 0.0  ;;  %v2849_v42 = vmax.f32 %v2785_v20, 0.0  ;;  %v388_v13 = vmul.f32 %v5137_v48, %v319_v14  ;;  %v2854_v19 = vmax.f32 %v2790_v59, 0.0 }
 0x104   :  { %v515_v47 = vmax.f32 %v451_v28, 0.0  ;;  %v2725_v20 = vmul.f32 %v5141_v17, %v2656_v3  ;;  %v518_v23 = vmax.f32 %v454_v63, 0.0  ;;  %v2856_v27 = vmax.f32 %v2792_v7, 0.0 }
 0x105   :  { %v765_v22 = vpack.c.bf16 %v513_v37, %v512_v36  ;;  %v2974_v61 = vpack.c.bf16 %v2850_v43, %v2849_v42  ;;  %v2726_v28 = vmul.f32 %v5141_v17, %v2657_v15  ;;  %v456_v30 = vadd.f32 %v5147_v0, %v387_v12  ;;  %v323_v36 = vld [vmem:[#allocation2 + $0x98] sm:$0xff] }
 0x106   :  { %v766_v58 = vpack.c.bf16 %v515_v47, %v514_v46  ;;  %v2794_v34 = vadd.f32 %v5153_v5, %v2725_v20  ;;  %v2660_v42 = vld [vmem:[#allocation8 + $0x98] sm:$0xff]  ;;  %v324_v46 = vld [vmem:[#allocation2 + $0xa0] sm:$0xff]  ;;  %v325_v47 = vld [vmem:[#allocation2 + $0xa8] sm:$0xff] }
 0x107   :  { %4012 = vmatmul.mubr.bf16.gmra.mrb[60].mxu1 %v1171_v44  ;;  %v2720_v44 = vmul.f32 %v5141_v17, %v2651_v29  ;;  %v2727_v29 = vmul.f32 %v5141_v17, %v2658_v16  ;;  %v520_v49 = vmax.f32 %v456_v30, 0.0  ;;  %v393_v14 = vmul.f32 %v5137_v48, %v324_v46  ;;  %v2663_v16 = vld [vmem:[#allocation8 + $0xb0] sm:$0xff] }
 0x108   :  { %4172 = vmatmul.mubr.bf16.gmra.mrb[60].mxu0 %v2223_v50  ;;  %4031 = vmatprep.mubr.bf16.mxu1 %v762_v51  ;;  %v386_v50 = vmul.f32 %v5137_v48, %v317_v35  ;;  %v2851_v51 = vmax.f32 %v2787_v32, 0.0  ;;  %v322_v35 = vld [vmem:[#allocation2 + $0x90] sm:$0xff] }
 0x109   :  { %4191 = vmatprep.mubr.bf16.mxu0 %v2971_v56  ;;  %v453_v56 = vadd.f32 %v5147_v0, %v384_v39  ;;  %v2789_v57 = vadd.f32 %v5153_v5, %v2720_v44  ;;  %v458_v39 = vadd.f32 %v5147_v0, %v389_v25  ;;  %v2795_v44 = vadd.f32 %v5153_v5, %v2726_v28  ;;  %v2665_v28 = vld [vmem:[#allocation8 + $0xc0] sm:$0xff] }
 0x10a   :  { %v455_v1 = vadd.f32 %v5147_v0, %v386_v50  ;;  %v2975_v62 = vpack.c.bf16 %v2852_v52, %v2851_v51  ;;  %v2796_v45 = vadd.f32 %v5153_v5, %v2727_v29  ;;  %v391_v51 = vmul.f32 %v5137_v48, %v322_v35  ;;  %v2666_v29 = vld [vmem:[#allocation8 + $0xc8] sm:$0xff] }
 0x10b   :  { %v517_v11 = vmax.f32 %v453_v56, 0.0  ;;  %v2853_v18 = vmax.f32 %v2789_v57, 0.0  ;;  %v392_v52 = vmul.f32 %v5137_v48, %v323_v36  ;;  %v2858_v56 = vmax.f32 %v2794_v34, 0.0 }
 0x10c   :  { %v519_v24 = vmax.f32 %v455_v1, 0.0  ;;  %v2729_v57 = vmul.f32 %v5141_v17, %v2660_v42  ;;  %v522_v59 = vmax.f32 %v458_v39, 0.0  ;;  %v2860_v63 = vmax.f32 %v2796_v45, 0.0 }
 0x10d   :  { %v767_v32 = vpack.c.bf16 %v517_v11, %v516_v10  ;;  %v2976_v37 = vpack.c.bf16 %v2854_v19, %v2853_v18  ;;  %v2730_v1 = vmul.f32 %v5141_v17, %v2661_v53  ;;  %v460_v3 = vadd.f32 %v5147_v0, %v391_v51  ;;  %v327_v10 = vld [vmem:[#allocation2 + $0xb8] sm:$0xff] }
 0x10e   :  { %v768_v38 = vpack.c.bf16 %v519_v24, %v518_v23  ;;  %v2798_v8 = vadd.f32 %v5153_v5, %v2729_v57  ;;  %v2664_v18 = vld [vmem:[#allocation8 + $0xb8] sm:$0xff]  ;;  %v328_v23 = vld [vmem:[#allocation2 + $0xc0] sm:$0xff]  ;;  %v329_v24 = vld [vmem:[#allocation2 + $0xc8] sm:$0xff] }
 0x10f   :  { %4032 = vmatmul.mubr.bf16.vlgmr.msra.gmra.mrb[0].mxu1 %v763_v21  ;;  %v2724_v21 = vmul.f32 %v5141_v17, %v2655_v2  ;;  %v2731_v2 = vmul.f32 %v5141_v17, %v2662_v54  ;;  %v524_v25 = vmax.f32 %v460_v3, 0.0  ;;  %v397_v36 = vmul.f32 %v5137_v48, %v328_v23  ;;  %v2667_v54 = vld [vmem:[#allocation8 + $0xd0] sm:$0xff] }
 0x110   :  { %4192 = vmatmul.mubr.bf16.vlgmr.msra.gmra.mrb[0].mxu0 %v2972_v26  ;;  %4035 = vmatprep.mubr.bf16.mxu1 %v764_v4  ;;  %v390_v26 = vmul.f32 %v5137_v48, %v321_v9  ;;  %v2855_v4 = vmax.f32 %v2791_v6, 0.0  ;;  %v326_v9 = vld [vmem:[#allocation2 + $0xb0] sm:$0xff] }
 0x111   :  { %4195 = vmatprep.mubr.bf16.mxu0 %v2973_v31  ;;  %v457_v31 = vadd.f32 %v5147_v0, %v388_v13  ;;  %v2793_v33 = vadd.f32 %v5153_v5, %v2724_v21  ;;  %v462_v13 = vadd.f32 %v5147_v0, %v393_v14  ;;  %v2799_v21 = vadd.f32 %v5153_v5, %v2730_v1  ;;  %v2669_v1 = vld [vmem:[#allocation8 + $0xe0] sm:$0xff] }
 0x112   :  { %v459_v40 = vadd.f32 %v5147_v0, %v390_v26  ;;  %v2977_v43 = vpack.c.bf16 %v2856_v27, %v2855_v4  ;;  %v2800_v20 = vadd.f32 %v5153_v5, %v2731_v2  ;;  %v395_v4 = vmul.f32 %v5137_v48, %v326_v9  ;;  %v2670_v2 = vld [vmem:[#allocation8 + $0xe8] sm:$0xff] }
 0x113   :  { %v521_v50 = vmax.f32 %v457_v31, 0.0  ;;  %v2857_v55 = vmax.f32 %v2793_v33, 0.0  ;;  %v396_v27 = vmul.f32 %v5137_v48, %v327_v10  ;;  %v2862_v31 = vmax.f32 %v2798_v8, 0.0 }
 0x114   :  { %v523_v60 = vmax.f32 %v459_v40, 0.0  ;;  %v2733_v33 = vmul.f32 %v5141_v17, %v2664_v18  ;;  %v526_v34 = vmax.f32 %v462_v13, 0.0  ;;  %v2864_v39 = vmax.f32 %v2800_v20, 0.0 }
 0x115   :  { %v769_v6 = vpack.c.bf16 %v521_v50, %v520_v49  ;;  %v2978_v11 = vpack.c.bf16 %v2858_v56, %v2857_v55  ;;  %v2734_v40 = vmul.f32 %v5141_v17, %v2665_v28  ;;  %v464_v42 = vadd.f32 %v5147_v0, %v395_v4  ;;  %v331_v49 = vld [vmem:[#allocation2 + $0xd8] sm:$0xff] }
 0x116   :  { %v770_v12 = vpack.c.bf16 %v523_v60, %v522_v59  ;;  %v2802_v46 = vadd.f32 %v5153_v5, %v2733_v33  ;;  %v2668_v55 = vld [vmem:[#allocation8 + $0xd8] sm:$0xff]  ;;  %v332_v59 = vld [vmem:[#allocation2 + $0xe0] sm:$0xff]  ;;  %v333_v60 = vld [vmem:[#allocation2 + $0xe8] sm:$0xff] }
 0x117   :  { %4036 = vmatmul.mubr.bf16.gmra.mrb[4].mxu1 %v765_v22  ;;  %v2728_v22 = vmul.f32 %v5141_v17, %v2659_v41  ;;  %v2735_v41 = vmul.f32 %v5141_v17, %v2666_v29  ;;  %v528_v14 = vmax.f32 %v464_v42, 0.0  ;;  %v401_v10 = vmul.f32 %v5137_v48, %v332_v59  ;;  %v2671_v29 = vld [vmem:[#allocation8 + $0xf0] sm:$0xff] }
 0x118   :  { %4196 = vmatmul.mubr.bf16.gmra.mrb[4].mxu0 %v2974_v61  ;;  %4039 = vmatprep.mubr.bf16.mxu1 %v766_v58  ;;  %v394_v61 = vmul.f32 %v5137_v48, %v325_v47  ;;  %v2859_v58 = vmax.f32 %v2795_v44, 0.0  ;;  %v330_v47 = vld [vmem:[#allocation2 + $0xd0] sm:$0xff] }
 0x119   :  { %4199 = vmatprep.mubr.bf16.mxu0 %v2975_v62  ;;  %v461_v62 = vadd.f32 %v5147_v0, %v392_v52  ;;  %v2797_v7 = vadd.f32 %v5153_v5, %v2728_v22  ;;  %v466_v52 = vadd.f32 %v5147_v0, %v397_v36  ;;  %v2803_v22 = vadd.f32 %v5153_v5, %v2734_v40  ;;  %v2673_v40 = vld [vmem:[#allocation8 + $0x100] sm:$0xff] }
 0x11a   :  { %v463_v15 = vadd.f32 %v5147_v0, %v394_v61  ;;  %v2979_v19 = vpack.c.bf16 %v2860_v63, %v2859_v58  ;;  %v2804_v57 = vadd.f32 %v5153_v5, %v2735_v41  ;;  %v399_v58 = vmul.f32 %v5137_v48, %v330_v47  ;;  %v2674_v41 = vld [vmem:[#allocation8 + $0x108] sm:$0xff] }
 0x11b   :  { %v525_v26 = vmax.f32 %v461_v62, 0.0  ;;  %v2861_v30 = vmax.f32 %v2797_v7, 0.0  ;;  %v400_v63 = vmul.f32 %v5137_v48, %v331_v49  ;;  %v2866_v62 = vmax.f32 %v2802_v46, 0.0 }
 0x11c   :  { %v527_v35 = vmax.f32 %v463_v15, 0.0  ;;  %v2737_v7 = vmul.f32 %v5141_v17, %v2668_v55  ;;  %v530_v8 = vmax.f32 %v466_v52, 0.0  ;;  %v2868_v13 = vmax.f32 %v2804_v57, 0.0 }
 0x11d   :  { %v771_v44 = vpack.c.bf16 %v525_v26, %v524_v25  ;;  %v2980_v50 = vpack.c.bf16 %v2862_v31, %v2861_v30  ;;  %v2738_v15 = vmul.f32 %v5141_v17, %v2669_v1  ;;  %v468_v18 = vadd.f32 %v5147_v0, %v399_v58  ;;  %v335_v25 = vld [vmem:[#allocation2 + $0xf8] sm:$0xff] }
 0x11e   :  { %v772_v51 = vpack.c.bf16 %v527_v35, %v526_v34  ;;  %v2806_v23 = vadd.f32 %v5153_v5, %v2737_v7  ;;  %v2672_v30 = vld [vmem:[#allocation8 + $0xf8] sm:$0xff]  ;;  %v336_v34 = vld [vmem:[#allocation2 + $0x100] sm:$0xff]  ;;  %v337_v35 = vld [vmem:[#allocation2 + $0x108] sm:$0xff] }
 0x11f   :  { %4040 = vmatmul.mubr.bf16.gmra.mrb[8].mxu1 %v767_v32  ;;  %v2732_v32 = vmul.f32 %v5141_v17, %v2663_v16  ;;  %v2739_v16 = vmul.f32 %v5141_v17, %v2670_v2  ;;  %v532_v36 = vmax.f32 %v468_v18, 0.0  ;;  %v405_v49 = vmul.f32 %v5137_v48, %v336_v34  ;;  %v2675_v2 = vld [vmem:[#allocation8 + $0x110] sm:$0xff] }
 0x120   :  { %4200 = vmatmul.mubr.bf16.gmra.mrb[8].mxu0 %v2976_v37  ;;  %4043 = vmatprep.mubr.bf16.mxu1 %v768_v38  ;;  %v398_v37 = vmul.f32 %v5137_v48, %v329_v24  ;;  %v2863_v38 = vmax.f32 %v2799_v21, 0.0  ;;  %v334_v24 = vld [vmem:[#allocation2 + $0xf0] sm:$0xff] }
 0x121   :  { %4203 = vmatprep.mubr.bf16.mxu0 %v2977_v43  ;;  %v465_v43 = vadd.f32 %v5147_v0, %v396_v27  ;;  %v2801_v45 = vadd.f32 %v5153_v5, %v2732_v32  ;;  %v470_v27 = vadd.f32 %v5147_v0, %v401_v10  ;;  %v2807_v32 = vadd.f32 %v5153_v5, %v2738_v15  ;;  %v2677_v15 = vld [vmem:[#allocation8 + $0x120] sm:$0xff] }
 0x122   :  { %v467_v53 = vadd.f32 %v5147_v0, %v398_v37  ;;  %v2981_v56 = vpack.c.bf16 %v2864_v39, %v2863_v38  ;;  %v2808_v33 = vadd.f32 %v5153_v5, %v2739_v16  ;;  %v403_v38 = vmul.f32 %v5137_v48, %v334_v24  ;;  %v2678_v16 = vld [vmem:[#allocation8 + $0x128] sm:$0xff] }
 0x123   :  { %v529_v61 = vmax.f32 %v465_v43, 0.0  ;;  %v2865_v3 = vmax.f32 %v2801_v45, 0.0  ;;  %v404_v39 = vmul.f32 %v5137_v48, %v335_v25  ;;  %v2870_v43 = vmax.f32 %v2806_v23, 0.0 }
 0x124   :  { %v531_v9 = vmax.f32 %v467_v53, 0.0  ;;  %v2741_v45 = vmul.f32 %v5141_v17, %v2672_v30  ;;  %v534_v46 = vmax.f32 %v470_v27, 0.0  ;;  %v2872_v52 = vmax.f32 %v2808_v33, 0.0 }
 0x125   :  { %v773_v21 = vpack.c.bf16 %v529_v61, %v528_v14  ;;  %v2982_v26 = vpack.c.bf16 %v2866_v62, %v2865_v3  ;;  %v2742_v53 = vmul.f32 %v5141_v17, %v2673_v40  ;;  %v472_v55 = vadd.f32 %v5147_v0, %v403_v38  ;;  %v339_v14 = vld [vmem:[#allocation2 + $0x118] sm:$0xff] }
 0x126   :  { %v774_v4 = vpack.c.bf16 %v531_v9, %v530_v8  ;;  %v2810_v59 = vadd.f32 %v5153_v5, %v2741_v45  ;;  %v2676_v3 = vld [vmem:[#allocation8 + $0x118] sm:$0xff]  ;;  %v340_v8 = vld [vmem:[#allocation2 + $0x120] sm:$0xff]  ;;  %v341_v9 = vld [vmem:[#allocation2 + $0x128] sm:$0xff] }
 0x127   :  { %4044 = vmatmul.mubr.bf16.gmra.mrb[12].mxu1 %v769_v6  ;;  %v2736_v6 = vmul.f32 %v5141_v17, %v2667_v54  ;;  %v2743_v54 = vmul.f32 %v5141_v17, %v2674_v41  ;;  %v536_v10 = vmax.f32 %v472_v55, 0.0  ;;  %v409_v25 = vmul.f32 %v5137_v48, %v340_v8  ;;  %v2679_v41 = vld [vmem:[#allocation8 + $0x130] sm:$0xff] }
 0x128   :  { %4204 = vmatmul.mubr.bf16.gmra.mrb[12].mxu0 %v2978_v11  ;;  %4047 = vmatprep.mubr.bf16.mxu1 %v770_v12  ;;  %v402_v11 = vmul.f32 %v5137_v48, %v333_v60  ;;  %v2867_v12 = vmax.f32 %v2803_v22, 0.0  ;;  %v338_v60 = vld [vmem:[#allocation2 + $0x110] sm:$0xff] }
 0x129   :  { %4207 = vmatprep.mubr.bf16.mxu0 %v2979_v19  ;;  %v469_v19 = vadd.f32 %v5147_v0, %v400_v63  ;;  %v2805_v20 = vadd.f32 %v5153_v5, %v2736_v6  ;;  %v474_v63 = vadd.f32 %v5147_v0, %v405_v49  ;;  %v2811_v6 = vadd.f32 %v5153_v5, %v2742_v53  ;;  %v2681_v53 = vld [vmem:[#allocation8 + $0x140] sm:$0xff] }
 0x12a   :  { %v471_v28 = vadd.f32 %v5147_v0, %v402_v11  ;;  %v2983_v31 = vpack.c.bf16 %v2868_v13, %v2867_v12  ;;  %v2812_v7 = vadd.f32 %v5153_v5, %v2743_v54  ;;  %v407_v12 = vmul.f32 %v5137_v48, %v338_v60  ;;  %v2682_v54 = vld [vmem:[#allocation8 + $0x148] sm:$0xff] }
 0x12b   :  { %v533_v37 = vmax.f32 %v469_v19, 0.0  ;;  %v2869_v42 = vmax.f32 %v2805_v20, 0.0  ;;  %v408_v13 = vmul.f32 %v5137_v48, %v339_v14  ;;  %v2874_v19 = vmax.f32 %v2810_v59, 0.0 }
 0x12c   :  { %v535_v47 = vmax.f32 %v471_v28, 0.0  ;;  %v2745_v20 = vmul.f32 %v5141_v17, %v2676_v3  ;;  %v538_v23 = vmax.f32 %v474_v63, 0.0  ;;  %v2876_v27 = vmax.f32 %v2812_v7, 0.0 }
 0x12d   :  { %v775_v22 = vpack.c.bf16 %v533_v37, %v532_v36  ;;  %v2984_v61 = vpack.c.bf16 %v2870_v43, %v2869_v42  ;;  %v2746_v28 = vmul.f32 %v5141_v17, %v2677_v15  ;;  %v476_v30 = vadd.f32 %v5147_v0, %v407_v12  ;;  %v343_v36 = vld [vmem:[#allocation2 + $0x138] sm:$0xff] }
 0x12e   :  { %v776_v58 = vpack.c.bf16 %v535_v47, %v534_v46  ;;  %v2814_v34 = vadd.f32 %v5153_v5, %v2745_v20  ;;  %v2680_v42 = vld [vmem:[#allocation8 + $0x138] sm:$0xff]  ;;  %v344_v46 = vld [vmem:[#allocation2 + $0x140] sm:$0xff]  ;;  %v345_v47 = vld [vmem:[#allocation2 + $0x148] sm:$0xff] }
 0x12f   :  { %4048 = vmatmul.mubr.bf16.gmra.mrb[16].mxu1 %v771_v44  ;;  %v2740_v44 = vmul.f32 %v5141_v17, %v2671_v29  ;;  %v2747_v29 = vmul.f32 %v5141_v17, %v2678_v16  ;;  %v540_v49 = vmax.f32 %v476_v30, 0.0  ;;  %v413_v14 = vmul.f32 %v5137_v48, %v344_v46  ;;  %v2683_v16 = vld [vmem:[#allocation8 + $0x150] sm:$0xff] }
 0x130   :  { %4208 = vmatmul.mubr.bf16.gmra.mrb[16].mxu0 %v2980_v50  ;;  %4051 = vmatprep.mubr.bf16.mxu1 %v772_v51  ;;  %v406_v50 = vmul.f32 %v5137_v48, %v337_v35  ;;  %v2871_v51 = vmax.f32 %v2807_v32, 0.0  ;;  %v342_v35 = vld [vmem:[#allocation2 + $0x130] sm:$0xff] }
 0x131   :  { %4211 = vmatprep.mubr.bf16.mxu0 %v2981_v56  ;;  %v473_v56 = vadd.f32 %v5147_v0, %v404_v39  ;;  %v2809_v57 = vadd.f32 %v5153_v5, %v2740_v44  ;;  %v478_v39 = vadd.f32 %v5147_v0, %v409_v25  ;;  %v2815_v44 = vadd.f32 %v5153_v5, %v2746_v28  ;;  %v2685_v28 = vld [vmem:[#allocation8 + $0x160] sm:$0xff] }
 0x132   :  { %v475_v1 = vadd.f32 %v5147_v0, %v406_v50  ;;  %v2985_v62 = vpack.c.bf16 %v2872_v52, %v2871_v51  ;;  %v2816_v45 = vadd.f32 %v5153_v5, %v2747_v29  ;;  %v411_v51 = vmul.f32 %v5137_v48, %v342_v35  ;;  %v2686_v29 = vld [vmem:[#allocation8 + $0x168] sm:$0xff] }
 0x133   :  { %v537_v11 = vmax.f32 %v473_v56, 0.0  ;;  %v2873_v18 = vmax.f32 %v2809_v57, 0.0  ;;  %v412_v52 = vmul.f32 %v5137_v48, %v343_v36  ;;  %v2878_v56 = vmax.f32 %v2814_v34, 0.0 }
 0x134   :  { %v539_v24 = vmax.f32 %v475_v1, 0.0  ;;  %v2749_v57 = vmul.f32 %v5141_v17, %v2680_v42  ;;  %v542_v59 = vmax.f32 %v478_v39, 0.0  ;;  %v2880_v63 = vmax.f32 %v2816_v45, 0.0 }
 0x135   :  { %v777_v32 = vpack.c.bf16 %v537_v11, %v536_v10  ;;  %v2986_v37 = vpack.c.bf16 %v2874_v19, %v2873_v18  ;;  %v2750_v1 = vmul.f32 %v5141_v17, %v2681_v53  ;;  %v480_v3 = vadd.f32 %v5147_v0, %v411_v51  ;;  %v347_v10 = vld [vmem:[#allocation2 + $0x158] sm:$0xff] }
 0x136   :  { %v778_v38 = vpack.c.bf16 %v539_v24, %v538_v23  ;;  %v2818_v8 = vadd.f32 %v5153_v5, %v2749_v57  ;;  %v2684_v18 = vld [vmem:[#allocation8 + $0x158] sm:$0xff]  ;;  %v348_v23 = vld [vmem:[#allocation2 + $0x160] sm:$0xff]  ;;  %v349_v24 = vld [vmem:[#allocation2 + $0x168] sm:$0xff] }
 0x137   :  { %4052 = vmatmul.mubr.bf16.gmra.mrb[20].mxu1 %v773_v21  ;;  %v2744_v21 = vmul.f32 %v5141_v17, %v2675_v2  ;;  %v2751_v2 = vmul.f32 %v5141_v17, %v2682_v54  ;;  %v544_v25 = vmax.f32 %v480_v3, 0.0  ;;  %v417_v36 = vmul.f32 %v5137_v48, %v348_v23  ;;  %v2687_v54 = vld [vmem:[#allocation8 + $0x170] sm:$0xff] }
 0x138   :  { %4212 = vmatmul.mubr.bf16.gmra.mrb[20].mxu0 %v2982_v26  ;;  %4055 = vmatprep.mubr.bf16.mxu1 %v774_v4  ;;  %v410_v26 = vmul.f32 %v5137_v48, %v341_v9  ;;  %v2875_v4 = vmax.f32 %v2811_v6, 0.0  ;;  %v346_v9 = vld [vmem:[#allocation2 + $0x150] sm:$0xff] }
 0x139   :  { %4215 = vmatprep.mubr.bf16.mxu0 %v2983_v31  ;;  %v477_v31 = vadd.f32 %v5147_v0, %v408_v13  ;;  %v2813_v33 = vadd.f32 %v5153_v5, %v2744_v21  ;;  %v482_v13 = vadd.f32 %v5147_v0, %v413_v14  ;;  %v2819_v21 = vadd.f32 %v5153_v5, %v2750_v1  ;;  %v2689_v1 = vld [vmem:[#allocation8 + $0x180] sm:$0xff] }
 0x13a   :  { %v479_v40 = vadd.f32 %v5147_v0, %v410_v26  ;;  %v2987_v43 = vpack.c.bf16 %v2876_v27, %v2875_v4  ;;  %v2820_v20 = vadd.f32 %v5153_v5, %v2751_v2  ;;  %v415_v4 = vmul.f32 %v5137_v48, %v346_v9  ;;  %v2690_v2 = vld [vmem:[#allocation8 + $0x188] sm:$0xff] }
 0x13b   :  { %v541_v50 = vmax.f32 %v477_v31, 0.0  ;;  %v2877_v55 = vmax.f32 %v2813_v33, 0.0  ;;  %v416_v27 = vmul.f32 %v5137_v48, %v347_v10  ;;  %v2882_v31 = vmax.f32 %v2818_v8, 0.0 }
 0x13c   :  { %v543_v60 = vmax.f32 %v479_v40, 0.0  ;;  %v2753_v33 = vmul.f32 %v5141_v17, %v2684_v18  ;;  %v546_v34 = vmax.f32 %v482_v13, 0.0  ;;  %v2884_v39 = vmax.f32 %v2820_v20, 0.0 }
 0x13d   :  { %v779_v6 = vpack.c.bf16 %v541_v50, %v540_v49  ;;  %v2988_v11 = vpack.c.bf16 %v2878_v56, %v2877_v55  ;;  %v2754_v40 = vmul.f32 %v5141_v17, %v2685_v28  ;;  %v484_v42 = vadd.f32 %v5147_v0, %v415_v4  ;;  %v351_v49 = vld [vmem:[#allocation2 + $0x178] sm:$0xff]  ;;  %v2691_v28 = vld [vmem:[#allocation8 + $0x190] sm:$0xff] }
 0x13e   :  { %v780_v12 = vpack.c.bf16 %v543_v60, %v542_v59  ;;  %v2822_v46 = vadd.f32 %v5153_v5, %v2753_v33  ;;  %v2688_v55 = vld [vmem:[#allocation8 + $0x178] sm:$0xff]  ;;  %v352_v59 = vld [vmem:[#allocation2 + $0x180] sm:$0xff]  ;;  %v353_v60 = vld [vmem:[#allocation2 + $0x188] sm:$0xff] }
 0x13f   :  { %4056 = vmatmul.mubr.bf16.gmra.mrb[24].mxu1 %v775_v22  ;;  %v2748_v22 = vmul.f32 %v5141_v17, %v2679_v41  ;;  %v2755_v41 = vmul.f32 %v5141_v17, %v2686_v29  ;;  %v548_v14 = vmax.f32 %v484_v42, 0.0  ;;  %v421_v10 = vmul.f32 %v5137_v48, %v352_v59  ;;  %v2692_v29 = vld [vmem:[#allocation8 + $0x198] sm:$0xff]  ;;  %v357_v33 = vld [vmem:[#allocation2 + $0x1a8] sm:$0xff]  ;;  %v5357_v42 = vld [vmem:[#allocation10 + $0x3] ss:$0 sm:$0xff] }
 0x140   :  { %4216 = vmatmul.mubr.bf16.gmra.mrb[24].mxu0 %v2984_v61  ;;  %4059 = vmatprep.mubr.bf16.mxu1 %v776_v58  ;;  %v414_v61 = vmul.f32 %v5137_v48, %v345_v47  ;;  %v2879_v58 = vmax.f32 %v2815_v44, 0.0  ;;  %v350_v47 = vld [vmem:[#allocation2 + $0x170] sm:$0xff] }
 0x141   :  { %4219 = vmatprep.mubr.bf16.mxu0 %v2985_v62  ;;  %v481_v62 = vadd.f32 %v5147_v0, %v412_v52  ;;  %v2817_v7 = vadd.f32 %v5153_v5, %v2748_v22  ;;  %v486_v52 = vadd.f32 %v5147_v0, %v417_v36  ;;  %v2823_v22 = vadd.f32 %v5153_v5, %v2754_v40  ;;  %v5353_v36 = vld [vmem:[#allocation10] ss:$0 sm:$0xff]  ;;  %v2694_v40 = vld [vmem:[#allocation8 + $0x1a8] sm:$0xff] }
 0x142   :  { %v483_v15 = vadd.f32 %v5147_v0, %v414_v61  ;;  %v2989_v19 = vpack.c.bf16 %v2880_v63, %v2879_v58  ;;  %v2824_v57 = vadd.f32 %v5153_v5, %v2755_v41  ;;  %v419_v58 = vmul.f32 %v5137_v48, %v350_v47 }
 0x143   :  { %v545_v26 = vmax.f32 %v481_v62, 0.0  ;;  %v2881_v30 = vmax.f32 %v2817_v7, 0.0  ;;  %v420_v63 = vmul.f32 %v5137_v48, %v351_v49  ;;  %v2886_v62 = vmax.f32 %v2822_v46, 0.0 }
 0x144   :  { %v547_v35 = vmax.f32 %v483_v15, 0.0  ;;  %v2757_v7 = vmul.f32 %v5141_v17, %v2688_v55  ;;  %v550_v8 = vmax.f32 %v486_v52, 0.0  ;;  %v2888_v13 = vmax.f32 %v2824_v57, 0.0 }
 0x145   :  { %v781_v44 = vpack.c.bf16 %v545_v26, %v544_v25  ;;  %v2990_v50 = vpack.c.bf16 %v2882_v31, %v2881_v30  ;;  %v2758_v15 = vmul.f32 %v5141_v17, %v2689_v1  ;;  %v488_v18 = vadd.f32 %v5147_v0, %v419_v58  ;;  %v355_v25 = vld [vmem:[#allocation2 + $0x198] sm:$0xff] }
 0x146   :  { %v782_v51 = vpack.c.bf16 %v547_v35, %v546_v34  ;;  %v2826_v23 = vadd.f32 %v5153_v5, %v2757_v7  ;;  %v490_v4 = vadd.f32 %v5147_v0, %v421_v10  ;;  %v426_v47 = vmul.f32 %v5353_v36, %v357_v33  ;;  %v362_v33 = vld [vmem:[#allocation2 + $0x1d0] sm:$0xff] }
 0x147   :  { %4060 = vmatmul.mubr.bf16.gmra.mrb[28].mxu1 %v777_v32  ;;  %v2752_v32 = vmul.f32 %v5141_v17, %v2683_v16  ;;  %v2759_v16 = vmul.f32 %v5141_v17, %v2690_v2  ;;  %v2827_v30 = vadd.f32 %v5153_v5, %v2758_v15  ;;  %v552_v34 = vmax.f32 %v488_v18, 0.0  ;;  %v2695_v2 = vld [vmem:[#allocation8 + $0x1b0] sm:$0xff]  ;;  %v2697_v15 = vld [vmem:[#allocation8 + $0x1c0] sm:$0xff] }
 0x148   :  { %4220 = vmatmul.mubr.bf16.gmra.mrb[28].mxu0 %v2986_v37  ;;  %4063 = vmatprep.mubr.bf16.mxu1 %v778_v38  ;;  %v418_v37 = vmul.f32 %v5137_v48, %v349_v24  ;;  %v2883_v38 = vmax.f32 %v2819_v21, 0.0  ;;  %v354_v24 = vld [vmem:[#allocation2 + $0x190] sm:$0xff]  ;;  %v2890_v41 = vmax.f32 %v2826_v23, 0.0  ;;  %v2763_v52 = vmul.f32 %v5357_v42, %v2694_v40 }
 0x149   :  { %4223 = vmatprep.mubr.bf16.mxu0 %v2987_v43  ;;  %v485_v43 = vadd.f32 %v5147_v0, %v416_v27  ;;  %v2821_v45 = vadd.f32 %v5153_v5, %v2752_v32  ;;  %v2828_v31 = vadd.f32 %v5153_v5, %v2759_v16  ;;  %v356_v32 = vld [vmem:[#allocation2 + $0x1a0] sm:$0xff]  ;;  %v2891_v49 = vmax.f32 %v2827_v30, 0.0  ;;  %v2698_v16 = vld [vmem:[#allocation8 + $0x1c8] sm:$0xff]  ;;  %v2699_v40 = vld [vmem:[#allocation8 + $0x1d0] sm:$0xff] }
 0x14a   :  { %v487_v53 = vadd.f32 %v5147_v0, %v418_v37  ;;  %v2991_v56 = vpack.c.bf16 %v2884_v39, %v2883_v38  ;;  %v423_v37 = vmul.f32 %v5353_v36, %v354_v24  ;;  %v424_v38 = vmul.f32 %v5353_v36, %v355_v25  ;;  %v2693_v39 = vld [vmem:[#allocation8 + $0x1a0] sm:$0xff] }
 0x14b   :  { %v549_v61 = vmax.f32 %v485_v43, 0.0  ;;  %v2885_v3 = vmax.f32 %v2821_v45, 0.0  ;;  %v2760_v43 = vmul.f32 %v5357_v42, %v2691_v28  ;;  %v425_v46 = vmul.f32 %v5353_v36, %v356_v32 }
 0x14c   :  { %v551_v9 = vmax.f32 %v487_v53, 0.0  ;;  %v5365_v53 = vld [vmem:[#allocation10 + $0x4] ss:$0 sm:$0xff]  ;;  %v2767_v28 = vmul.f32 %v5357_v42, %v2698_v16 }
 0x14d   :  { %v783_v21 = vpack.c.bf16 %v549_v61, %v548_v14  ;;  %v2992_v26 = vpack.c.bf16 %v2886_v62, %v2885_v3  ;;  %v493_v55 = vadd.f32 %v5365_v53, %v424_v38  ;;  %v359_v14 = vld [vmem:[#allocation2 + $0x1b8] sm:$0xff]  ;;  %v495_v1 = vadd.f32 %v5365_v53, %v426_v47 }
 0x14e   :  { %v2696_v3 = vld [vmem:[#allocation8 + $0x1b8] sm:$0xff] }
 0x14f   :  { %4064 = vmatmul.mubr.bf16.gmra.mrb[32].mxu1 %v779_v6  ;;  %v2756_v6 = vmul.f32 %v5141_v17, %v2687_v54  ;;  %v492_v54 = vadd.f32 %v5365_v53, %v423_v37  ;;  %v559_v24 = vmax.f32 %v495_v1, 0.0 }
 0x150   :  { %4224 = vmatmul.mubr.bf16.gmra.mrb[32].mxu0 %v2988_v11  ;;  %4067 = vmatprep.mubr.bf16.mxu1 %v780_v12  ;;  %v422_v11 = vmul.f32 %v5137_v48, %v353_v60  ;;  %v2887_v12 = vmax.f32 %v2823_v22, 0.0  ;;  %v784_v48 = vpack.c.bf16 %v551_v9, %v550_v8  ;;  %v5369_v22 = vld [vmem:[#allocation10 + $0x7] ss:$0 sm:$0xff]  ;;  %v358_v60 = vld [vmem:[#allocation2 + $0x1b0] sm:$0xff]  ;;  %v361_v9 = vld [vmem:[#allocation2 + $0x1c8] sm:$0xff] }
 0x151   :  { %4227 = vmatprep.mubr.bf16.mxu0 %v2989_v19  ;;  %v489_v19 = vadd.f32 %v5147_v0, %v420_v63  ;;  %v2825_v20 = vadd.f32 %v5153_v5, %v2756_v6  ;;  %v2761_v5 = vmul.f32 %v5357_v42, %v2692_v29  ;;  %v2829_v57 = vadd.f32 %v5369_v22, %v2760_v43  ;;  %v360_v8 = vld [vmem:[#allocation2 + $0x1c0] sm:$0xff] }
 0x152   :  { %v491_v27 = vadd.f32 %v5147_v0, %v422_v11  ;;  %v2993_v17 = vpack.c.bf16 %v2888_v13, %v2887_v12  ;;  %v494_v63 = vadd.f32 %v5365_v53, %v425_v46  ;;  %v2832_v7 = vadd.f32 %v5369_v22, %v2763_v52  ;;  %v2702_v52 = vld [vmem:[#allocation8 + $0x1e8] sm:$0xff] }
 0x153   :  { %v553_v35 = vmax.f32 %v489_v19, 0.0  ;;  %v2889_v0 = vmax.f32 %v2825_v20, 0.0  ;;  %v2830_v59 = vadd.f32 %v5369_v22, %v2761_v5  ;;  %v556_v10 = vmax.f32 %v492_v54, 0.0 }
 0x154   :  { %v555_v45 = vmax.f32 %v491_v27, 0.0  ;;  %v557_v11 = vmax.f32 %v493_v55, 0.0  ;;  %v427_v12 = vmul.f32 %v5353_v36, %v358_v60  ;;  %v428_v13 = vmul.f32 %v5353_v36, %v359_v14 }
 0x155   :  { %v2994_v61 = vpack.c.bf16 %v2890_v41, %v2889_v0  ;;  %v2893_v18 = vmax.f32 %v2829_v57, 0.0  ;;  %v2894_v19 = vmax.f32 %v2830_v59, 0.0  ;;  %v2765_v20 = vmul.f32 %v5357_v42, %v2696_v3  ;;  %v2700_v0 = vld [vmem:[#allocation8 + $0x1d8] sm:$0xff] }
 0x156   :  { %v558_v23 = vmax.f32 %v494_v63, 0.0  ;;  %v429_v25 = vmul.f32 %v5353_v36, %v360_v8  ;;  %v2766_v27 = vmul.f32 %v5357_v42, %v2697_v15  ;;  %v496_v29 = vadd.f32 %v5365_v53, %v427_v12  ;;  %v367_v15 = vld [vmem:[#allocation2 + $0x1f8] sm:$0xff] }
 0x157   :  { %4068 = vmatmul.mubr.bf16.gmra.mrb[36].mxu1 %v781_v44  ;;  %v554_v44 = vmax.f32 %v490_v4, 0.0  ;;  %v2896_v4 = vmax.f32 %v2832_v7, 0.0  ;;  %v787_v30 = vpack.c.bf16 %v557_v11, %v556_v10  ;;  %v2834_v32 = vadd.f32 %v5369_v22, %v2765_v20  ;;  %v2704_v20 = vld [vmem:[#allocation8 + $0x1f8] sm:$0xff] }
 0x158   :  { %4228 = vmatmul.mubr.bf16.gmra.mrb[36].mxu0 %v2990_v50  ;;  %4071 = vmatprep.mubr.bf16.mxu1 %v782_v51  ;;  %v2892_v50 = vmax.f32 %v2828_v31, 0.0  ;;  %v2762_v51 = vmul.f32 %v5357_v42, %v2693_v39  ;;  %v788_v37 = vpack.c.bf16 %v559_v24, %v558_v23  ;;  %v498_v38 = vadd.f32 %v5365_v53, %v429_v25 }
 0x159   :  { %4231 = vmatprep.mubr.bf16.mxu0 %v2991_v56  ;;  %v785_v56 = vpack.c.bf16 %v553_v35, %v552_v34  ;;  %v786_v58 = vpack.c.bf16 %v555_v45, %v554_v44  ;;  %v363_v34 = vld [vmem:[#allocation2 + $0x1d8] sm:$0xff]  ;;  %v2996_v35 = vpack.c.bf16 %v2894_v19, %v2893_v18  ;;  %v2835_v43 = vadd.f32 %v5369_v22, %v2766_v27  ;;  %v364_v44 = vld [vmem:[#allocation2 + $0x1e0] sm:$0xff]  ;;  %v365_v45 = vld [vmem:[#allocation2 + $0x1e8] sm:$0xff] }
 0x15a   :  { %v2995_v62 = vpack.c.bf16 %v2892_v50, %v2891_v49  ;;  %v2831_v6 = vadd.f32 %v5369_v22, %v2762_v51  ;;  %v2836_v5 = vadd.f32 %v5369_v22, %v2767_v28  ;;  %v560_v46 = vmax.f32 %v496_v29, 0.0  ;;  %v2701_v51 = vld [vmem:[#allocation8 + $0x1e0] sm:$0xff] }
 0x15b   :  { %v431_v49 = vmul.f32 %v5353_v36, %v362_v33  ;;  %v432_v50 = vmul.f32 %v5353_v36, %v363_v34  ;;  %v2898_v55 = vmax.f32 %v2834_v32, 0.0  ;;  %v2769_v57 = vmul.f32 %v5357_v42, %v2700_v0 }
 0x15c   :  { %v562_v59 = vmax.f32 %v498_v38, 0.0  ;;  %v433_v14 = vmul.f32 %v5353_v36, %v364_v44  ;;  %v2900_v63 = vmax.f32 %v2836_v5, 0.0  ;;  %v2770_v1 = vmul.f32 %v5357_v42, %v2701_v51 }
 0x15d   :  { %v500_v3 = vadd.f32 %v5365_v53, %v431_v49  ;;  %v2838_v8 = vadd.f32 %v5369_v22, %v2769_v57 }
 0x15e   :  { %v502_v11 = vadd.f32 %v5365_v53, %v433_v14  ;;  %v2839_v18 = vadd.f32 %v5369_v22, %v2770_v1 }
 0x15f   :  { %4072 = vmatmul.mubr.bf16.gmra.mrb[40].mxu1 %v783_v21  ;;  %v2764_v21 = vmul.f32 %v5357_v42, %v2695_v2  ;;  %v2771_v2 = vmul.f32 %v5357_v42, %v2702_v52  ;;  %v564_v23 = vmax.f32 %v500_v3, 0.0 }
 0x160   :  { %4232 = vmatmul.mubr.bf16.gmra.mrb[40].mxu0 %v2992_v26  ;;  %4075 = vmatprep.mubr.bf16.mxu1 %v784_v48  ;;  %v430_v26 = vmul.f32 %v5353_v36, %v361_v9  ;;  %v2895_v48 = vmax.f32 %v2831_v6, 0.0  ;;  %v566_v27 = vmax.f32 %v502_v11, 0.0 }
 0x161   :  { %4235 = vmatprep.mubr.bf16.mxu0 %v2993_v17  ;;  %v497_v17 = vadd.f32 %v5365_v53, %v428_v13  ;;  %v2833_v31 = vadd.f32 %v5369_v22, %v2764_v21  ;;  %v366_v13 = vld [vmem:[#allocation2 + $0x1f0] sm:$0xff]  ;;  %v2840_v19 = vadd.f32 %v5369_v22, %v2771_v2 }
 0x162   :  { %v499_v39 = vadd.f32 %v5365_v53, %v430_v26  ;;  %v2997_v41 = vpack.c.bf16 %v2896_v4, %v2895_v48  ;;  %v2703_v21 = vld [vmem:[#allocation8 + $0x1f0] sm:$0xff]  ;;  %v2902_v26 = vmax.f32 %v2838_v8, 0.0  ;;  %v435_v48 = vmul.f32 %v5353_v36, %v366_v13 }
 0x163   :  { %v561_v47 = vmax.f32 %v497_v17, 0.0  ;;  %v2897_v54 = vmax.f32 %v2833_v31, 0.0  ;;  %v436_v4 = vmul.f32 %v5353_v36, %v367_v15  ;;  %v2772_v29 = vmul.f32 %v5357_v42, %v2703_v21 }
 0x164   :  { %v563_v60 = vmax.f32 %v499_v39, 0.0  ;;  %v2773_v17 = vmul.f32 %v5357_v42, %v2704_v20  ;;  %v2904_v31 = vmax.f32 %v2840_v19, 0.0  ;;  %v504_v33 = vadd.f32 %v5365_v53, %v435_v48 }
 0x165   :  { %v789_v6 = vpack.c.bf16 %v561_v47, %v560_v46  ;;  %v2998_v9 = vpack.c.bf16 %v2898_v55, %v2897_v54  ;;  %v505_v34 = vadd.f32 %v5365_v53, %v436_v4 }
 0x166   :  { %v790_v10 = vpack.c.bf16 %v563_v60, %v562_v59  ;;  %v2842_v38 = vadd.f32 %v5369_v22, %v2773_v17 }
 0x167   :  { %4076 = vmatmul.mubr.bf16.gmra.mrb[44].mxu1 %v785_v56  ;;  %v2768_v56 = vmul.f32 %v5357_v42, %v2699_v40  ;;  %v568_v40 = vmax.f32 %v504_v33, 0.0  ;;  %v569_v0 = vmax.f32 %v505_v34, 0.0 }
 0x168   :  { %4236 = vmatmul.mubr.bf16.gmra.mrb[44].mxu0 %v2994_v61  ;;  %4079 = vmatprep.mubr.bf16.mxu1 %v786_v58  ;;  %v434_v61 = vmul.f32 %v5353_v36, %v365_v45  ;;  %v2899_v58 = vmax.f32 %v2835_v43, 0.0  ;;  %v2841_v36 = vadd.f32 %v5369_v22, %v2772_v29 }
 0x169   :  { %4239 = vmatprep.mubr.bf16.mxu0 %v2995_v62  ;;  %v501_v62 = vadd.f32 %v5365_v53, %v432_v50  ;;  %v2837_v7 = vadd.f32 %v5369_v22, %v2768_v56  ;;  %v793_v43 = vpack.c.bf16 %v569_v0, %v568_v40 }
 0x16a   :  { %v503_v12 = vadd.f32 %v5365_v53, %v434_v61  ;;  %v2999_v16 = vpack.c.bf16 %v2900_v63, %v2899_v58  ;;  %v2905_v42 = vmax.f32 %v2841_v36, 0.0 }
 0x16b   :  { %v565_v24 = vmax.f32 %v501_v62, 0.0  ;;  %v2901_v25 = vmax.f32 %v2837_v7, 0.0 }
 0x16c   :  { %v567_v28 = vmax.f32 %v503_v12, 0.0 }
 0x16d   :  { %v791_v32 = vpack.c.bf16 %v565_v24, %v564_v23 }
 0x16f   :  { %4080 = vmatmul.mubr.bf16.gmra.mrb[48].mxu1 %v787_v30  ;;  %v2903_v30 = vmax.f32 %v2839_v18, 0.0 }
 0x170   :  { %4240 = vmatmul.mubr.bf16.gmra.mrb[48].mxu0 %v2996_v35  ;;  %4083 = vmatprep.mubr.bf16.mxu1 %v788_v37  ;;  %v3000_v35 = vpack.c.bf16 %v2902_v26, %v2901_v25  ;;  %v792_v37 = vpack.c.bf16 %v567_v28, %v566_v27 }
 0x171   :  { %4243 = vmatprep.mubr.bf16.mxu0 %v2997_v41  ;;  %v3001_v39 = vpack.c.bf16 %v2904_v31, %v2903_v30  ;;  %v2906_v41 = vmax.f32 %v2842_v38, 0.0 }
 0x173   :  { %v3002_v5 = vpack.c.bf16 %v2906_v41, %v2905_v42 }
 0x177   :  { %4084 = vmatmul.mubr.bf16.gmra.mrb[52].mxu1 %v789_v6 }
 0x178   :  { %4244 = vmatmul.mubr.bf16.gmra.mrb[52].mxu0 %v2998_v9  ;;  %4087 = vmatprep.mubr.bf16.mxu1 %v790_v10 }
 0x179   :  { %4247 = vmatprep.mubr.bf16.mxu0 %v2999_v16 }
 0x17f   :  { %4088 = vmatmul.mubr.bf16.gmra.mrb[56].mxu1 %v791_v32 }
 0x180   :  { %4248 = vmatmul.mubr.bf16.gmra.mrb[56].mxu0 %v3000_v35  ;;  %4091 = vmatprep.mubr.bf16.mxu1 %v792_v37 }
 0x181   :  { %4251 = vmatprep.mubr.bf16.mxu0 %v3001_v39 }
 0x187   :  { %4092 = vmatmul.mubr.bf16.gmra.mrb[60].mxu1 %v793_v43 }
 0x188   :  { %4252 = vmatmul.mubr.bf16.gmra.mrb[60].mxu0 %v3002_v5 }
 0x1e2   :  { %v4033_v53 = vpop.f32.mrb[0].mxu1 }
 0x1e3   :  { %v4193_v44 = vpop.f32.mrb[0].mxu0  ;;  %v1607_v45 = vpop.f32.mrb[1].mxu1 }
 0x1e4   :  { %v4255_v46 = vadd.f32 %v4193_v44, %v4033_v53  ;;  %v3101_v47 = vpop.f32.mrb[1].mxu0  ;;  %v4034_v49 = vpop.f32.mrb[2].mxu1 }
 0x1e5   :  { %v4256_v22 = vadd.f32 %v3101_v47, %v1607_v45  ;;  %v4194_v50 = vpop.f32.mrb[2].mxu0  ;;  %v1610_v51 = vpop.f32.mrb[3].mxu1 }
 0x1e6   :  { %3422 = vst [vmem:[#allocation13 + $0x10] sm:$0xff] %v4255_v46  ;;  %v4257_v52 = vadd.f32 %v4194_v50, %v4034_v49  ;;  %v3104_v54 = vpop.f32.mrb[3].mxu0  ;;  %v3556_v14 = vmul.f32 %v4255_v46, %v4255_v46 }
 0x1e7   :  { %3420 = vst [vmem:[#allocation13] sm:$0xff] %v4256_v22  ;;  %v4258_v55 = vadd.f32 %v3104_v54, %v1610_v51  ;;  %v3554_v56 = vmul.f32 %v4256_v22, %v4256_v22 }
 0x1e8   :  { %3423 = vst [vmem:[#allocation13 + $0x18] sm:$0xff] %v4257_v52  ;;  %v3557_v6 = vmul.f32 %v4257_v52, %v4257_v52 }
 0x1e9   :  { %3421 = vst [vmem:[#allocation13 + $0x8] sm:$0xff] %v4258_v55  ;;  %v3484_v57 = vadd.f32 %v4258_v55, %v4256_v22  ;;  %v3555_v59 = vmul.f32 %v4258_v55, %v4258_v55 }
 0x1ea   :  { %v4037_v60 = vpop.f32.mrb[4].mxu1 }
 0x1eb   :  { %v3485_v61 = vadd.f32 %v4255_v46, %v3484_v57  ;;  %v3618_v58 = vadd.f32 %v3555_v59, %v3554_v56  ;;  %v4197_v63 = vpop.f32.mrb[4].mxu0  ;;  %v1623_v1 = vpop.f32.mrb[5].mxu1 }
 0x1ec   :  { %v4259_v2 = vadd.f32 %v4197_v63, %v4037_v60  ;;  %v3117_v3 = vpop.f32.mrb[5].mxu0  ;;  %v4038_v62 = vpop.f32.mrb[6].mxu1 }
 0x1ed   :  { %v3619_v7 = vadd.f32 %v3618_v58, %v3556_v14  ;;  %v4260_v8 = vadd.f32 %v3117_v3, %v1623_v1  ;;  %v3486_v9 = vadd.f32 %v4257_v52, %v3485_v61  ;;  %v4198_v10 = vpop.f32.mrb[6].mxu0  ;;  %v1626_v11 = vpop.f32.mrb[7].mxu1 }
 0x1ee   :  { %3426 = vst [vmem:[#allocation13 + $0x30] sm:$0xff] %v4259_v2  ;;  %v4261_v12 = vadd.f32 %v4198_v10, %v4038_v62  ;;  %v3120_v13 = vpop.f32.mrb[7].mxu0  ;;  %v3560_v25 = vmul.f32 %v4259_v2, %v4259_v2 }
 0x1ef   :  { %3424 = vst [vmem:[#allocation13 + $0x20] sm:$0xff] %v4260_v8  ;;  %v3487_v15 = vadd.f32 %v4260_v8, %v3486_v9  ;;  %v3558_v16 = vmul.f32 %v4260_v8, %v4260_v8  ;;  %v3620_v18 = vadd.f32 %v3619_v7, %v3557_v6  ;;  %v4262_v19 = vadd.f32 %v3120_v13, %v1626_v11 }
 0x1f0   :  { %3427 = vst [vmem:[#allocation13 + $0x38] sm:$0xff] %v4261_v12  ;;  %v3561_v30 = vmul.f32 %v4261_v12, %v4261_v12 }
 0x1f1   :  { %v3621_v21 = vadd.f32 %v3620_v18, %v3558_v16  ;;  %3425 = vst [vmem:[#allocation13 + $0x28] sm:$0xff] %v4262_v19  ;;  %v3488_v20 = vadd.f32 %v4262_v19, %v3487_v15  ;;  %v3559_v23 = vmul.f32 %v4262_v19, %v4262_v19 }
 0x1f2   :  { %v4041_v24 = vpop.f32.mrb[8].mxu1 }
 0x1f3   :  { %v3489_v26 = vadd.f32 %v4259_v2, %v3488_v20  ;;  %v3622_v48 = vadd.f32 %v3621_v21, %v3559_v23  ;;  %v4201_v4 = vpop.f32.mrb[8].mxu0  ;;  %v1639_v27 = vpop.f32.mrb[9].mxu1 }
 0x1f4   :  { %v4263_v28 = vadd.f32 %v4201_v4, %v4041_v24  ;;  %v3133_v29 = vpop.f32.mrb[9].mxu0  ;;  %v4042_v17 = vpop.f32.mrb[10].mxu1 }
 0x1f5   :  { %v3623_v31 = vadd.f32 %v3622_v48, %v3560_v25  ;;  %v4264_v32 = vadd.f32 %v3133_v29, %v1639_v27  ;;  %v3490_v33 = vadd.f32 %v4261_v12, %v3489_v26  ;;  %v4202_v34 = vpop.f32.mrb[10].mxu0  ;;  %v1642_v35 = vpop.f32.mrb[11].mxu1 }
 0x1f6   :  { %3430 = vst [vmem:[#allocation13 + $0x50] sm:$0xff] %v4263_v28  ;;  %v4265_v37 = vadd.f32 %v4202_v34, %v4042_v17  ;;  %v3136_v36 = vpop.f32.mrb[11].mxu0  ;;  %v3564_v53 = vmul.f32 %v4263_v28, %v4263_v28 }
 0x1f7   :  { %3428 = vst [vmem:[#allocation13 + $0x40] sm:$0xff] %v4264_v32  ;;  %v3491_v38 = vadd.f32 %v4264_v32, %v3490_v33  ;;  %v3562_v39 = vmul.f32 %v4264_v32, %v4264_v32  ;;  %v3624_v40 = vadd.f32 %v3623_v31, %v3561_v30  ;;  %v4266_v0 = vadd.f32 %v3136_v36, %v1642_v35 }
 0x1f8   :  { %3431 = vst [vmem:[#allocation13 + $0x58] sm:$0xff] %v4265_v37  ;;  %v3565_v51 = vmul.f32 %v4265_v37, %v4265_v37 }
 0x1f9   :  { %v3625_v42 = vadd.f32 %v3624_v40, %v3562_v39  ;;  %3429 = vst [vmem:[#allocation13 + $0x48] sm:$0xff] %v4266_v0  ;;  %v3492_v41 = vadd.f32 %v4266_v0, %v3491_v38  ;;  %v3563_v43 = vmul.f32 %v4266_v0, %v4266_v0 }
 0x1fa   :  { %v4045_v5 = vpop.f32.mrb[12].mxu1 }
 0x1fb   :  { %v3493_v44 = vadd.f32 %v4263_v28, %v3492_v41  ;;  %v3626_v45 = vadd.f32 %v3625_v42, %v3563_v43  ;;  %v4205_v46 = vpop.f32.mrb[12].mxu0  ;;  %v1655_v47 = vpop.f32.mrb[13].mxu1 }
 0x1fc   :  { %v4267_v49 = vadd.f32 %v4205_v46, %v4045_v5  ;;  %v3149_v22 = vpop.f32.mrb[13].mxu0  ;;  %v4046_v50 = vpop.f32.mrb[14].mxu1 }
 0x1fd   :  { %v3627_v52 = vadd.f32 %v3626_v45, %v3564_v53  ;;  %v4268_v54 = vadd.f32 %v3149_v22, %v1655_v47  ;;  %v3494_v55 = vadd.f32 %v4265_v37, %v3493_v44  ;;  %v4206_v56 = vpop.f32.mrb[14].mxu0  ;;  %v1658_v57 = vpop.f32.mrb[15].mxu1 }
 0x1fe   :  { %3434 = vst [vmem:[#allocation13 + $0x70] sm:$0xff] %v4267_v49  ;;  %v4269_v59 = vadd.f32 %v4206_v56, %v4046_v50  ;;  %v3152_v60 = vpop.f32.mrb[15].mxu0  ;;  %v3568_v6 = vmul.f32 %v4267_v49, %v4267_v49 }
 0x1ff   :  { %3432 = vst [vmem:[#allocation13 + $0x60] sm:$0xff] %v4268_v54  ;;  %v3495_v14 = vadd.f32 %v4268_v54, %v3494_v55  ;;  %v3566_v61 = vmul.f32 %v4268_v54, %v4268_v54  ;;  %v3628_v58 = vadd.f32 %v3627_v52, %v3565_v51  ;;  %v4270_v63 = vadd.f32 %v3152_v60, %v1658_v57 }
 0x200   :  { %3435 = vst [vmem:[#allocation13 + $0x78] sm:$0xff] %v4269_v59  ;;  %v3569_v15 = vmul.f32 %v4269_v59, %v4269_v59 }
 0x201   :  { %v3629_v1 = vadd.f32 %v3628_v58, %v3566_v61  ;;  %3433 = vst [vmem:[#allocation13 + $0x68] sm:$0xff] %v4270_v63  ;;  %v3496_v2 = vadd.f32 %v4270_v63, %v3495_v14  ;;  %v3567_v3 = vmul.f32 %v4270_v63, %v4270_v63 }
 0x202   :  { %v4049_v62 = vpop.f32.mrb[16].mxu1 }
 0x203   :  { %v3497_v7 = vadd.f32 %v4267_v49, %v3496_v2  ;;  %v3630_v8 = vadd.f32 %v3629_v1, %v3567_v3  ;;  %v4209_v9 = vpop.f32.mrb[16].mxu0  ;;  %v1671_v10 = vpop.f32.mrb[17].mxu1 }
 0x204   :  { %v4271_v11 = vadd.f32 %v4209_v9, %v4049_v62  ;;  %v3165_v12 = vpop.f32.mrb[17].mxu0  ;;  %v4050_v13 = vpop.f32.mrb[18].mxu1 }
 0x205   :  { %v3631_v16 = vadd.f32 %v3630_v8, %v3568_v6  ;;  %v4272_v18 = vadd.f32 %v3165_v12, %v1671_v10  ;;  %v3498_v19 = vadd.f32 %v4269_v59, %v3497_v7  ;;  %v4210_v21 = vpop.f32.mrb[18].mxu0  ;;  %v1674_v20 = vpop.f32.mrb[19].mxu1 }
 0x206   :  { %3438 = vst [vmem:[#allocation13 + $0x90] sm:$0xff] %v4271_v11  ;;  %v4273_v23 = vadd.f32 %v4210_v21, %v4050_v13  ;;  %v3168_v24 = vpop.f32.mrb[19].mxu0  ;;  %v3572_v30 = vmul.f32 %v4271_v11, %v4271_v11 }
 0x207   :  { %3436 = vst [vmem:[#allocation13 + $0x80] sm:$0xff] %v4272_v18  ;;  %v3499_v25 = vadd.f32 %v4272_v18, %v3498_v19  ;;  %v3570_v26 = vmul.f32 %v4272_v18, %v4272_v18  ;;  %v3632_v48 = vadd.f32 %v3631_v16, %v3569_v15  ;;  %v4274_v4 = vadd.f32 %v3168_v24, %v1674_v20 }
 0x208   :  { %3439 = vst [vmem:[#allocation13 + $0x98] sm:$0xff] %v4273_v23  ;;  %v3573_v38 = vmul.f32 %v4273_v23, %v4273_v23 }
 0x209   :  { %v3633_v27 = vadd.f32 %v3632_v48, %v3570_v26  ;;  %3437 = vst [vmem:[#allocation13 + $0x88] sm:$0xff] %v4274_v4  ;;  %v3500_v28 = vadd.f32 %v4274_v4, %v3499_v25  ;;  %v3571_v29 = vmul.f32 %v4274_v4, %v4274_v4 }
 0x20a   :  { %v4053_v17 = vpop.f32.mrb[20].mxu1 }
 0x20b   :  { %v3501_v31 = vadd.f32 %v4271_v11, %v3500_v28  ;;  %v3634_v32 = vadd.f32 %v3633_v27, %v3571_v29  ;;  %v4213_v33 = vpop.f32.mrb[20].mxu0  ;;  %v1687_v34 = vpop.f32.mrb[21].mxu1 }
 0x20c   :  { %v4275_v35 = vadd.f32 %v4213_v33, %v4053_v17  ;;  %v3181_v37 = vpop.f32.mrb[21].mxu0  ;;  %v4054_v36 = vpop.f32.mrb[22].mxu1 }
 0x20d   :  { %v3635_v39 = vadd.f32 %v3634_v32, %v3572_v30  ;;  %v4276_v40 = vadd.f32 %v3181_v37, %v1687_v34  ;;  %v3502_v0 = vadd.f32 %v4273_v23, %v3501_v31  ;;  %v4214_v42 = vpop.f32.mrb[22].mxu0  ;;  %v1690_v41 = vpop.f32.mrb[23].mxu1 }
 0x20e   :  { %3442 = vst [vmem:[#allocation13 + $0xb0] sm:$0xff] %v4275_v35  ;;  %v4277_v43 = vadd.f32 %v4214_v42, %v4054_v36  ;;  %v3184_v5 = vpop.f32.mrb[23].mxu0  ;;  %v3576_v51 = vmul.f32 %v4275_v35, %v4275_v35 }
 0x20f   :  { %3440 = vst [vmem:[#allocation13 + $0xa0] sm:$0xff] %v4276_v40  ;;  %v3503_v53 = vadd.f32 %v4276_v40, %v3502_v0  ;;  %v3574_v44 = vmul.f32 %v4276_v40, %v4276_v40  ;;  %v3636_v45 = vadd.f32 %v3635_v39, %v3573_v38  ;;  %v4278_v46 = vadd.f32 %v3184_v5, %v1690_v41 }
 0x210   :  { %3443 = vst [vmem:[#allocation13 + $0xb8] sm:$0xff] %v4277_v43  ;;  %v3577_v14 = vmul.f32 %v4277_v43, %v4277_v43 }
 0x211   :  { %v3637_v47 = vadd.f32 %v3636_v45, %v3574_v44  ;;  %3441 = vst [vmem:[#allocation13 + $0xa8] sm:$0xff] %v4278_v46  ;;  %v3504_v49 = vadd.f32 %v4278_v46, %v3503_v53  ;;  %v3575_v22 = vmul.f32 %v4278_v46, %v4278_v46 }
 0x212   :  { %v4057_v50 = vpop.f32.mrb[24].mxu1 }
 0x213   :  { %v3505_v52 = vadd.f32 %v4275_v35, %v3504_v49  ;;  %v3638_v54 = vadd.f32 %v3637_v47, %v3575_v22  ;;  %v4217_v55 = vpop.f32.mrb[24].mxu0  ;;  %v1703_v56 = vpop.f32.mrb[25].mxu1 }
 0x214   :  { %v4279_v57 = vadd.f32 %v4217_v55, %v4057_v50  ;;  %v3197_v59 = vpop.f32.mrb[25].mxu0  ;;  %v4058_v60 = vpop.f32.mrb[26].mxu1 }
 0x215   :  { %v3639_v61 = vadd.f32 %v3638_v54, %v3576_v51  ;;  %v4280_v58 = vadd.f32 %v3197_v59, %v1703_v56  ;;  %v3506_v63 = vadd.f32 %v4277_v43, %v3505_v52  ;;  %v4218_v1 = vpop.f32.mrb[26].mxu0  ;;  %v1706_v2 = vpop.f32.mrb[27].mxu1 }
 0x216   :  { %3446 = vst [vmem:[#allocation13 + $0xd0] sm:$0xff] %v4279_v57  ;;  %v4281_v3 = vadd.f32 %v4218_v1, %v4058_v60  ;;  %v3200_v62 = vpop.f32.mrb[27].mxu0  ;;  %v3580_v15 = vmul.f32 %v4279_v57, %v4279_v57 }
 0x217   :  { %3444 = vst [vmem:[#allocation13 + $0xc0] sm:$0xff] %v4280_v58  ;;  %v3507_v6 = vadd.f32 %v4280_v58, %v3506_v63  ;;  %v3578_v7 = vmul.f32 %v4280_v58, %v4280_v58  ;;  %v3640_v8 = vadd.f32 %v3639_v61, %v3577_v14  ;;  %v4282_v9 = vadd.f32 %v3200_v62, %v1706_v2 }
 0x218   :  { %3447 = vst [vmem:[#allocation13 + $0xd8] sm:$0xff] %v4281_v3  ;;  %v3581_v25 = vmul.f32 %v4281_v3, %v4281_v3 }
 0x219   :  { %v3641_v10 = vadd.f32 %v3640_v8, %v3578_v7  ;;  %3445 = vst [vmem:[#allocation13 + $0xc8] sm:$0xff] %v4282_v9  ;;  %v3508_v11 = vadd.f32 %v4282_v9, %v3507_v6  ;;  %v3579_v12 = vmul.f32 %v4282_v9, %v4282_v9 }
 0x21a   :  { %v4061_v13 = vpop.f32.mrb[28].mxu1 }
 0x21b   :  { %v3509_v16 = vadd.f32 %v4279_v57, %v3508_v11  ;;  %v3642_v18 = vadd.f32 %v3641_v10, %v3579_v12  ;;  %v4221_v19 = vpop.f32.mrb[28].mxu0  ;;  %v1719_v21 = vpop.f32.mrb[29].mxu1 }
 0x21c   :  { %v4283_v20 = vadd.f32 %v4221_v19, %v4061_v13  ;;  %v3213_v23 = vpop.f32.mrb[29].mxu0  ;;  %v4062_v24 = vpop.f32.mrb[30].mxu1 }
 0x21d   :  { %v3643_v26 = vadd.f32 %v3642_v18, %v3580_v15  ;;  %v4284_v48 = vadd.f32 %v3213_v23, %v1719_v21  ;;  %v3510_v4 = vadd.f32 %v4281_v3, %v3509_v16  ;;  %v4222_v27 = vpop.f32.mrb[30].mxu0  ;;  %v1722_v28 = vpop.f32.mrb[31].mxu1 }
 0x21e   :  { %3450 = vst [vmem:[#allocation13 + $0xf0] sm:$0xff] %v4283_v20  ;;  %v4285_v29 = vadd.f32 %v4222_v27, %v4062_v24  ;;  %v3216_v17 = vpop.f32.mrb[31].mxu0  ;;  %v3584_v38 = vmul.f32 %v4283_v20, %v4283_v20 }
 0x21f   :  { %3448 = vst [vmem:[#allocation13 + $0xe0] sm:$0xff] %v4284_v48  ;;  %v3511_v30 = vadd.f32 %v4284_v48, %v3510_v4  ;;  %v3582_v31 = vmul.f32 %v4284_v48, %v4284_v48  ;;  %v3644_v32 = vadd.f32 %v3643_v26, %v3581_v25  ;;  %v4286_v33 = vadd.f32 %v3216_v17, %v1722_v28 }
 0x220   :  { %3451 = vst [vmem:[#allocation13 + $0xf8] sm:$0xff] %v4285_v29  ;;  %v3585_v53 = vmul.f32 %v4285_v29, %v4285_v29 }
 0x221   :  { %v3645_v34 = vadd.f32 %v3644_v32, %v3582_v31  ;;  %3449 = vst [vmem:[#allocation13 + $0xe8] sm:$0xff] %v4286_v33  ;;  %v3512_v35 = vadd.f32 %v4286_v33, %v3511_v30  ;;  %v3583_v37 = vmul.f32 %v4286_v33, %v4286_v33 }
 0x222   :  { %v4065_v36 = vpop.f32.mrb[32].mxu1 }
 0x223   :  { %v3513_v39 = vadd.f32 %v4283_v20, %v3512_v35  ;;  %v3646_v40 = vadd.f32 %v3645_v34, %v3583_v37  ;;  %v4225_v0 = vpop.f32.mrb[32].mxu0  ;;  %v1735_v42 = vpop.f32.mrb[33].mxu1 }
 0x224   :  { %v4287_v41 = vadd.f32 %v4225_v0, %v4065_v36  ;;  %v3229_v43 = vpop.f32.mrb[33].mxu0  ;;  %v4066_v5 = vpop.f32.mrb[34].mxu1 }
 0x225   :  { %v3647_v44 = vadd.f32 %v3646_v40, %v3584_v38  ;;  %v4288_v45 = vadd.f32 %v3229_v43, %v1735_v42  ;;  %v3514_v46 = vadd.f32 %v4285_v29, %v3513_v39  ;;  %v4226_v47 = vpop.f32.mrb[34].mxu0  ;;  %v1738_v49 = vpop.f32.mrb[35].mxu1 }
 0x226   :  { %3454 = vst [vmem:[#allocation13 + $0x110] sm:$0xff] %v4287_v41  ;;  %v4289_v22 = vadd.f32 %v4226_v47, %v4066_v5  ;;  %v3232_v50 = vpop.f32.mrb[35].mxu0  ;;  %v3588_v14 = vmul.f32 %v4287_v41, %v4287_v41 }
 0x227   :  { %3452 = vst [vmem:[#allocation13 + $0x100] sm:$0xff] %v4288_v45  ;;  %v3515_v51 = vadd.f32 %v4288_v45, %v3514_v46  ;;  %v3586_v52 = vmul.f32 %v4288_v45, %v4288_v45  ;;  %v3648_v54 = vadd.f32 %v3647_v44, %v3585_v53  ;;  %v4290_v55 = vadd.f32 %v3232_v50, %v1738_v49 }
 0x228   :  { %3455 = vst [vmem:[#allocation13 + $0x118] sm:$0xff] %v4289_v22  ;;  %v3589_v6 = vmul.f32 %v4289_v22, %v4289_v22 }
 0x229   :  { %v3649_v56 = vadd.f32 %v3648_v54, %v3586_v52  ;;  %3453 = vst [vmem:[#allocation13 + $0x108] sm:$0xff] %v4290_v55  ;;  %v3516_v57 = vadd.f32 %v4290_v55, %v3515_v51  ;;  %v3587_v59 = vmul.f32 %v4290_v55, %v4290_v55 }
 0x22a   :  { %v4069_v60 = vpop.f32.mrb[36].mxu1 }
 0x22b   :  { %v3517_v61 = vadd.f32 %v4287_v41, %v3516_v57  ;;  %v3650_v58 = vadd.f32 %v3649_v56, %v3587_v59  ;;  %v4229_v63 = vpop.f32.mrb[36].mxu0  ;;  %v1751_v1 = vpop.f32.mrb[37].mxu1 }
 0x22c   :  { %v4291_v2 = vadd.f32 %v4229_v63, %v4069_v60  ;;  %v3245_v3 = vpop.f32.mrb[37].mxu0  ;;  %v4070_v62 = vpop.f32.mrb[38].mxu1 }
 0x22d   :  { %v3651_v7 = vadd.f32 %v3650_v58, %v3588_v14  ;;  %v4292_v8 = vadd.f32 %v3245_v3, %v1751_v1  ;;  %v3518_v9 = vadd.f32 %v4289_v22, %v3517_v61  ;;  %v4230_v10 = vpop.f32.mrb[38].mxu0  ;;  %v1754_v11 = vpop.f32.mrb[39].mxu1 }
 0x22e   :  { %3458 = vst [vmem:[#allocation13 + $0x130] sm:$0xff] %v4291_v2  ;;  %v4293_v12 = vadd.f32 %v4230_v10, %v4070_v62  ;;  %v3248_v13 = vpop.f32.mrb[39].mxu0  ;;  %v3592_v25 = vmul.f32 %v4291_v2, %v4291_v2 }
 0x22f   :  { %3456 = vst [vmem:[#allocation13 + $0x120] sm:$0xff] %v4292_v8  ;;  %v3519_v15 = vadd.f32 %v4292_v8, %v3518_v9  ;;  %v3590_v16 = vmul.f32 %v4292_v8, %v4292_v8  ;;  %v3652_v18 = vadd.f32 %v3651_v7, %v3589_v6  ;;  %v4294_v19 = vadd.f32 %v3248_v13, %v1754_v11 }
 0x230   :  { %3459 = vst [vmem:[#allocation13 + $0x138] sm:$0xff] %v4293_v12  ;;  %v3593_v30 = vmul.f32 %v4293_v12, %v4293_v12 }
 0x231   :  { %v3653_v21 = vadd.f32 %v3652_v18, %v3590_v16  ;;  %3457 = vst [vmem:[#allocation13 + $0x128] sm:$0xff] %v4294_v19  ;;  %v3520_v20 = vadd.f32 %v4294_v19, %v3519_v15  ;;  %v3591_v23 = vmul.f32 %v4294_v19, %v4294_v19 }
 0x232   :  { %v4073_v24 = vpop.f32.mrb[40].mxu1 }
 0x233   :  { %v3521_v26 = vadd.f32 %v4291_v2, %v3520_v20  ;;  %v3654_v48 = vadd.f32 %v3653_v21, %v3591_v23  ;;  %v4233_v4 = vpop.f32.mrb[40].mxu0  ;;  %v1767_v27 = vpop.f32.mrb[41].mxu1 }
 0x234   :  { %v4295_v28 = vadd.f32 %v4233_v4, %v4073_v24  ;;  %v3261_v29 = vpop.f32.mrb[41].mxu0  ;;  %v4074_v17 = vpop.f32.mrb[42].mxu1 }
 0x235   :  { %v3655_v31 = vadd.f32 %v3654_v48, %v3592_v25  ;;  %v4296_v32 = vadd.f32 %v3261_v29, %v1767_v27  ;;  %v3522_v33 = vadd.f32 %v4293_v12, %v3521_v26  ;;  %v4234_v34 = vpop.f32.mrb[42].mxu0  ;;  %v1770_v35 = vpop.f32.mrb[43].mxu1 }
 0x236   :  { %3462 = vst [vmem:[#allocation13 + $0x150] sm:$0xff] %v4295_v28  ;;  %v4297_v37 = vadd.f32 %v4234_v34, %v4074_v17  ;;  %v3264_v36 = vpop.f32.mrb[43].mxu0  ;;  %v3596_v53 = vmul.f32 %v4295_v28, %v4295_v28 }
 0x237   :  { %3460 = vst [vmem:[#allocation13 + $0x140] sm:$0xff] %v4296_v32  ;;  %v3523_v38 = vadd.f32 %v4296_v32, %v3522_v33  ;;  %v3594_v39 = vmul.f32 %v4296_v32, %v4296_v32  ;;  %v3656_v40 = vadd.f32 %v3655_v31, %v3593_v30  ;;  %v4298_v0 = vadd.f32 %v3264_v36, %v1770_v35 }
 0x238   :  { %3463 = vst [vmem:[#allocation13 + $0x158] sm:$0xff] %v4297_v37  ;;  %v3597_v51 = vmul.f32 %v4297_v37, %v4297_v37 }
 0x239   :  { %v3657_v42 = vadd.f32 %v3656_v40, %v3594_v39  ;;  %3461 = vst [vmem:[#allocation13 + $0x148] sm:$0xff] %v4298_v0  ;;  %v3524_v41 = vadd.f32 %v4298_v0, %v3523_v38  ;;  %v3595_v43 = vmul.f32 %v4298_v0, %v4298_v0 }
 0x23a   :  { %v4077_v5 = vpop.f32.mrb[44].mxu1 }
 0x23b   :  { %v3525_v44 = vadd.f32 %v4295_v28, %v3524_v41  ;;  %v3658_v45 = vadd.f32 %v3657_v42, %v3595_v43  ;;  %v4237_v46 = vpop.f32.mrb[44].mxu0  ;;  %v1783_v47 = vpop.f32.mrb[45].mxu1 }
 0x23c   :  { %v4299_v49 = vadd.f32 %v4237_v46, %v4077_v5  ;;  %v3277_v22 = vpop.f32.mrb[45].mxu0  ;;  %v4078_v50 = vpop.f32.mrb[46].mxu1 }
 0x23d   :  { %v3659_v52 = vadd.f32 %v3658_v45, %v3596_v53  ;;  %v4300_v54 = vadd.f32 %v3277_v22, %v1783_v47  ;;  %v3526_v55 = vadd.f32 %v4297_v37, %v3525_v44  ;;  %v4238_v56 = vpop.f32.mrb[46].mxu0  ;;  %v1786_v57 = vpop.f32.mrb[47].mxu1 }
 0x23e   :  { %3466 = vst [vmem:[#allocation13 + $0x170] sm:$0xff] %v4299_v49  ;;  %v4301_v59 = vadd.f32 %v4238_v56, %v4078_v50  ;;  %v3280_v60 = vpop.f32.mrb[47].mxu0  ;;  %v3600_v6 = vmul.f32 %v4299_v49, %v4299_v49 }
 0x23f   :  { %3464 = vst [vmem:[#allocation13 + $0x160] sm:$0xff] %v4300_v54  ;;  %v3527_v14 = vadd.f32 %v4300_v54, %v3526_v55  ;;  %v3598_v61 = vmul.f32 %v4300_v54, %v4300_v54  ;;  %v3660_v58 = vadd.f32 %v3659_v52, %v3597_v51  ;;  %v4302_v63 = vadd.f32 %v3280_v60, %v1786_v57 }
 0x240   :  { %3467 = vst [vmem:[#allocation13 + $0x178] sm:$0xff] %v4301_v59  ;;  %v3601_v15 = vmul.f32 %v4301_v59, %v4301_v59 }
 0x241   :  { %v3661_v1 = vadd.f32 %v3660_v58, %v3598_v61  ;;  %3465 = vst [vmem:[#allocation13 + $0x168] sm:$0xff] %v4302_v63  ;;  %v3528_v2 = vadd.f32 %v4302_v63, %v3527_v14  ;;  %v3599_v3 = vmul.f32 %v4302_v63, %v4302_v63 }
 0x242   :  { %v4081_v62 = vpop.f32.mrb[48].mxu1 }
 0x243   :  { %v3529_v7 = vadd.f32 %v4299_v49, %v3528_v2  ;;  %v3662_v8 = vadd.f32 %v3661_v1, %v3599_v3  ;;  %v4241_v9 = vpop.f32.mrb[48].mxu0  ;;  %v1799_v10 = vpop.f32.mrb[49].mxu1 }
 0x244   :  { %v4303_v11 = vadd.f32 %v4241_v9, %v4081_v62  ;;  %v3293_v12 = vpop.f32.mrb[49].mxu0  ;;  %v4082_v13 = vpop.f32.mrb[50].mxu1 }
 0x245   :  { %v3663_v16 = vadd.f32 %v3662_v8, %v3600_v6  ;;  %v4304_v18 = vadd.f32 %v3293_v12, %v1799_v10  ;;  %v3530_v19 = vadd.f32 %v4301_v59, %v3529_v7  ;;  %v4242_v21 = vpop.f32.mrb[50].mxu0  ;;  %v1802_v20 = vpop.f32.mrb[51].mxu1 }
 0x246   :  { %3470 = vst [vmem:[#allocation13 + $0x190] sm:$0xff] %v4303_v11  ;;  %v4305_v23 = vadd.f32 %v4242_v21, %v4082_v13  ;;  %v3296_v24 = vpop.f32.mrb[51].mxu0  ;;  %v3604_v30 = vmul.f32 %v4303_v11, %v4303_v11 }
 0x247   :  { %3468 = vst [vmem:[#allocation13 + $0x180] sm:$0xff] %v4304_v18  ;;  %v3531_v25 = vadd.f32 %v4304_v18, %v3530_v19  ;;  %v3602_v26 = vmul.f32 %v4304_v18, %v4304_v18  ;;  %v3664_v48 = vadd.f32 %v3663_v16, %v3601_v15  ;;  %v4306_v4 = vadd.f32 %v3296_v24, %v1802_v20 }
 0x248   :  { %3471 = vst [vmem:[#allocation13 + $0x198] sm:$0xff] %v4305_v23  ;;  %v3605_v38 = vmul.f32 %v4305_v23, %v4305_v23 }
 0x249   :  { %v3665_v27 = vadd.f32 %v3664_v48, %v3602_v26  ;;  %3469 = vst [vmem:[#allocation13 + $0x188] sm:$0xff] %v4306_v4  ;;  %v3532_v28 = vadd.f32 %v4306_v4, %v3531_v25  ;;  %v3603_v29 = vmul.f32 %v4306_v4, %v4306_v4 }
 0x24a   :  { %v4085_v17 = vpop.f32.mrb[52].mxu1 }
 0x24b   :  { %v3533_v31 = vadd.f32 %v4303_v11, %v3532_v28  ;;  %v3666_v32 = vadd.f32 %v3665_v27, %v3603_v29  ;;  %v4245_v33 = vpop.f32.mrb[52].mxu0  ;;  %v1815_v34 = vpop.f32.mrb[53].mxu1 }
 0x24c   :  { %v4307_v35 = vadd.f32 %v4245_v33, %v4085_v17  ;;  %v3309_v37 = vpop.f32.mrb[53].mxu0  ;;  %v4086_v36 = vpop.f32.mrb[54].mxu1 }
 0x24d   :  { %v3667_v39 = vadd.f32 %v3666_v32, %v3604_v30  ;;  %v4308_v40 = vadd.f32 %v3309_v37, %v1815_v34  ;;  %v3534_v0 = vadd.f32 %v4305_v23, %v3533_v31  ;;  %v4246_v42 = vpop.f32.mrb[54].mxu0  ;;  %v1818_v41 = vpop.f32.mrb[55].mxu1 }
 0x24e   :  { %3474 = vst [vmem:[#allocation13 + $0x1b0] sm:$0xff] %v4307_v35  ;;  %v4309_v43 = vadd.f32 %v4246_v42, %v4086_v36  ;;  %v3312_v5 = vpop.f32.mrb[55].mxu0  ;;  %v3608_v51 = vmul.f32 %v4307_v35, %v4307_v35 }
 0x24f   :  { %3472 = vst [vmem:[#allocation13 + $0x1a0] sm:$0xff] %v4308_v40  ;;  %v3535_v53 = vadd.f32 %v4308_v40, %v3534_v0  ;;  %v3606_v44 = vmul.f32 %v4308_v40, %v4308_v40  ;;  %v3668_v45 = vadd.f32 %v3667_v39, %v3605_v38  ;;  %v4310_v46 = vadd.f32 %v3312_v5, %v1818_v41 }
 0x250   :  { %3475 = vst [vmem:[#allocation13 + $0x1b8] sm:$0xff] %v4309_v43  ;;  %v3609_v14 = vmul.f32 %v4309_v43, %v4309_v43 }
 0x251   :  { %v3669_v47 = vadd.f32 %v3668_v45, %v3606_v44  ;;  %3473 = vst [vmem:[#allocation13 + $0x1a8] sm:$0xff] %v4310_v46  ;;  %v3536_v49 = vadd.f32 %v4310_v46, %v3535_v53  ;;  %v3607_v22 = vmul.f32 %v4310_v46, %v4310_v46 }
 0x252   :  { %v4089_v50 = vpop.f32.mrb[56].mxu1 }
 0x253   :  { %v3537_v52 = vadd.f32 %v4307_v35, %v3536_v49  ;;  %v3670_v54 = vadd.f32 %v3669_v47, %v3607_v22  ;;  %v4249_v55 = vpop.f32.mrb[56].mxu0  ;;  %v1831_v56 = vpop.f32.mrb[57].mxu1 }
 0x254   :  { %v4311_v57 = vadd.f32 %v4249_v55, %v4089_v50  ;;  %v3325_v59 = vpop.f32.mrb[57].mxu0  ;;  %v4090_v60 = vpop.f32.mrb[58].mxu1 }
 0x255   :  { %v3671_v61 = vadd.f32 %v3670_v54, %v3608_v51  ;;  %v4312_v58 = vadd.f32 %v3325_v59, %v1831_v56  ;;  %v3538_v63 = vadd.f32 %v4309_v43, %v3537_v52  ;;  %v4250_v1 = vpop.f32.mrb[58].mxu0  ;;  %v1834_v2 = vpop.f32.mrb[59].mxu1 }
 0x256   :  { %3478 = vst [vmem:[#allocation13 + $0x1d0] sm:$0xff] %v4311_v57  ;;  %v4313_v3 = vadd.f32 %v4250_v1, %v4090_v60  ;;  %v3328_v62 = vpop.f32.mrb[59].mxu0  ;;  %v3612_v15 = vmul.f32 %v4311_v57, %v4311_v57 }
 0x257   :  { %3476 = vst [vmem:[#allocation13 + $0x1c0] sm:$0xff] %v4312_v58  ;;  %v3539_v6 = vadd.f32 %v4312_v58, %v3538_v63  ;;  %v3610_v7 = vmul.f32 %v4312_v58, %v4312_v58  ;;  %v3672_v8 = vadd.f32 %v3671_v61, %v3609_v14  ;;  %v4314_v9 = vadd.f32 %v3328_v62, %v1834_v2 }
 0x258   :  { %3479 = vst [vmem:[#allocation13 + $0x1d8] sm:$0xff] %v4313_v3  ;;  %v3613_v25 = vmul.f32 %v4313_v3, %v4313_v3 }
 0x259   :  { %v3673_v10 = vadd.f32 %v3672_v8, %v3610_v7  ;;  %3477 = vst [vmem:[#allocation13 + $0x1c8] sm:$0xff] %v4314_v9  ;;  %v3540_v11 = vadd.f32 %v4314_v9, %v3539_v6  ;;  %v3611_v12 = vmul.f32 %v4314_v9, %v4314_v9 }
 0x25a   :  { %v4093_v13 = vpop.f32.mrb[60].mxu1 }
 0x25b   :  { %v3541_v16 = vadd.f32 %v4311_v57, %v3540_v11  ;;  %v3674_v18 = vadd.f32 %v3673_v10, %v3611_v12  ;;  %v4253_v19 = vpop.f32.mrb[60].mxu0  ;;  %v1847_v21 = vpop.f32.mrb[61].mxu1 }
 0x25c   :  { %v4315_v20 = vadd.f32 %v4253_v19, %v4093_v13  ;;  %v3341_v23 = vpop.f32.mrb[61].mxu0  ;;  %v4094_v24 = vpop.f32.mrb[62].mxu1 }
 0x25d   :  { %v3675_v26 = vadd.f32 %v3674_v18, %v3612_v15  ;;  %v4316_v48 = vadd.f32 %v3341_v23, %v1847_v21  ;;  %v3542_v4 = vadd.f32 %v4313_v3, %v3541_v16  ;;  %v4254_v27 = vpop.f32.mrb[62].mxu0  ;;  %v1850_v28 = vpop.f32.mrb[63].mxu1 }
 0x25e   :  { %3482 = vst [vmem:[#allocation13 + $0x1f0] sm:$0xff] %v4315_v20  ;;  %v4317_v29 = vadd.f32 %v4254_v27, %v4094_v24  ;;  %v3344_v17 = vpop.f32.mrb[63].mxu0 }
 0x25f   :  { %3480 = vst [vmem:[#allocation13 + $0x1e0] sm:$0xff] %v4316_v48  ;;  %v3543_v30 = vadd.f32 %v4316_v48, %v3542_v4  ;;  %v3614_v31 = vmul.f32 %v4316_v48, %v4316_v48  ;;  %v3676_v32 = vadd.f32 %v3675_v26, %v3613_v25  ;;  %v4318_v33 = vadd.f32 %v3344_v17, %v1850_v28 }
 0x260   :  { %3483 = vst [vmem:[#allocation13 + $0x1f8] sm:$0xff] %v4317_v29 }
 0x261   :  { %v3677_v34 = vadd.f32 %v3676_v32, %v3614_v31  ;;  %3481 = vst [vmem:[#allocation13 + $0x1e8] sm:$0xff] %v4318_v33  ;;  %v3544_v35 = vadd.f32 %v4318_v33, %v3543_v30  ;;  %v3615_v37 = vmul.f32 %v4318_v33, %v4318_v33 }
 0x262   :  { %4643 = shalt.err (!%p4640_p10)
}
 0x263   :  { %s4644_s16 = scalar_lea.hbm %s5462_s6, 8192 }
 0x264   :  { %p4645_p11 = scmp.ne.s32.totalorder %s5462_s6, %s4644_s16  ;;  %p4648_p12 = scmp.lt.u32.totalorder %s4644_s16, %s5462_s6 }
 0x266   :  { %p4650_p13 = pnand %p4648_p12, %p4645_p11 }
 0x268   :  { %4653 = shalt.err (!%p4650_p13)
}
 0x269   :  { %3699 = dma.vmem_to_hbm [thread:$0]  %s3694_s11, 8192, %s5462_s6, [#allocation4], %s4712_s17, %s4712_s17, %s4713_s18   ;;  %v3616_v36 = vmul.f32 %v4315_v20, %v4315_v20  ;;  %v3545_v38 = vadd.f32 %v4315_v20, %v3544_v35  ;;  %v3678_v39 = vadd.f32 %v3677_v34, %v3615_v37  ;;  %v3617_v40 = vmul.f32 %v4317_v29, %v4317_v29 }
 0x26a   :  { %s4721_s12 = smov [#allocation14]   ;;  %s4722_s23 = smov [#allocation16]  }
 0x26b   :  { %v3546_v0 = vadd.f32 %v4317_v29, %v3545_v38  ;;  %v3679_v42 = vadd.f32 %v3678_v39, %v3616_v36  ;;  %s3706_s22 = sshll.u32 %s4721_s12, 4  ;;  %s3716_s6 = sshll.u32 %s4722_s23, 4  ;;  %s3707_s22 = int_to_ptr.vmem [resolvable:$true] %s3706_s22  ;;  %s3717_s6 = int_to_ptr.vmem [resolvable:$true] %s3716_s6 }
 0x26c   :  { %s4654_s17 = scalar_lea.vmem %s3707_s22, 128  ;;  %p4659_p1 = scmp.lt.s32.totalorder %s3707_s22, %s3707_s22 }
 0x26d   :  { %v3680_v41 = vadd.f32 %v3679_v42, %v3617_v40  ;;  %v3547_v43 = vrot.slane %v3546_v0, 4  ;;  %p4655_p0 = scmp.ne.s32.totalorder %s3707_s22, %s4654_s17  ;;  %p4660_p2 = scmp.lt.s32.totalorder %s4654_s17, %s4654_s17 }
 0x26f   :  { %v3548_v5 = vadd.f32 %v3547_v43, %v3546_v0  ;;  %v3681_v53 = vrot.slane %v3680_v41, 4  ;;  %p4661_p3 = por %p4660_p2, %p4659_p1 }
 0x271   :  { %v3549_v44 = vrot.slane %v3548_v5, 2  ;;  %v3682_v45 = vadd.f32 %v3681_v53, %v3680_v41  ;;  %p4662_p4 = pnand %p4661_p3, %p4655_p0 }
 0x273   :  { %v3550_v46 = vadd.f32 %v3549_v44, %v3548_v5  ;;  %v3683_v47 = vrot.slane %v3682_v45, 2 }
 0x275   :  { %v3551_v49 = vrot.slane %v3550_v46, 1  ;;  %v3684_v22 = vadd.f32 %v3683_v47, %v3682_v45 }
 0x277   :  { %v3552_v50 = vadd.f32 %v3551_v49, %v3550_v46  ;;  %v3685_v51 = vrot.slane %v3684_v22, 1 }
 0x279   :  { %3553 = vst [vmem:[#allocation14] sm:$0xff] %v3552_v50  ;;  %v3686_v52 = vadd.f32 %v3685_v51, %v3684_v22 }
 0x27a   :  { %4665 = shalt.err (!%p4662_p4)
}
 0x27b   :  { %s4666_s25 = scalar_lea.hbm %s5463_s7, 128 }
 0x27c   :  { %p4667_p5 = scmp.ne.s32.totalorder %s5463_s7, %s4666_s25  ;;  %p4670_p6 = scmp.lt.u32.totalorder %s4666_s25, %s5463_s7 }
 0x27e   :  { %p4672_p7 = pnand %p4670_p6, %p4667_p5 }
 0x280   :  { %4675 = shalt.err (!%p4672_p7)
}
 0x281   :  { %3709 = dma.vmem_to_hbm [thread:$0]  %s3707_s22, 128, %s5463_s7, [#allocation15]   ;;  %3687 = vst [vmem:[#allocation16] sm:$0xff] %v3686_v52 }
 0x282   :  { %s4676_s0 = scalar_lea.vmem %s3717_s6, 128  ;;  %p4681_p9 = scmp.lt.s32.totalorder %s3717_s6, %s3717_s6 }
 0x283   :  { %p4677_p8 = scmp.ne.s32.totalorder %s3717_s6, %s4676_s0  ;;  %p4682_p10 = scmp.lt.s32.totalorder %s4676_s0, %s4676_s0 }
 0x285   :  { %p4683_p11 = por %p4682_p10, %p4681_p9 }
 0x287   :  { %p4684_p12 = pnand %p4683_p11, %p4677_p8 }
 0x289   :  { %4687 = shalt.err (!%p4684_p12)
}
 0x28a   :  { %s4688_s5 = scalar_lea.hbm %s5464_s8, 128 }
 0x28b   :  { %p4689_p13 = scmp.ne.s32.totalorder %s5464_s8, %s4688_s5  ;;  %p4692_p0 = scmp.lt.u32.totalorder %s4688_s5, %s5464_s8 }
 0x28d   :  { %p4694_p1 = pnand %p4692_p0, %p4689_p13 }
 0x28f   :  { %4697 = shalt.err (!%p4694_p1)
}
 0x290   :  { %3719 = dma.vmem_to_hbm [thread:$0]  %s3717_s6, 128, %s5464_s8, [#allocation15]  }
 0x291   :  { %4706 = dma.done.wait [#allocation4], 8192  }
 0x292   :  { %4707 = vsyncadd [#allocation4], 4294959104 }
 0x293   :  { %4708 = dma.done.wait [#allocation15], 256  }
 0x294   :  { %4709 = vsyncadd [#allocation15], 4294967040 }
 0x295   :  { %3729 = vsyncpa [#allocation3], 1 }
 0x296   :  { %3730 = vsyncpa [#allocation6], 1 }
 0x297   :  { %3731 = vsyncpa [#allocation9], 1 }
 0x298   :  { %3732 = vsyncpa [#allocation12], 1 }
 0x299   :  { %3733 = vsyncpa [#allocation4], 1 }
 0x29a   :  { %3734 = vsyncpa [#allocation15], 1 }

</bundles_post_ra>
